<compile_context>
chip_gen: v5e
topology: v5e:2x2
jax: 0.10.0
libtpu: 0.0.40
codegen_flags: <defaults>
</compile_context>

<pallas_src>
import functools

import jax
import jax.numpy as jnp
from jax.experimental import pallas as pl
from jax.experimental.pallas import tpu as pltpu


def _round_up(n, m):
    return (n + m - 1) // m * m


def _make_resblock_kernel(offsets, C_pad, C_out_pad, TM, T1_pad, max_off,
                          res_scale, mm_dtype, use_im2col, cast_stage):
    KKK = len(offsets)

    def kernel(xw_ref, mask_ref, w1_ref, b1_ref, w2_ref, b2_ref, out_ref,
               *scratch):
        if use_im2col:
            xcol_ref, mid_ref = scratch
        else:
            (mid_ref,) = scratch

        # ---- hoisted operand cast: stage the halo'd x window once ----------
        if cast_stage:
            mid_ref[...] = xw_ref[...].astype(mm_dtype)
            src = mid_ref                 # taps read the compact staged window
        else:
            src = xw_ref                  # f32 path: read taps straight from x

        # ---- conv1 over the halo'd conv1-row range (T1_pad lanes) ----------
        if use_im2col:
            for k, off in enumerate(offsets):
                xcol_ref[k * C_pad:(k + 1) * C_pad, :] = src[:, off:off + T1_pad]
            h = jnp.dot(w1_ref[...], xcol_ref[...],
                        preferred_element_type=jnp.float32)
        else:
            # direct accumulation: no xcol stores at all (v5e-friendly)
            h = jnp.dot(w1_ref[0:C_pad, :], src[:, 0:T1_pad],
                        preferred_element_type=jnp.float32)
            for k in range(1, KKK):
                off = offsets[k]
                h = h + jnp.dot(w1_ref[k * C_pad:(k + 1) * C_pad, :],
                                src[:, off:off + T1_pad],
                                preferred_element_type=jnp.float32)

        # bias + ReLU in f32; zero all non-interior rows so the halo'd conv1
        # rows act as zero padding for conv2.
        h = jnp.maximum(h + b1_ref[...], 0.0) * mask_ref[...]

        # residual read in f32 from the (un-cast) window, real channel rows only
        resid = xw_ref[0:C_out_pad, max_off:max_off + TM]

        # masked conv1 output becomes conv2's (already zero-padded) input
        mid_ref[:, 0:T1_pad] = h.astype(mm_dtype)

        # ---- conv2 over this tile's TM output lanes -------------------------
        if use_im2col:
            for k, off in enumerate(offsets):
                xcol_ref[k * C_pad:(k + 1) * C_pad, 0:TM] = mid_ref[:, off:off + TM]
            y = jnp.dot(w2_ref[...], xcol_ref[:, 0:TM],
                        preferred_element_type=jnp.float32)
        else:
            y = jnp.dot(w2_ref[0:C_pad, :], mid_ref[:, 0:TM],
                        preferred_element_type=jnp.float32)
            for k in range(1, KKK):
                off = offsets[k]
                y = y + jnp.dot(w2_ref[k * C_pad:(k + 1) * C_pad, :],
                                mid_ref[:, off:off + TM],
                                preferred_element_type=jnp.float32)

        if C_out_pad < C_pad:
            y = y[0:C_out_pad, :]
        y = y + b2_ref[...]
        if res_scale != 1.0:              # static python float -> skip the mul
            y = y * res_scale
        out_ref[...] = (y + resid).astype(out_ref.dtype)

    return kernel


@functools.partial(
    jax.jit, static_argnames=("res_scale", "matmul_dtype", "im2col", "tile_m"))
def resblock_forward(x, w1, b1, w2, b2, res_scale=1.0, matmul_dtype="float32",
                     im2col=True, tile_m=None):
    """x: (B, C, D, H, W) f32 NCDHW.  w*: (K, K, K, Cin, Cout).  Returns NCDHW f32."""
    f32 = jnp.float32
    B, C, D, H, W = x.shape
    K = int(w1.shape[0])
    pad = K // 2
    Dp, Hp, Wp = D + 2 * pad, H + 2 * pad, W + 2 * pad
    M = Dp * Hp * Wp
    KKK = K * K * K
    offsets = tuple(kd * Hp * Wp + kh * Wp + kw
                    for kd in range(K) for kh in range(K) for kw in range(K))
    max_off = max(offsets)
    halo = pad * (Hp * Wp + Wp + 1)          # == max_off // 2
    Mv = M - max_off                         # conv-output rows that exist

    mm_dtype = {"float32": jnp.float32, "bfloat16": jnp.bfloat16}[matmul_dtype]
    if mm_dtype == jnp.bfloat16 and C % 16 != 0:
        mm_dtype = jnp.float32               # perf gate: bf16 only if C % 16 == 0
    cast_stage = mm_dtype != jnp.float32

    C_pad = _round_up(C, 16 if mm_dtype == jnp.bfloat16 else 8)
    C_out_pad = _round_up(C, 8)              # f32 output: 8-sublane alignment

    # ---- spatial tile over the flattened padded grid (lane axis) -----------
    if tile_m is None:
        TM = min(max(_round_up(2 * max_off, 128), 512), 4096)
    else:
        TM = _round_up(int(tile_m), 128)
    TM = min(TM, _round_up(Mv, 128))
    ntiles = -(-Mv // TM)
    T1 = TM + max_off                        # halo'd conv1 rows per tile
    T1_pad = _round_up(T1, 128)
    TW = T1_pad + max_off                    # x lanes each tile needs
    TW_pad = _round_up(TW, 128)

    # ---- wrapper glue: pad, halo'd windows, interior mask, packed params ---
    x_pad = jnp.pad(x.astype(f32),
                    ((0, 0), (0, C_pad - C), (pad, pad), (pad, pad), (pad, pad)))
    x_flat = x_pad.reshape(B, C_pad, M)
    Lx = max(halo + M, (ntiles - 1) * TM + TW_pad)
    x_buf = jnp.pad(x_flat, ((0, 0), (0, 0), (halo, Lx - halo - M)))
    # overlapping halo'd windows, one per spatial tile -> plain BlockSpec pipelining
    xw = jnp.stack([x_buf[:, :, j * TM:j * TM + TW_pad] for j in range(ntiles)],
                   axis=1)                                  # (B, ntiles, C_pad, TW_pad)

    mask3 = jnp.zeros((Dp, Hp, Wp), f32).at[:D, :H, :W].set(1.0)
    Lm = max((ntiles - 1) * TM + T1_pad, halo + Mv)
    mvec = jnp.zeros((Lm,), f32).at[halo:halo + Mv].set(mask3.reshape(M)[:Mv])
    mask_t = jnp.stack([mvec[j * TM:j * TM + T1_pad] for j in range(ntiles)],
                       axis=0).reshape(ntiles, 1, T1_pad)

    def pack_w(w):
        wv = jnp.pad(w.astype(f32),
                     ((0, 0), (0, 0), (0, 0), (0, C_pad - C), (0, C_pad - C)))
        wv = wv.reshape(KKK, C_pad, C_pad)                  # (tap, Cin, Cout)
        if im2col:
            # (Cout, KKK*Cin): one big-K matmul per conv
            return jnp.transpose(wv, (2, 0, 1)).reshape(
                C_pad, KKK * C_pad).astype(mm_dtype)
        # (KKK*Cout, Cin): 27 accumulated tap matmuls
        return jnp.transpose(wv, (0, 2, 1)).reshape(
            KKK * C_pad, C_pad).astype(mm_dtype)

    w1p, w2p = pack_w(w1), pack_w(w2)
    b1p = jnp.pad(b1.astype(f32), (0, C_pad - C)).reshape(C_pad, 1)
    b2p = jnp.pad(b2.astype(f32), (0, C_out_pad - C)).reshape(C_out_pad, 1)
    w_block = w1p.shape

    # ---- explicit VMEM budget (double-buffered blocks + scratch) ------------
    mm_size = jnp.dtype(mm_dtype).itemsize
    vmem = 2 * C_pad * TW_pad * 4                       # x window blocks
    vmem += 2 * T1_pad * 4                              # mask blocks
    vmem += 2 * 2 * KKK * C_pad * C_pad * mm_size       # w1 + w2 blocks
    vmem += 2 * (C_pad + C_out_pad) * 4                 # biases
    vmem += 2 * C_out_pad * TM * 4                      # output blocks
    vmem += C_pad * (TW_pad if cast_stage else T1_pad) * mm_size   # mid scratch
    if im2col:
        vmem += KKK * C_pad * T1_pad * mm_size          # im2col scratch
    vmem_limit = int(min(max(int(vmem * 1.25), 32 * 1024 * 1024),
                         100 * 1024 * 1024))

    scratch = []
    if im2col:
        scratch.append(pltpu.VMEM((KKK * C_pad, T1_pad), mm_dtype))
    scratch.append(pltpu.VMEM((C_pad, TW_pad if cast_stage else T1_pad), mm_dtype))

    kernel = _make_resblock_kernel(offsets, C_pad, C_out_pad, TM, T1_pad, max_off,
                                   float(res_scale), mm_dtype, bool(im2col),
                                   cast_stage)

    out_flat = pl.pallas_call(
        kernel,
        out_shape=jax.ShapeDtypeStruct((B, C_out_pad, ntiles * TM), f32),
        grid_spec=pltpu.PrefetchScalarGridSpec(
            num_scalar_prefetch=0,
            grid=(B, ntiles),
            in_specs=[
                pl.BlockSpec((None, None, C_pad, TW_pad),
                             lambda b, j: (b, j, 0, 0)),        # halo'd x window
                pl.BlockSpec((None, 1, T1_pad), lambda b, j: (j, 0, 0)),  # mask
                pl.BlockSpec(w_block, lambda b, j: (0, 0)),     # w1 packed
                pl.BlockSpec((C_pad, 1), lambda b, j: (0, 0)),  # b1
                pl.BlockSpec(w_block, lambda b, j: (0, 0)),     # w2 packed
                pl.BlockSpec((C_out_pad, 1), lambda b, j: (0, 0)),  # b2
            ],
            out_specs=pl.BlockSpec((None, C_out_pad, TM), lambda b, j: (b, 0, j)),
            scratch_shapes=scratch,
        ),
        compiler_params=pltpu.CompilerParams(
            dimension_semantics=("parallel", "parallel"),
            vmem_limit_bytes=vmem_limit),
    )(xw, mask_t, w1p, b1p, w2p, b2p)

    # glue: real channels, gather valid rows m = d*Hp*Wp + h*Wp + w -> NCDHW crop
    need = D * Hp * Wp
    out_flat = out_flat[:, :C, :]
    if out_flat.shape[-1] < need:
        out_flat = jnp.pad(out_flat, ((0, 0), (0, 0), (0, need - out_flat.shape[-1])))
    return out_flat[:, :, :need].reshape(B, C, D, Hp, Wp)[:, :, :, :H, :W]


# ------------------------- pure-JAX reference -------------------------
def _conv3d_ref(x_cl, w, b):
    y = jax.lax.conv_general_dilated(
        x_cl, w, window_strides=(1, 1, 1),
        padding=[(1, 1), (1, 1), (1, 1)],
        dimension_numbers=("NDHWC", "DHWIO", "NDHWC"))
    return y + b


def resblock_reference(x, w1, b1, w2, b2, res_scale=1.0):
    x_cl = jnp.transpose(x, (0, 2, 3, 4, 1))
    y = jax.nn.relu(_conv3d_ref(x_cl, w1, b1))
    y = _conv3d_ref(y, w2, b2)
    out = y * res_scale + x_cl
    return jnp.transpose(out, (0, 4, 1, 2, 3))


if __name__ == "__main__":
    def make(B, C, D, H, W, key):
        kx, kw1, kb1, kw2, kb2 = jax.random.split(key, 5)
        x = jax.random.normal(kx, (B, C, D, H, W), jnp.float32)
        w1 = jax.random.normal(kw1, (3, 3, 3, C, C), jnp.float32) * 0.1
        b1 = jax.random.normal(kb1, (C,), jnp.float32) * 0.1
        w2 = jax.random.normal(kw2, (3, 3, 3, C, C), jnp.float32) * 0.1
        b2 = jax.random.normal(kb2, (C,), jnp.float32) * 0.1
        return x, w1, b1, w2, b2

    k1, k2 = jax.random.split(jax.random.PRNGKey(0))

    # f32 operand path, 2 spatial tiles, both conv strategies.
    x, w1, b1, w2, b2 = make(2, 8, 8, 8, 8, k1)
    ref = resblock_reference(x, w1, b1, w2, b2, res_scale=1.0)
    for use_im2col in (True, False):
        out = jax.block_until_ready(
            resblock_forward(x, w1, b1, w2, b2, res_scale=1.0, im2col=use_im2col))
        assert out.shape == x.shape and out.dtype == jnp.float32
        err = float(jnp.max(jnp.abs(out - ref)))
        assert err < 2e-4, (use_im2col, err)

    # bf16 operand path (gated to C % 16 == 0), forced multi-tile, both strategies.
    xb, w1b, b1b, w2b, b2b = make(1, 16, 6, 6, 6, k2)
    refb = resblock_reference(xb, w1b, b1b, w2b, b2b, res_scale=1.0)
    for use_im2col in (True, False):
        outb = jax.block_until_ready(
            resblock_forward(xb, w1b, b1b, w2b, b2b, res_scale=1.0,
                             matmul_dtype="bfloat16", im2col=use_im2col,
                             tile_m=256))
        assert outb.shape == xb.shape and outb.dtype == jnp.float32
        errb = float(jnp.max(jnp.abs(outb - refb)))
        assert errb < 5e-1, (use_im2col, errb)

    print("KERNEL_OK")
</pallas_src>

<mosaic_0001>
module attributes {stable_mosaic.version = 11 : i64} {
  func.func @kernel(%arg0: i32, %arg1: i32, %arg2: memref<1x1x8x1024xf32, #tpu.memory_space<vmem>>, %arg3: memref<1x1x768xf32, #tpu.memory_space<vmem>>, %arg4: memref<8x216xf32, #tpu.memory_space<vmem>>, %arg5: memref<8x1xf32, #tpu.memory_space<vmem>>, %arg6: memref<8x216xf32, #tpu.memory_space<vmem>>, %arg7: memref<8x1xf32, #tpu.memory_space<vmem>>, %arg8: memref<1x8x512xf32, #tpu.memory_space<vmem>>, %arg9: memref<216x768xf32, #tpu.memory_space<vmem>>, %arg10: memref<8x768xf32, #tpu.memory_space<vmem>>) attributes {dimension_semantics = [#tpu.dimension_semantics<parallel>, #tpu.dimension_semantics<parallel>], iteration_bounds = array<i64: 2, 2>, scalar_prefetch = 0 : i64, scratch_operands = 2 : i64, tpu.core_type = #tpu.core_type<tc>, window_params = [{transform_indices = @transform_0, window_bounds = array<i64: 1, 1, 8, 1024>}, {transform_indices = @transform_1, window_bounds = array<i64: 1, 1, 768>}, {pipeline_mode = #tpu.pipeline_mode<synchronous>, transform_indices = @transform_2, window_bounds = array<i64: 8, 216>}, {pipeline_mode = #tpu.pipeline_mode<synchronous>, transform_indices = @transform_3, window_bounds = array<i64: 8, 1>}, {pipeline_mode = #tpu.pipeline_mode<synchronous>, transform_indices = @transform_4, window_bounds = array<i64: 8, 216>}, {pipeline_mode = #tpu.pipeline_mode<synchronous>, transform_indices = @transform_5, window_bounds = array<i64: 8, 1>}, {transform_indices = @transform_6, window_bounds = array<i64: 1, 8, 512>}]} {
    %c0 = arith.constant 0 : index
    %c0_0 = arith.constant 0 : index
    %c0_1 = arith.constant 0 : index
    %c0_2 = arith.constant 0 : index
    %0 = vector.load %arg2[%c0, %c0_0, %c0_1, %c0_2] : memref<1x1x8x1024xf32, #tpu.memory_space<vmem>>, vector<1x1x8x768xf32>
    %1 = vector.shape_cast %0 : vector<1x1x8x768xf32> to vector<8x768xf32>
    %c0_3 = arith.constant 0 : index
    %c0_4 = arith.constant 0 : index
    %2 = vector.load %arg9[%c0_3, %c0_4] : memref<216x768xf32, #tpu.memory_space<vmem>>, vector<8x768xf32>
    tpu.vector_store %arg9[%c0_3, %c0_4], %1 {strides = array<i32>} : memref<216x768xf32, #tpu.memory_space<vmem>>, vector<8x768xf32>,
    %c0_5 = arith.constant 0 : index
    %c0_6 = arith.constant 0 : index
    %c0_7 = arith.constant 0 : index
    %c1 = arith.constant 1 : index
    %3 = vector.load %arg2[%c0_5, %c0_6, %c0_7, %c1] : memref<1x1x8x1024xf32, #tpu.memory_space<vmem>>, vector<1x1x8x768xf32>
    %4 = vector.shape_cast %3 : vector<1x1x8x768xf32> to vector<8x768xf32>
    %c8 = arith.constant 8 : index
    %c0_8 = arith.constant 0 : index
    %5 = vector.load %arg9[%c8, %c0_8] : memref<216x768xf32, #tpu.memory_space<vmem>>, vector<8x768xf32>
    tpu.vector_store %arg9[%c8, %c0_8], %4 {strides = array<i32>} : memref<216x768xf32, #tpu.memory_space<vmem>>, vector<8x768xf32>,
    %c0_9 = arith.constant 0 : index
    %c0_10 = arith.constant 0 : index
    %c0_11 = arith.constant 0 : index
    %c2 = arith.constant 2 : index
    %6 = vector.load %arg2[%c0_9, %c0_10, %c0_11, %c2] : memref<1x1x8x1024xf32, #tpu.memory_space<vmem>>, vector<1x1x8x768xf32>
    %7 = vector.shape_cast %6 : vector<1x1x8x768xf32> to vector<8x768xf32>
    %c16 = arith.constant 16 : index
    %c0_12 = arith.constant 0 : index
    %8 = vector.load %arg9[%c16, %c0_12] : memref<216x768xf32, #tpu.memory_space<vmem>>, vector<8x768xf32>
    tpu.vector_store %arg9[%c16, %c0_12], %7 {strides = array<i32>} : memref<216x768xf32, #tpu.memory_space<vmem>>, vector<8x768xf32>,
    %c0_13 = arith.constant 0 : index
    %c0_14 = arith.constant 0 : index
    %c0_15 = arith.constant 0 : index
    %c10 = arith.constant 10 : index
    %9 = vector.load %arg2[%c0_13, %c0_14, %c0_15, %c10] : memref<1x1x8x1024xf32, #tpu.memory_space<vmem>>, vector<1x1x8x768xf32>
    %10 = vector.shape_cast %9 : vector<1x1x8x768xf32> to vector<8x768xf32>
    %c24 = arith.constant 24 : index
    %c0_16 = arith.constant 0 : index
    %11 = vector.load %arg9[%c24, %c0_16] : memref<216x768xf32, #tpu.memory_space<vmem>>, vector<8x768xf32>
    tpu.vector_store %arg9[%c24, %c0_16], %10 {strides = array<i32>} : memref<216x768xf32, #tpu.memory_space<vmem>>, vector<8x768xf32>,
    %c0_17 = arith.constant 0 : index
    %c0_18 = arith.constant 0 : index
    %c0_19 = arith.constant 0 : index
    %c11 = arith.constant 11 : index
    %12 = vector.load %arg2[%c0_17, %c0_18, %c0_19, %c11] : memref<1x1x8x1024xf32, #tpu.memory_space<vmem>>, vector<1x1x8x768xf32>
    %13 = vector.shape_cast %12 : vector<1x1x8x768xf32> to vector<8x768xf32>
    %c32 = arith.constant 32 : index
    %c0_20 = arith.constant 0 : index
    %14 = vector.load %arg9[%c32, %c0_20] : memref<216x768xf32, #tpu.memory_space<vmem>>, vector<8x768xf32>
    tpu.vector_store %arg9[%c32, %c0_20], %13 {strides = array<i32>} : memref<216x768xf32, #tpu.memory_space<vmem>>, vector<8x768xf32>,
    %c0_21 = arith.constant 0 : index
    %c0_22 = arith.constant 0 : index
    %c0_23 = arith.constant 0 : index
    %c12 = arith.constant 12 : index
    %15 = vector.load %arg2[%c0_21, %c0_22, %c0_23, %c12] : memref<1x1x8x1024xf32, #tpu.memory_space<vmem>>, vector<1x1x8x768xf32>
    %16 = vector.shape_cast %15 : vector<1x1x8x768xf32> to vector<8x768xf32>
    %c40 = arith.constant 40 : index
    %c0_24 = arith.constant 0 : index
    %17 = vector.load %arg9[%c40, %c0_24] : memref<216x768xf32, #tpu.memory_space<vmem>>, vector<8x768xf32>
    tpu.vector_store %arg9[%c40, %c0_24], %16 {strides = array<i32>} : memref<216x768xf32, #tpu.memory_space<vmem>>, vector<8x768xf32>,
    %c0_25 = arith.constant 0 : index
    %c0_26 = arith.constant 0 : index
    %c0_27 = arith.constant 0 : index
    %c20 = arith.constant 20 : index
    %18 = vector.load %arg2[%c0_25, %c0_26, %c0_27, %c20] : memref<1x1x8x1024xf32, #tpu.memory_space<vmem>>, vector<1x1x8x768xf32>
    %19 = vector.shape_cast %18 : vector<1x1x8x768xf32> to vector<8x768xf32>
    %c48 = arith.constant 48 : index
    %c0_28 = arith.constant 0 : index
    %20 = vector.load %arg9[%c48, %c0_28] : memref<216x768xf32, #tpu.memory_space<vmem>>, vector<8x768xf32>
    tpu.vector_store %arg9[%c48, %c0_28], %19 {strides = array<i32>} : memref<216x768xf32, #tpu.memory_space<vmem>>, vector<8x768xf32>,
    %c0_29 = arith.constant 0 : index
    %c0_30 = arith.constant 0 : index
    %c0_31 = arith.constant 0 : index
    %c21 = arith.constant 21 : index
    %21 = vector.load %arg2[%c0_29, %c0_30, %c0_31, %c21] : memref<1x1x8x1024xf32, #tpu.memory_space<vmem>>, vector<1x1x8x768xf32>
    %22 = vector.shape_cast %21 : vector<1x1x8x768xf32> to vector<8x768xf32>
    %c56 = arith.constant 56 : index
    %c0_32 = arith.constant 0 : index
    %23 = vector.load %arg9[%c56, %c0_32] : memref<216x768xf32, #tpu.memory_space<vmem>>, vector<8x768xf32>
    tpu.vector_store %arg9[%c56, %c0_32], %22 {strides = array<i32>} : memref<216x768xf32, #tpu.memory_space<vmem>>, vector<8x768xf32>,
    %c0_33 = arith.constant 0 : index
    %c0_34 = arith.constant 0 : index
    %c0_35 = arith.constant 0 : index
    %c22 = arith.constant 22 : index
    %24 = vector.load %arg2[%c0_33, %c0_34, %c0_35, %c22] : memref<1x1x8x1024xf32, #tpu.memory_space<vmem>>, vector<1x1x8x768xf32>
    %25 = vector.shape_cast %24 : vector<1x1x8x768xf32> to vector<8x768xf32>
    %c64 = arith.constant 64 : index
    %c0_36 = arith.constant 0 : index
    %26 = vector.load %arg9[%c64, %c0_36] : memref<216x768xf32, #tpu.memory_space<vmem>>, vector<8x768xf32>
    tpu.vector_store %arg9[%c64, %c0_36], %25 {strides = array<i32>} : memref<216x768xf32, #tpu.memory_space<vmem>>, vector<8x768xf32>,
    %c0_37 = arith.constant 0 : index
    %c0_38 = arith.constant 0 : index
    %c0_39 = arith.constant 0 : index
    %c100 = arith.constant 100 : index
    %27 = vector.load %arg2[%c0_37, %c0_38, %c0_39, %c100] : memref<1x1x8x1024xf32, #tpu.memory_space<vmem>>, vector<1x1x8x768xf32>
    %28 = vector.shape_cast %27 : vector<1x1x8x768xf32> to vector<8x768xf32>
    %c72 = arith.constant 72 : index
    %c0_40 = arith.constant 0 : index
    %29 = vector.load %arg9[%c72, %c0_40] : memref<216x768xf32, #tpu.memory_space<vmem>>, vector<8x768xf32>
    tpu.vector_store %arg9[%c72, %c0_40], %28 {strides = array<i32>} : memref<216x768xf32, #tpu.memory_space<vmem>>, vector<8x768xf32>,
    %c0_41 = arith.constant 0 : index
    %c0_42 = arith.constant 0 : index
    %c0_43 = arith.constant 0 : index
    %c101 = arith.constant 101 : index
    %30 = vector.load %arg2[%c0_41, %c0_42, %c0_43, %c101] : memref<1x1x8x1024xf32, #tpu.memory_space<vmem>>, vector<1x1x8x768xf32>
    %31 = vector.shape_cast %30 : vector<1x1x8x768xf32> to vector<8x768xf32>
    %c80 = arith.constant 80 : index
    %c0_44 = arith.constant 0 : index
    %32 = vector.load %arg9[%c80, %c0_44] : memref<216x768xf32, #tpu.memory_space<vmem>>, vector<8x768xf32>
    tpu.vector_store %arg9[%c80, %c0_44], %31 {strides = array<i32>} : memref<216x768xf32, #tpu.memory_space<vmem>>, vector<8x768xf32>,
    %c0_45 = arith.constant 0 : index
    %c0_46 = arith.constant 0 : index
    %c0_47 = arith.constant 0 : index
    %c102 = arith.constant 102 : index
    %33 = vector.load %arg2[%c0_45, %c0_46, %c0_47, %c102] : memref<1x1x8x1024xf32, #tpu.memory_space<vmem>>, vector<1x1x8x768xf32>
    %34 = vector.shape_cast %33 : vector<1x1x8x768xf32> to vector<8x768xf32>
    %c88 = arith.constant 88 : index
    %c0_48 = arith.constant 0 : index
    %35 = vector.load %arg9[%c88, %c0_48] : memref<216x768xf32, #tpu.memory_space<vmem>>, vector<8x768xf32>
    tpu.vector_store %arg9[%c88, %c0_48], %34 {strides = array<i32>} : memref<216x768xf32, #tpu.memory_space<vmem>>, vector<8x768xf32>,
    %c0_49 = arith.constant 0 : index
    %c0_50 = arith.constant 0 : index
    %c0_51 = arith.constant 0 : index
    %c110 = arith.constant 110 : index
    %36 = vector.load %arg2[%c0_49, %c0_50, %c0_51, %c110] : memref<1x1x8x1024xf32, #tpu.memory_space<vmem>>, vector<1x1x8x768xf32>
    %37 = vector.shape_cast %36 : vector<1x1x8x768xf32> to vector<8x768xf32>
    %c96 = arith.constant 96 : index
    %c0_52 = arith.constant 0 : index
    %38 = vector.load %arg9[%c96, %c0_52] : memref<216x768xf32, #tpu.memory_space<vmem>>, vector<8x768xf32>
    tpu.vector_store %arg9[%c96, %c0_52], %37 {strides = array<i32>} : memref<216x768xf32, #tpu.memory_space<vmem>>, vector<8x768xf32>,
    %c0_53 = arith.constant 0 : index
    %c0_54 = arith.constant 0 : index
    %c0_55 = arith.constant 0 : index
    %c111 = arith.constant 111 : index
    %39 = vector.load %arg2[%c0_53, %c0_54, %c0_55, %c111] : memref<1x1x8x1024xf32, #tpu.memory_space<vmem>>, vector<1x1x8x768xf32>
    %40 = vector.shape_cast %39 : vector<1x1x8x768xf32> to vector<8x768xf32>
    %c104 = arith.constant 104 : index
    %c0_56 = arith.constant 0 : index
    %41 = vector.load %arg9[%c104, %c0_56] : memref<216x768xf32, #tpu.memory_space<vmem>>, vector<8x768xf32>
    tpu.vector_store %arg9[%c104, %c0_56], %40 {strides = array<i32>} : memref<216x768xf32, #tpu.memory_space<vmem>>, vector<8x768xf32>,
    %c0_57 = arith.constant 0 : index
    %c0_58 = arith.constant 0 : index
    %c0_59 = arith.constant 0 : index
    %c112 = arith.constant 112 : index
    %42 = vector.load %arg2[%c0_57, %c0_58, %c0_59, %c112] : memref<1x1x8x1024xf32, #tpu.memory_space<vmem>>, vector<1x1x8x768xf32>
    %43 = vector.shape_cast %42 : vector<1x1x8x768xf32> to vector<8x768xf32>
    %c112_60 = arith.constant 112 : index
    %c0_61 = arith.constant 0 : index
    %44 = vector.load %arg9[%c112_60, %c0_61] : memref<216x768xf32, #tpu.memory_space<vmem>>, vector<8x768xf32>
    tpu.vector_store %arg9[%c112_60, %c0_61], %43 {strides = array<i32>} : memref<216x768xf32, #tpu.memory_space<vmem>>, vector<8x768xf32>,
    %c0_62 = arith.constant 0 : index
    %c0_63 = arith.constant 0 : index
    %c0_64 = arith.constant 0 : index
    %c120 = arith.constant 120 : index
    %45 = vector.load %arg2[%c0_62, %c0_63, %c0_64, %c120] : memref<1x1x8x1024xf32, #tpu.memory_space<vmem>>, vector<1x1x8x768xf32>
    %46 = vector.shape_cast %45 : vector<1x1x8x768xf32> to vector<8x768xf32>
    %c120_65 = arith.constant 120 : index
    %c0_66 = arith.constant 0 : index
    %47 = vector.load %arg9[%c120_65, %c0_66] : memref<216x768xf32, #tpu.memory_space<vmem>>, vector<8x768xf32>
    tpu.vector_store %arg9[%c120_65, %c0_66], %46 {strides = array<i32>} : memref<216x768xf32, #tpu.memory_space<vmem>>, vector<8x768xf32>,
    %c0_67 = arith.constant 0 : index
    %c0_68 = arith.constant 0 : index
    %c0_69 = arith.constant 0 : index
    %c121 = arith.constant 121 : index
    %48 = vector.load %arg2[%c0_67, %c0_68, %c0_69, %c121] : memref<1x1x8x1024xf32, #tpu.memory_space<vmem>>, vector<1x1x8x768xf32>
    %49 = vector.shape_cast %48 : vector<1x1x8x768xf32> to vector<8x768xf32>
    %c128 = arith.constant 128 : index
    %c0_70 = arith.constant 0 : index
    %50 = vector.load %arg9[%c128, %c0_70] : memref<216x768xf32, #tpu.memory_space<vmem>>, vector<8x768xf32>
    tpu.vector_store %arg9[%c128, %c0_70], %49 {strides = array<i32>} : memref<216x768xf32, #tpu.memory_space<vmem>>, vector<8x768xf32>,
    %c0_71 = arith.constant 0 : index
    %c0_72 = arith.constant 0 : index
    %c0_73 = arith.constant 0 : index
    %c122 = arith.constant 122 : index
    %51 = vector.load %arg2[%c0_71, %c0_72, %c0_73, %c122] : memref<1x1x8x1024xf32, #tpu.memory_space<vmem>>, vector<1x1x8x768xf32>
    %52 = vector.shape_cast %51 : vector<1x1x8x768xf32> to vector<8x768xf32>
    %c136 = arith.constant 136 : index
    %c0_74 = arith.constant 0 : index
    %53 = vector.load %arg9[%c136, %c0_74] : memref<216x768xf32, #tpu.memory_space<vmem>>, vector<8x768xf32>
    tpu.vector_store %arg9[%c136, %c0_74], %52 {strides = array<i32>} : memref<216x768xf32, #tpu.memory_space<vmem>>, vector<8x768xf32>,
    %c0_75 = arith.constant 0 : index
    %c0_76 = arith.constant 0 : index
    %c0_77 = arith.constant 0 : index
    %c200 = arith.constant 200 : index
    %54 = vector.load %arg2[%c0_75, %c0_76, %c0_77, %c200] : memref<1x1x8x1024xf32, #tpu.memory_space<vmem>>, vector<1x1x8x768xf32>
    %55 = vector.shape_cast %54 : vector<1x1x8x768xf32> to vector<8x768xf32>
    %c144 = arith.constant 144 : index
    %c0_78 = arith.constant 0 : index
    %56 = vector.load %arg9[%c144, %c0_78] : memref<216x768xf32, #tpu.memory_space<vmem>>, vector<8x768xf32>
    tpu.vector_store %arg9[%c144, %c0_78], %55 {strides = array<i32>} : memref<216x768xf32, #tpu.memory_space<vmem>>, vector<8x768xf32>,
    %c0_79 = arith.constant 0 : index
    %c0_80 = arith.constant 0 : index
    %c0_81 = arith.constant 0 : index
    %c201 = arith.constant 201 : index
    %57 = vector.load %arg2[%c0_79, %c0_80, %c0_81, %c201] : memref<1x1x8x1024xf32, #tpu.memory_space<vmem>>, vector<1x1x8x768xf32>
    %58 = vector.shape_cast %57 : vector<1x1x8x768xf32> to vector<8x768xf32>
    %c152 = arith.constant 152 : index
    %c0_82 = arith.constant 0 : index
    %59 = vector.load %arg9[%c152, %c0_82] : memref<216x768xf32, #tpu.memory_space<vmem>>, vector<8x768xf32>
    tpu.vector_store %arg9[%c152, %c0_82], %58 {strides = array<i32>} : memref<216x768xf32, #tpu.memory_space<vmem>>, vector<8x768xf32>,
    %c0_83 = arith.constant 0 : index
    %c0_84 = arith.constant 0 : index
    %c0_85 = arith.constant 0 : index
    %c202 = arith.constant 202 : index
    %60 = vector.load %arg2[%c0_83, %c0_84, %c0_85, %c202] : memref<1x1x8x1024xf32, #tpu.memory_space<vmem>>, vector<1x1x8x768xf32>
    %61 = vector.shape_cast %60 : vector<1x1x8x768xf32> to vector<8x768xf32>
    %c160 = arith.constant 160 : index
    %c0_86 = arith.constant 0 : index
    %62 = vector.load %arg9[%c160, %c0_86] : memref<216x768xf32, #tpu.memory_space<vmem>>, vector<8x768xf32>
    tpu.vector_store %arg9[%c160, %c0_86], %61 {strides = array<i32>} : memref<216x768xf32, #tpu.memory_space<vmem>>, vector<8x768xf32>,
    %c0_87 = arith.constant 0 : index
    %c0_88 = arith.constant 0 : index
    %c0_89 = arith.constant 0 : index
    %c210 = arith.constant 210 : index
    %63 = vector.load %arg2[%c0_87, %c0_88, %c0_89, %c210] : memref<1x1x8x1024xf32, #tpu.memory_space<vmem>>, vector<1x1x8x768xf32>
    %64 = vector.shape_cast %63 : vector<1x1x8x768xf32> to vector<8x768xf32>
    %c168 = arith.constant 168 : index
    %c0_90 = arith.constant 0 : index
    %65 = vector.load %arg9[%c168, %c0_90] : memref<216x768xf32, #tpu.memory_space<vmem>>, vector<8x768xf32>
    tpu.vector_store %arg9[%c168, %c0_90], %64 {strides = array<i32>} : memref<216x768xf32, #tpu.memory_space<vmem>>, vector<8x768xf32>,
    %c0_91 = arith.constant 0 : index
    %c0_92 = arith.constant 0 : index
    %c0_93 = arith.constant 0 : index
    %c211 = arith.constant 211 : index
    %66 = vector.load %arg2[%c0_91, %c0_92, %c0_93, %c211] : memref<1x1x8x1024xf32, #tpu.memory_space<vmem>>, vector<1x1x8x768xf32>
    %67 = vector.shape_cast %66 : vector<1x1x8x768xf32> to vector<8x768xf32>
    %c176 = arith.constant 176 : index
    %c0_94 = arith.constant 0 : index
    %68 = vector.load %arg9[%c176, %c0_94] : memref<216x768xf32, #tpu.memory_space<vmem>>, vector<8x768xf32>
    tpu.vector_store %arg9[%c176, %c0_94], %67 {strides = array<i32>} : memref<216x768xf32, #tpu.memory_space<vmem>>, vector<8x768xf32>,
    %c0_95 = arith.constant 0 : index
    %c0_96 = arith.constant 0 : index
    %c0_97 = arith.constant 0 : index
    %c212 = arith.constant 212 : index
    %69 = vector.load %arg2[%c0_95, %c0_96, %c0_97, %c212] : memref<1x1x8x1024xf32, #tpu.memory_space<vmem>>, vector<1x1x8x768xf32>
    %70 = vector.shape_cast %69 : vector<1x1x8x768xf32> to vector<8x768xf32>
    %c184 = arith.constant 184 : index
    %c0_98 = arith.constant 0 : index
    %71 = vector.load %arg9[%c184, %c0_98] : memref<216x768xf32, #tpu.memory_space<vmem>>, vector<8x768xf32>
    tpu.vector_store %arg9[%c184, %c0_98], %70 {strides = array<i32>} : memref<216x768xf32, #tpu.memory_space<vmem>>, vector<8x768xf32>,
    %c0_99 = arith.constant 0 : index
    %c0_100 = arith.constant 0 : index
    %c0_101 = arith.constant 0 : index
    %c220 = arith.constant 220 : index
    %72 = vector.load %arg2[%c0_99, %c0_100, %c0_101, %c220] : memref<1x1x8x1024xf32, #tpu.memory_space<vmem>>, vector<1x1x8x768xf32>
    %73 = vector.shape_cast %72 : vector<1x1x8x768xf32> to vector<8x768xf32>
    %c192 = arith.constant 192 : index
    %c0_102 = arith.constant 0 : index
    %74 = vector.load %arg9[%c192, %c0_102] : memref<216x768xf32, #tpu.memory_space<vmem>>, vector<8x768xf32>
    tpu.vector_store %arg9[%c192, %c0_102], %73 {strides = array<i32>} : memref<216x768xf32, #tpu.memory_space<vmem>>, vector<8x768xf32>,
    %c0_103 = arith.constant 0 : index
    %c0_104 = arith.constant 0 : index
    %c0_105 = arith.constant 0 : index
    %c221 = arith.constant 221 : index
    %75 = vector.load %arg2[%c0_103, %c0_104, %c0_105, %c221] : memref<1x1x8x1024xf32, #tpu.memory_space<vmem>>, vector<1x1x8x768xf32>
    %76 = vector.shape_cast %75 : vector<1x1x8x768xf32> to vector<8x768xf32>
    %c200_106 = arith.constant 200 : index
    %c0_107 = arith.constant 0 : index
    %77 = vector.load %arg9[%c200_106, %c0_107] : memref<216x768xf32, #tpu.memory_space<vmem>>, vector<8x768xf32>
    tpu.vector_store %arg9[%c200_106, %c0_107], %76 {strides = array<i32>} : memref<216x768xf32, #tpu.memory_space<vmem>>, vector<8x768xf32>,
    %c0_108 = arith.constant 0 : index
    %c0_109 = arith.constant 0 : index
    %c0_110 = arith.constant 0 : index
    %c222 = arith.constant 222 : index
    %78 = vector.load %arg2[%c0_108, %c0_109, %c0_110, %c222] : memref<1x1x8x1024xf32, #tpu.memory_space<vmem>>, vector<1x1x8x768xf32>
    %79 = vector.shape_cast %78 : vector<1x1x8x768xf32> to vector<8x768xf32>
    %c208 = arith.constant 208 : index
    %c0_111 = arith.constant 0 : index
    %80 = vector.load %arg9[%c208, %c0_111] : memref<216x768xf32, #tpu.memory_space<vmem>>, vector<8x768xf32>
    tpu.vector_store %arg9[%c208, %c0_111], %79 {strides = array<i32>} : memref<216x768xf32, #tpu.memory_space<vmem>>, vector<8x768xf32>,
    %c0_112 = arith.constant 0 : index
    %c0_113 = arith.constant 0 : index
    %81 = vector.load %arg4[%c0_112, %c0_113] : memref<8x216xf32, #tpu.memory_space<vmem>>, vector<8x216xf32>
    %c0_114 = arith.constant 0 : index
    %c0_115 = arith.constant 0 : index
    %82 = vector.load %arg9[%c0_114, %c0_115] : memref<216x768xf32, #tpu.memory_space<vmem>>, vector<216x768xf32>
    %cst = arith.constant dense<0.000000e+00> : vector<8x768xf32>
    %83 = tpu.matmul %81, %82, %cst {dimension_numbers = #tpu.dot_dimension_numbers<[1], [0], [0], [1], [0, 0, 1, 1], [], []>} : vector<8x216xf32>, vector<216x768xf32>, vector<8x768xf32> -> vector<8x768xf32>
    %c0_116 = arith.constant 0 : index
    %c0_117 = arith.constant 0 : index
    %84 = vector.load %arg5[%c0_116, %c0_117] : memref<8x1xf32, #tpu.memory_space<vmem>>, vector<8x1xf32>
    %85 = vector.broadcast %84 : vector<8x1xf32> to vector<8x768xf32>
    %86 = arith.addf %83, %85 : vector<8x768xf32>
    %cst_118 = arith.constant 0.000000e+00 : f32
    %87 = vector.broadcast %cst_118 : f32 to vector<8x768xf32>
    %88 = arith.maximumf %86, %87 : vector<8x768xf32>
    %c0_119 = arith.constant 0 : index
    %c0_120 = arith.constant 0 : index
    %c0_121 = arith.constant 0 : index
    %89 = vector.load %arg3[%c0_119, %c0_120, %c0_121] : memref<1x1x768xf32, #tpu.memory_space<vmem>>, vector<1x1x768xf32>
    %90 = vector.shape_cast %89 : vector<1x1x768xf32> to vector<1x768xf32>
    %91 = vector.broadcast %90 : vector<1x768xf32> to vector<8x768xf32>
    %92 = arith.mulf %88, %91 : vector<8x768xf32>
    %c0_122 = arith.constant 0 : index
    %c0_123 = arith.constant 0 : index
    %c0_124 = arith.constant 0 : index
    %c222_125 = arith.constant 222 : index
    %93 = vector.load %arg2[%c0_122, %c0_123, %c0_124, %c222_125] : memref<1x1x8x1024xf32, #tpu.memory_space<vmem>>, vector<1x1x8x512xf32>
    %94 = vector.shape_cast %93 : vector<1x1x8x512xf32> to vector<8x512xf32>
    %c0_126 = arith.constant 0 : index
    %c0_127 = arith.constant 0 : index
    %95 = vector.load %arg10[%c0_126, %c0_127] : memref<8x768xf32, #tpu.memory_space<vmem>>, vector<8x768xf32>
    tpu.vector_store %arg10[%c0_126, %c0_127], %92 {strides = array<i32>} : memref<8x768xf32, #tpu.memory_space<vmem>>, vector<8x768xf32>,
    %c0_128 = arith.constant 0 : index
    %c0_129 = arith.constant 0 : index
    %96 = vector.load %arg10[%c0_128, %c0_129] : memref<8x768xf32, #tpu.memory_space<vmem>>, vector<8x512xf32>
    %c0_130 = arith.constant 0 : index
    %c0_131 = arith.constant 0 : index
    %97 = vector.load %arg9[%c0_130, %c0_131] : memref<216x768xf32, #tpu.memory_space<vmem>>, vector<8x512xf32>
    tpu.vector_store %arg9[%c0_130, %c0_131], %96 {strides = array<i32>} : memref<216x768xf32, #tpu.memory_space<vmem>>, vector<8x512xf32>,
    %c0_132 = arith.constant 0 : index
    %c1_133 = arith.constant 1 : index
    %98 = vector.load %arg10[%c0_132, %c1_133] : memref<8x768xf32, #tpu.memory_space<vmem>>, vector<8x512xf32>
    %c8_134 = arith.constant 8 : index
    %c0_135 = arith.constant 0 : index
    %99 = vector.load %arg9[%c8_134, %c0_135] : memref<216x768xf32, #tpu.memory_space<vmem>>, vector<8x512xf32>
    tpu.vector_store %arg9[%c8_134, %c0_135], %98 {strides = array<i32>} : memref<216x768xf32, #tpu.memory_space<vmem>>, vector<8x512xf32>,
    %c0_136 = arith.constant 0 : index
    %c2_137 = arith.constant 2 : index
    %100 = vector.load %arg10[%c0_136, %c2_137] : memref<8x768xf32, #tpu.memory_space<vmem>>, vector<8x512xf32>
    %c16_138 = arith.constant 16 : index
    %c0_139 = arith.constant 0 : index
    %101 = vector.load %arg9[%c16_138, %c0_139] : memref<216x768xf32, #tpu.memory_space<vmem>>, vector<8x512xf32>
    tpu.vector_store %arg9[%c16_138, %c0_139], %100 {strides = array<i32>} : memref<216x768xf32, #tpu.memory_space<vmem>>, vector<8x512xf32>,
    %c0_140 = arith.constant 0 : index
    %c10_141 = arith.constant 10 : index
    %102 = vector.load %arg10[%c0_140, %c10_141] : memref<8x768xf32, #tpu.memory_space<vmem>>, vector<8x512xf32>
    %c24_142 = arith.constant 24 : index
    %c0_143 = arith.constant 0 : index
    %103 = vector.load %arg9[%c24_142, %c0_143] : memref<216x768xf32, #tpu.memory_space<vmem>>, vector<8x512xf32>
    tpu.vector_store %arg9[%c24_142, %c0_143], %102 {strides = array<i32>} : memref<216x768xf32, #tpu.memory_space<vmem>>, vector<8x512xf32>,
    %c0_144 = arith.constant 0 : index
    %c11_145 = arith.constant 11 : index
    %104 = vector.load %arg10[%c0_144, %c11_145] : memref<8x768xf32, #tpu.memory_space<vmem>>, vector<8x512xf32>
    %c32_146 = arith.constant 32 : index
    %c0_147 = arith.constant 0 : index
    %105 = vector.load %arg9[%c32_146, %c0_147] : memref<216x768xf32, #tpu.memory_space<vmem>>, vector<8x512xf32>
    tpu.vector_store %arg9[%c32_146, %c0_147], %104 {strides = array<i32>} : memref<216x768xf32, #tpu.memory_space<vmem>>, vector<8x512xf32>,
    %c0_148 = arith.constant 0 : index
    %c12_149 = arith.constant 12 : index
    %106 = vector.load %arg10[%c0_148, %c12_149] : memref<8x768xf32, #tpu.memory_space<vmem>>, vector<8x512xf32>
    %c40_150 = arith.constant 40 : index
    %c0_151 = arith.constant 0 : index
    %107 = vector.load %arg9[%c40_150, %c0_151] : memref<216x768xf32, #tpu.memory_space<vmem>>, vector<8x512xf32>
    tpu.vector_store %arg9[%c40_150, %c0_151], %106 {strides = array<i32>} : memref<216x768xf32, #tpu.memory_space<vmem>>, vector<8x512xf32>,
    %c0_152 = arith.constant 0 : index
    %c20_153 = arith.constant 20 : index
    %108 = vector.load %arg10[%c0_152, %c20_153] : memref<8x768xf32, #tpu.memory_space<vmem>>, vector<8x512xf32>
    %c48_154 = arith.constant 48 : index
    %c0_155 = arith.constant 0 : index
    %109 = vector.load %arg9[%c48_154, %c0_155] : memref<216x768xf32, #tpu.memory_space<vmem>>, vector<8x512xf32>
    tpu.vector_store %arg9[%c48_154, %c0_155], %108 {strides = array<i32>} : memref<216x768xf32, #tpu.memory_space<vmem>>, vector<8x512xf32>,
    %c0_156 = arith.constant 0 : index
    %c21_157 = arith.constant 21 : index
    %110 = vector.load %arg10[%c0_156, %c21_157] : memref<8x768xf32, #tpu.memory_space<vmem>>, vector<8x512xf32>
    %c56_158 = arith.constant 56 : index
    %c0_159 = arith.constant 0 : index
    %111 = vector.load %arg9[%c56_158, %c0_159] : memref<216x768xf32, #tpu.memory_space<vmem>>, vector<8x512xf32>
    tpu.vector_store %arg9[%c56_158, %c0_159], %110 {strides = array<i32>} : memref<216x768xf32, #tpu.memory_space<vmem>>, vector<8x512xf32>,
    %c0_160 = arith.constant 0 : index
    %c22_161 = arith.constant 22 : index
    %112 = vector.load %arg10[%c0_160, %c22_161] : memref<8x768xf32, #tpu.memory_space<vmem>>, vector<8x512xf32>
    %c64_162 = arith.constant 64 : index
    %c0_163 = arith.constant 0 : index
    %113 = vector.load %arg9[%c64_162, %c0_163] : memref<216x768xf32, #tpu.memory_space<vmem>>, vector<8x512xf32>
    tpu.vector_store %arg9[%c64_162, %c0_163], %112 {strides = array<i32>} : memref<216x768xf32, #tpu.memory_space<vmem>>, vector<8x512xf32>,
    %c0_164 = arith.constant 0 : index
    %c100_165 = arith.constant 100 : index
    %114 = vector.load %arg10[%c0_164, %c100_165] : memref<8x768xf32, #tpu.memory_space<vmem>>, vector<8x512xf32>
    %c72_166 = arith.constant 72 : index
    %c0_167 = arith.constant 0 : index
    %115 = vector.load %arg9[%c72_166, %c0_167] : memref<216x768xf32, #tpu.memory_space<vmem>>, vector<8x512xf32>
    tpu.vector_store %arg9[%c72_166, %c0_167], %114 {strides = array<i32>} : memref<216x768xf32, #tpu.memory_space<vmem>>, vector<8x512xf32>,
    %c0_168 = arith.constant 0 : index
    %c101_169 = arith.constant 101 : index
    %116 = vector.load %arg10[%c0_168, %c101_169] : memref<8x768xf32, #tpu.memory_space<vmem>>, vector<8x512xf32>
    %c80_170 = arith.constant 80 : index
    %c0_171 = arith.constant 0 : index
    %117 = vector.load %arg9[%c80_170, %c0_171] : memref<216x768xf32, #tpu.memory_space<vmem>>, vector<8x512xf32>
    tpu.vector_store %arg9[%c80_170, %c0_171], %116 {strides = array<i32>} : memref<216x768xf32, #tpu.memory_space<vmem>>, vector<8x512xf32>,
    %c0_172 = arith.constant 0 : index
    %c102_173 = arith.constant 102 : index
    %118 = vector.load %arg10[%c0_172, %c102_173] : memref<8x768xf32, #tpu.memory_space<vmem>>, vector<8x512xf32>
    %c88_174 = arith.constant 88 : index
    %c0_175 = arith.constant 0 : index
    %119 = vector.load %arg9[%c88_174, %c0_175] : memref<216x768xf32, #tpu.memory_space<vmem>>, vector<8x512xf32>
    tpu.vector_store %arg9[%c88_174, %c0_175], %118 {strides = array<i32>} : memref<216x768xf32, #tpu.memory_space<vmem>>, vector<8x512xf32>,
    %c0_176 = arith.constant 0 : index
    %c110_177 = arith.constant 110 : index
    %120 = vector.load %arg10[%c0_176, %c110_177] : memref<8x768xf32, #tpu.memory_space<vmem>>, vector<8x512xf32>
    %c96_178 = arith.constant 96 : index
    %c0_179 = arith.constant 0 : index
    %121 = vector.load %arg9[%c96_178, %c0_179] : memref<216x768xf32, #tpu.memory_space<vmem>>, vector<8x512xf32>
    tpu.vector_store %arg9[%c96_178, %c0_179], %120 {strides = array<i32>} : memref<216x768xf32, #tpu.memory_space<vmem>>, vector<8x512xf32>,
    %c0_180 = arith.constant 0 : index
    %c111_181 = arith.constant 111 : index
    %122 = vector.load %arg10[%c0_180, %c111_181] : memref<8x768xf32, #tpu.memory_space<vmem>>, vector<8x512xf32>
    %c104_182 = arith.constant 104 : index
    %c0_183 = arith.constant 0 : index
    %123 = vector.load %arg9[%c104_182, %c0_183] : memref<216x768xf32, #tpu.memory_space<vmem>>, vector<8x512xf32>
    tpu.vector_store %arg9[%c104_182, %c0_183], %122 {strides = array<i32>} : memref<216x768xf32, #tpu.memory_space<vmem>>, vector<8x512xf32>,
    %c0_184 = arith.constant 0 : index
    %c112_185 = arith.constant 112 : index
    %124 = vector.load %arg10[%c0_184, %c112_185] : memref<8x768xf32, #tpu.memory_space<vmem>>, vector<8x512xf32>
    %c112_186 = arith.constant 112 : index
    %c0_187 = arith.constant 0 : index
    %125 = vector.load %arg9[%c112_186, %c0_187] : memref<216x768xf32, #tpu.memory_space<vmem>>, vector<8x512xf32>
    tpu.vector_store %arg9[%c112_186, %c0_187], %124 {strides = array<i32>} : memref<216x768xf32, #tpu.memory_space<vmem>>, vector<8x512xf32>,
    %c0_188 = arith.constant 0 : index
    %c120_189 = arith.constant 120 : index
    %126 = vector.load %arg10[%c0_188, %c120_189] : memref<8x768xf32, #tpu.memory_space<vmem>>, vector<8x512xf32>
    %c120_190 = arith.constant 120 : index
    %c0_191 = arith.constant 0 : index
    %127 = vector.load %arg9[%c120_190, %c0_191] : memref<216x768xf32, #tpu.memory_space<vmem>>, vector<8x512xf32>
    tpu.vector_store %arg9[%c120_190, %c0_191], %126 {strides = array<i32>} : memref<216x768xf32, #tpu.memory_space<vmem>>, vector<8x512xf32>,
    %c0_192 = arith.constant 0 : index
    %c121_193 = arith.constant 121 : index
    %128 = vector.load %arg10[%c0_192, %c121_193] : memref<8x768xf32, #tpu.memory_space<vmem>>, vector<8x512xf32>
    %c128_194 = arith.constant 128 : index
    %c0_195 = arith.constant 0 : index
    %129 = vector.load %arg9[%c128_194, %c0_195] : memref<216x768xf32, #tpu.memory_space<vmem>>, vector<8x512xf32>
    tpu.vector_store %arg9[%c128_194, %c0_195], %128 {strides = array<i32>} : memref<216x768xf32, #tpu.memory_space<vmem>>, vector<8x512xf32>,
    %c0_196 = arith.constant 0 : index
    %c122_197 = arith.constant 122 : index
    %130 = vector.load %arg10[%c0_196, %c122_197] : memref<8x768xf32, #tpu.memory_space<vmem>>, vector<8x512xf32>
    %c136_198 = arith.constant 136 : index
    %c0_199 = arith.constant 0 : index
    %131 = vector.load %arg9[%c136_198, %c0_199] : memref<216x768xf32, #tpu.memory_space<vmem>>, vector<8x512xf32>
    tpu.vector_store %arg9[%c136_198, %c0_199], %130 {strides = array<i32>} : memref<216x768xf32, #tpu.memory_space<vmem>>, vector<8x512xf32>,
    %c0_200 = arith.constant 0 : index
    %c200_201 = arith.constant 200 : index
    %132 = vector.load %arg10[%c0_200, %c200_201] : memref<8x768xf32, #tpu.memory_space<vmem>>, vector<8x512xf32>
    %c144_202 = arith.constant 144 : index
    %c0_203 = arith.constant 0 : index
    %133 = vector.load %arg9[%c144_202, %c0_203] : memref<216x768xf32, #tpu.memory_space<vmem>>, vector<8x512xf32>
    tpu.vector_store %arg9[%c144_202, %c0_203], %132 {strides = array<i32>} : memref<216x768xf32, #tpu.memory_space<vmem>>, vector<8x512xf32>,
    %c0_204 = arith.constant 0 : index
    %c201_205 = arith.constant 201 : index
    %134 = vector.load %arg10[%c0_204, %c201_205] : memref<8x768xf32, #tpu.memory_space<vmem>>, vector<8x512xf32>
    %c152_206 = arith.constant 152 : index
    %c0_207 = arith.constant 0 : index
    %135 = vector.load %arg9[%c152_206, %c0_207] : memref<216x768xf32, #tpu.memory_space<vmem>>, vector<8x512xf32>
    tpu.vector_store %arg9[%c152_206, %c0_207], %134 {strides = array<i32>} : memref<216x768xf32, #tpu.memory_space<vmem>>, vector<8x512xf32>,
    %c0_208 = arith.constant 0 : index
    %c202_209 = arith.constant 202 : index
    %136 = vector.load %arg10[%c0_208, %c202_209] : memref<8x768xf32, #tpu.memory_space<vmem>>, vector<8x512xf32>
    %c160_210 = arith.constant 160 : index
    %c0_211 = arith.constant 0 : index
    %137 = vector.load %arg9[%c160_210, %c0_211] : memref<216x768xf32, #tpu.memory_space<vmem>>, vector<8x512xf32>
    tpu.vector_store %arg9[%c160_210, %c0_211], %136 {strides = array<i32>} : memref<216x768xf32, #tpu.memory_space<vmem>>, vector<8x512xf32>,
    %c0_212 = arith.constant 0 : index
    %c210_213 = arith.constant 210 : index
    %138 = vector.load %arg10[%c0_212, %c210_213] : memref<8x768xf32, #tpu.memory_space<vmem>>, vector<8x512xf32>
    %c168_214 = arith.constant 168 : index
    %c0_215 = arith.constant 0 : index
    %139 = vector.load %arg9[%c168_214, %c0_215] : memref<216x768xf32, #tpu.memory_space<vmem>>, vector<8x512xf32>
    tpu.vector_store %arg9[%c168_214, %c0_215], %138 {strides = array<i32>} : memref<216x768xf32, #tpu.memory_space<vmem>>, vector<8x512xf32>,
    %c0_216 = arith.constant 0 : index
    %c211_217 = arith.constant 211 : index
    %140 = vector.load %arg10[%c0_216, %c211_217] : memref<8x768xf32, #tpu.memory_space<vmem>>, vector<8x512xf32>
    %c176_218 = arith.constant 176 : index
    %c0_219 = arith.constant 0 : index
    %141 = vector.load %arg9[%c176_218, %c0_219] : memref<216x768xf32, #tpu.memory_space<vmem>>, vector<8x512xf32>
    tpu.vector_store %arg9[%c176_218, %c0_219], %140 {strides = array<i32>} : memref<216x768xf32, #tpu.memory_space<vmem>>, vector<8x512xf32>,
    %c0_220 = arith.constant 0 : index
    %c212_221 = arith.constant 212 : index
    %142 = vector.load %arg10[%c0_220, %c212_221] : memref<8x768xf32, #tpu.memory_space<vmem>>, vector<8x512xf32>
    %c184_222 = arith.constant 184 : index
    %c0_223 = arith.constant 0 : index
    %143 = vector.load %arg9[%c184_222, %c0_223] : memref<216x768xf32, #tpu.memory_space<vmem>>, vector<8x512xf32>
    tpu.vector_store %arg9[%c184_222, %c0_223], %142 {strides = array<i32>} : memref<216x768xf32, #tpu.memory_space<vmem>>, vector<8x512xf32>,
    %c0_224 = arith.constant 0 : index
    %c220_225 = arith.constant 220 : index
    %144 = vector.load %arg10[%c0_224, %c220_225] : memref<8x768xf32, #tpu.memory_space<vmem>>, vector<8x512xf32>
    %c192_226 = arith.constant 192 : index
    %c0_227 = arith.constant 0 : index
    %145 = vector.load %arg9[%c192_226, %c0_227] : memref<216x768xf32, #tpu.memory_space<vmem>>, vector<8x512xf32>
    tpu.vector_store %arg9[%c192_226, %c0_227], %144 {strides = array<i32>} : memref<216x768xf32, #tpu.memory_space<vmem>>, vector<8x512xf32>,
    %c0_228 = arith.constant 0 : index
    %c221_229 = arith.constant 221 : index
    %146 = vector.load %arg10[%c0_228, %c221_229] : memref<8x768xf32, #tpu.memory_space<vmem>>, vector<8x512xf32>
    %c200_230 = arith.constant 200 : index
    %c0_231 = arith.constant 0 : index
    %147 = vector.load %arg9[%c200_230, %c0_231] : memref<216x768xf32, #tpu.memory_space<vmem>>, vector<8x512xf32>
    tpu.vector_store %arg9[%c200_230, %c0_231], %146 {strides = array<i32>} : memref<216x768xf32, #tpu.memory_space<vmem>>, vector<8x512xf32>,
    %c0_232 = arith.constant 0 : index
    %c222_233 = arith.constant 222 : index
    %148 = vector.load %arg10[%c0_232, %c222_233] : memref<8x768xf32, #tpu.memory_space<vmem>>, vector<8x512xf32>
    %c208_234 = arith.constant 208 : index
    %c0_235 = arith.constant 0 : index
    %149 = vector.load %arg9[%c208_234, %c0_235] : memref<216x768xf32, #tpu.memory_space<vmem>>, vector<8x512xf32>
    tpu.vector_store %arg9[%c208_234, %c0_235], %148 {strides = array<i32>} : memref<216x768xf32, #tpu.memory_space<vmem>>, vector<8x512xf32>,
    %c0_236 = arith.constant 0 : index
    %c0_237 = arith.constant 0 : index
    %150 = vector.load %arg6[%c0_236, %c0_237] : memref<8x216xf32, #tpu.memory_space<vmem>>, vector<8x216xf32>
    %c0_238 = arith.constant 0 : index
    %c0_239 = arith.constant 0 : index
    %151 = vector.load %arg9[%c0_238, %c0_239] : memref<216x768xf32, #tpu.memory_space<vmem>>, vector<216x512xf32>
    %cst_240 = arith.constant dense<0.000000e+00> : vector<8x512xf32>
    %152 = tpu.matmul %150, %151, %cst_240 {dimension_numbers = #tpu.dot_dimension_numbers<[1], [0], [0], [1], [0, 0, 1, 1], [], []>} : vector<8x216xf32>, vector<216x512xf32>, vector<8x512xf32> -> vector<8x512xf32>
    %c0_241 = arith.constant 0 : index
    %c0_242 = arith.constant 0 : index
    %153 = vector.load %arg7[%c0_241, %c0_242] : memref<8x1xf32, #tpu.memory_space<vmem>>, vector<8x1xf32>
    %154 = vector.broadcast %153 : vector<8x1xf32> to vector<8x512xf32>
    %155 = arith.addf %152, %154 : vector<8x512xf32>
    %156 = arith.addf %155, %94 : vector<8x512xf32>
    %c0_243 = arith.constant 0 : index
    %c0_244 = arith.constant 0 : index
    %c0_245 = arith.constant 0 : index
    %157 = vector.load %arg8[%c0_243, %c0_244, %c0_245] : memref<1x8x512xf32, #tpu.memory_space<vmem>>, vector<1x8x512xf32>
    %158 = vector.shape_cast %157 : vector<1x8x512xf32> to vector<8x512xf32>
    %159 = vector.shape_cast %156 : vector<8x512xf32> to vector<1x8x512xf32>
    tpu.vector_store %arg8[%c0_243, %c0_244, %c0_245], %159 {strides = array<i32>} : memref<1x8x512xf32, #tpu.memory_space<vmem>>, vector<1x8x512xf32>,
    return
  }
  func.func @transform_0(%arg0: i32, %arg1: i32) -> (i32, i32, i32, i32) {
    %c0_i32 = arith.constant 0 : i32
    %c0_i32_0 = arith.constant 0 : i32
    %c0_i32_1 = arith.constant 0 : i32
    return %arg0, %arg1, %c0_i32, %c0_i32_0 : i32, i32, i32, i32
  }
  func.func @transform_1(%arg0: i32, %arg1: i32) -> (i32, i32, i32) {
    %c0_i32 = arith.constant 0 : i32
    %c0_i32_0 = arith.constant 0 : i32
    %c0_i32_1 = arith.constant 0 : i32
    return %arg1, %c0_i32, %c0_i32_0 : i32, i32, i32
  }
  func.func @transform_2(%arg0: i32, %arg1: i32) -> (i32, i32) {
    %c0_i32 = arith.constant 0 : i32
    %c0_i32_0 = arith.constant 0 : i32
    %c0_i32_1 = arith.constant 0 : i32
    return %c0_i32, %c0_i32_0 : i32, i32
  }
  func.func @transform_3(%arg0: i32, %arg1: i32) -> (i32, i32) {
    %c0_i32 = arith.constant 0 : i32
    %c0_i32_0 = arith.constant 0 : i32
    %c0_i32_1 = arith.constant 0 : i32
    return %c0_i32, %c0_i32_0 : i32, i32
  }
  func.func @transform_4(%arg0: i32, %arg1: i32) -> (i32, i32) {
    %c0_i32 = arith.constant 0 : i32
    %c0_i32_0 = arith.constant 0 : i32
    %c0_i32_1 = arith.constant 0 : i32
    return %c0_i32, %c0_i32_0 : i32, i32
  }
  func.func @transform_5(%arg0: i32, %arg1: i32) -> (i32, i32) {
    %c0_i32 = arith.constant 0 : i32
    %c0_i32_0 = arith.constant 0 : i32
    %c0_i32_1 = arith.constant 0 : i32
    return %c0_i32, %c0_i32_0 : i32, i32
  }
  func.func @transform_6(%arg0: i32, %arg1: i32) -> (i32, i32, i32) {
    %c0_i32 = arith.constant 0 : i32
    %c0_i32_0 = arith.constant 0 : i32
    return %arg0, %c0_i32, %arg1 : i32, i32, i32
  }
}

</mosaic_0001>

<bundles_post_ra>
// kernel: resblock_forward.1
= control target key start
LH: loop header
LB: loop body
LE: loop exit
PB: predicated region body
PF: predicated region fallthrough
CT: control target
= control target key end

     0   :  { %s4091_s21 = smov 0   ;;  %s4093_s22 = smov 0   ;;  %s6163_s0 = inlined_call_operand.vmem [shape: f32[2,2,8,1024], index: 0, kind: input, shape index: {}]   ;;  %s6164_s1 = inlined_call_operand.vmem [shape: f32[2,1,768], index: 1, kind: input, shape index: {}]   ;;  %s6165_s2 = inlined_call_operand.vmem [shape: f32[8,216], index: 2, kind: input, shape index: {}]   ;;  %s6166_s3 = inlined_call_operand.vmem [shape: f32[8,1], index: 3, kind: input, shape index: {}]   ;;  %s6167_s4 = inlined_call_operand.vmem [shape: f32[8,216], index: 4, kind: input, shape index: {}]   ;;  %s6168_s5 = inlined_call_operand.vmem [shape: f32[8,1], index: 5, kind: input, shape index: {}]   ;;  %s6169_s6 = inlined_call_operand.vmem [shape: f32[2,8,1024], index: 6, kind: output, shape index: {}]  }
   0x1   :  { %s4095_s23 = smov 0   ;;  %s4097_s24 = smov 0  }
   0x2   :  { %s4099_s25 = smov 0  }
   0x3 LB: > { %s25_s26 = sadd.s32 1, %s4019_s23  ;;  %s28_s27 = sadd.s32 1, %s4023_s24  ;;  %s4027_s25 = sphi %s4099_s25, %s16_s25   ;;  %s4023_s24 = sphi %s4097_s24, %s6707_s24   ;;  %s4019_s23 = sphi %s4095_s23, %s6706_s23   ;;  %s4015_s22 = sphi %s4093_s22, %s6705_s22   ;;  %s4011_s21 = sphi %s4091_s21, %s6704_s21  }
   0x4   : > { %p26_p0 = scmp.ge.s32.totalorder %s25_s26, 2  ;;  %p3250_p1 = scmp.ge.s32.totalorder %s4027_s25, 1 }
   0x5   : > { %p241_p2 = scmp.lt.s32.totalorder %s4027_s25, 5 }
   0x6   : > { %s6709_s26 = smov (%p26_p0, %s25_s26), 0  ;;  %s6711_s27 = smov (!%p26_p0, %s28_s27), %s4023_s24 }
   0x7   : > { %p242_p3 = pnand %p3250_p1, %p241_p2  ;;  %p30_p4 = scmp.ge.s32.totalorder %s6711_s27, 2 }
   0x9   : > { %s6713_s27 = smov (%p30_p4, %s6711_s27), 0  ;;  %245 = sbr.rel (%p242_p3) target bundleno = 1067 (0x42b), region = 44 }
   0xe   : > { %p283_p5 = scmp.lt.s32.totalorder %s4015_s22, 1  ;;  %p285_p6 = scmp.lt.s32.totalorder %s4011_s21, 1  ;;  %vm6303_vm0 = vcmask 1031168   ;;  %vm6237_vm1 = vcmask 1039360   ;;  %vm6317_vm2 = vcmask 949248   ;;  %vm6308_vm3 = vcmask 965632  }
   0xf   : > { %s4029_s12 = smov 127   ;;  %s4030_s13 = smov 126   ;;  %vm6315_vm4 = vcmask 957440   ;;  %vm675_vm5 = vcmask 867328   ;;  %vm6321_vm6 = vcmask 883712   ;;  %vm628_vm7 = vcmask 875520  }
  0x10   : > { %s6715_s22 = smov (!%p283_p5, %s4015_s22), 1  ;;  %s4031_s14 = smov 118   ;;  %vm6292_vm8 = vcmask 211968   ;;  %vm722_vm9 = vcmask 228352   ;;  %vm769_vm10 = vcmask 220160   ;;  %vm6242_vm11 = vcmask 138240  }
  0x11   : > { %s4127_s28 = scalar_select %p285_p6, %s4011_s21, 1  ;;  %vm6239_vm12 = vcmask 130048   ;;  %vm6249_vm13 = vcmask 64512   ;;  %vm6246_vm14 = vcmask 146432   ;;  %vm6322_vm15 = vcmask 56320  }
  0x12   : > { %s3252_s29 = sshll.u32 %s6715_s22, 4  ;;  %s4032_s15 = smov 117  }
  0x13   : > { %s3251_s30 = sshll.u32 %s4127_s28, 3  ;;  %s4033_s16 = smov 116  }
  0x14   : > { %s289_s7 = sadd.s32 %s3252_s29, %s3251_s30  ;;  %s4034_s17 = smov 108  }
  0x15   : > { %s3253_s8 = sshll.u32 %s289_s7, 3  ;;  %s4035_s18 = smov 107  }
  0x16   : > { %s4134_s11 = scalar_lea.vmem %s6163_s0, %s3253_s8  ;;  %s4036_s19 = smov 106  }
  0x17   : > { %v4137_v0 = vld [vmem:[%s4134_s11 + $0x20] sm:$0xff]  ;;  %v4140_v1 = vld [vmem:[%s4134_s11 + $0x28] sm:$0xff]  ;;  %v4160_v6 = vld [vmem:[%s4134_s11 + $0x10] sm:$0xff]  ;;  %s4037_s20 = smov 28   ;;  %s4038_s29 = smov 27  }
  0x18   : > { %v318_v2 = vld [vmem:[%s4134_s11] sm:$0xff]  ;;  %v4145_v3 = vpack.i.bf16 %v4140_v1, %v4137_v0  ;;  %v4148_v4 = vld [vmem:[%s4134_s11 + $0x8] sm:$0xff]  ;;  %v4163_v7 = vld [vmem:[%s4134_s11 + $0x18] sm:$0xff]  ;;  %s4039_s30 = smov 26   ;;  %s6327_s7 = smov 18  }
  0x19   : > { %v4151_v5 = vpack.i.bf16 %v4148_v4, %v318_v2  ;;  %v4166_v8 = vld [vmem:[%s4134_s11 + $0x30] sm:$0xff]  ;;  %v4170_v9 = vpack.i.bf16 %v4163_v7, %v4160_v6  ;;  %s6325_s8 = smov 17   ;;  %s6170_s9 = smov 16   ;;  %v4417_v58 = vpack.i.bf16 %v4160_v6, %v4148_v4 }
  0x1a   : > { %3348 = vrot.lane.b32.xlu1 %v4145_v3, %s4029_s12  ;;  %s6172_s10 = smov 8   ;;  %v4435_v2 = vpack.i.bf16 %v4166_v8, %v4140_v1 }
  0x1b   : > { %3338 = vrot.lane.b32.xlu0 %v4151_v5, %s4029_s12  ;;  %3353 = vrot.lane.b32.xlu2 %v4151_v5, %s4030_s13 }
  0x22   : > { %344 = vrot.lane.b32.xlu1 %v4166_v8, %s4029_s12 }
  0x23   : > { %3343 = vrot.lane.b32.xlu0 %v4170_v9, %s4029_s12  ;;  %3358 = vrot.lane.b32.xlu2 %v4170_v9, %s4030_s13 }
  0x2a   : > { %391 = vrot.lane.b32.xlu1 %v4166_v8, %s4030_s13 }
  0x2b   : > { %3363 = vrot.lane.b32.xlu0 %v4145_v3, %s4030_s13  ;;  %3368 = vrot.lane.b32.xlu2 %v4151_v5, %s4031_s14 }
  0x32   : > { %3378 = vrot.lane.b32.xlu1 %v4145_v3, %s4031_s14 }
  0x33   : > { %3373 = vrot.lane.b32.xlu0 %v4170_v9, %s4031_s14  ;;  %438 = vrot.lane.b32.xlu2 %v4166_v8, %s4031_s14 }
  0x3a   : > { %3388 = vrot.lane.b32.xlu1 %v4170_v9, %s4032_s15 }
  0x3b   : > { %3383 = vrot.lane.b32.xlu0 %v4151_v5, %s4032_s15  ;;  %3393 = vrot.lane.b32.xlu2 %v4145_v3, %s4032_s15 }
  0x42   : > { %3398 = vrot.lane.b32.xlu1 %v4151_v5, %s4033_s16 }
  0x43   : > { %485 = vrot.lane.b32.xlu0 %v4166_v8, %s4032_s15  ;;  %3403 = vrot.lane.b32.xlu2 %v4170_v9, %s4033_s16 }
  0x4a   : > { %532 = vrot.lane.b32.xlu1 %v4166_v8, %s4033_s16 }
  0x4b   : > { %3408 = vrot.lane.b32.xlu0 %v4145_v3, %s4033_s16  ;;  %3413 = vrot.lane.b32.xlu2 %v4151_v5, %s4034_s17 }
  0x52   : > { %3423 = vrot.lane.b32.xlu1 %v4145_v3, %s4034_s17 }
  0x53   : > { %3418 = vrot.lane.b32.xlu0 %v4170_v9, %s4034_s17  ;;  %579 = vrot.lane.b32.xlu2 %v4166_v8, %s4034_s17 }
  0x5a   : > { %3433 = vrot.lane.b32.xlu1 %v4170_v9, %s4035_s18 }
  0x5b   : > { %3428 = vrot.lane.b32.xlu0 %v4151_v5, %s4035_s18  ;;  %3438 = vrot.lane.b32.xlu2 %v4145_v3, %s4035_s18 }
  0x62   : > { %3443 = vrot.lane.b32.xlu1 %v4151_v5, %s4036_s19 }
  0x63   : > { %626 = vrot.lane.b32.xlu0 %v4166_v8, %s4035_s18  ;;  %3448 = vrot.lane.b32.xlu2 %v4170_v9, %s4036_s19 }
  0x6a   : > { %673 = vrot.lane.b32.xlu1 %v4166_v8, %s4036_s19 }
  0x6b   : > { %3453 = vrot.lane.b32.xlu0 %v4145_v3, %s4036_s19  ;;  %3458 = vrot.lane.b32.xlu2 %v4151_v5, %s4037_s20 }
  0x72   : > { %3468 = vrot.lane.b32.xlu1 %v4145_v3, %s4037_s20 }
  0x73   : > { %3463 = vrot.lane.b32.xlu0 %v4170_v9, %s4037_s20  ;;  %720 = vrot.lane.b32.xlu2 %v4166_v8, %s4037_s20 }
  0x75   : > { %v4238_v10 = vpop.permute.xlu2 %3353 }
  0x7a   : > { %3478 = vrot.lane.b32.xlu1 %v4170_v9, %s4038_s29 }
  0x7b   : > { %3473 = vrot.lane.b32.xlu0 %v4151_v5, %s4038_s29  ;;  %3483 = vrot.lane.b32.xlu2 %v4145_v3, %s4038_s29 }
  0x7d   : > { %v4246_v11 = vpop.permute.xlu2 %3358 }
  0x7e   : > { %v6179_v12 = vunpack.i.h.bf16 %v4246_v11  ;;  %v6191_v13 = vunpack.i.l.bf16 %v4246_v11 }
  0x80   : > { %v4255_v14 = vsel %vm6303_vm0, %v6191_v13, %v6179_v12 }
  0x81   : > { %6346 = vst [vmem:[#allocation4_spill] sm:$0xff] %v4255_v14 }
  0x82   : > { %3488 = vrot.lane.b32.xlu1 %v4151_v5, %s4039_s30 }
  0x83   : > { %767 = vrot.lane.b32.xlu0 %v4166_v8, %s4038_s29  ;;  %3493 = vrot.lane.b32.xlu2 %v4170_v9, %s4039_s30 }
  0x85   : > { %v4263_v15 = vpop.permute.xlu2 %3368 }
  0x8a   : > { %814 = vrot.lane.b32.xlu1 %v4166_v8, %s4039_s30 }
  0x8b   : > { %3498 = vrot.lane.b32.xlu0 %v4145_v3, %s4039_s30  ;;  %3503 = vrot.lane.b32.xlu2 %v4151_v5, %s6327_s7 }
  0x8c   : > { %v4271_v16 = vpop.permute.xlu1 %3348 }
  0x8d   : > { %6347 = vst [vmem:[#allocation5_spill] sm:$0xff] %v4271_v16  ;;  %v4273_v17 = vpop.permute.xlu0 %3338  ;;  %v4275_v18 = vpop.permute.xlu2 %438 }
  0x8e   : > { %6348 = vst [vmem:[#allocation6_spill] sm:$0xff] %v4275_v18 }
  0x92   : > { %3513 = vrot.lane.b32.xlu1 %v4145_v3, %s6327_s7 }
  0x93   : > { %3508 = vrot.lane.b32.xlu0 %v4170_v9, %s6327_s7  ;;  %861 = vrot.lane.b32.xlu2 %v4166_v8, %s6327_s7 }
  0x94   : > { %v4283_v19 = vpop.permute.xlu1 %344 }
  0x95   : > { %6349 = vst [vmem:[#allocation7_spill] sm:$0xff] %v4283_v19  ;;  %v4285_v20 = vpop.permute.xlu0 %3343  ;;  %v4287_v21 = vpop.permute.xlu2 %3393 }
  0x96   : > { %6350 = vst [vmem:[#allocation8_spill] sm:$0xff] %v4287_v21  ;;  %v6178_v22 = vunpack.i.h.bf16 %v4285_v20  ;;  %v6187_v23 = vunpack.i.l.bf16 %v4285_v20 }
  0x98   : > { %v4296_v24 = vsel %vm6237_vm1, %v6187_v23, %v6178_v22 }
  0x99   : > { %6351 = vst [vmem:[#allocation9_spill] sm:$0xff] %v4296_v24 }
  0x9a   : > { %3523 = vrot.lane.b32.xlu1 %v4170_v9, %s6325_s8 }
  0x9b   : > { %3518 = vrot.lane.b32.xlu0 %v4151_v5, %s6325_s8  ;;  %3528 = vrot.lane.b32.xlu2 %v4145_v3, %s6325_s8 }
  0x9c   : > { %v4304_v25 = vpop.permute.xlu1 %391 }
  0x9d   : > { %6352 = vst [vmem:[#allocation10_spill] sm:$0xff] %v4304_v25  ;;  %v4306_v26 = vpop.permute.xlu0 %3363  ;;  %v4308_v27 = vpop.permute.xlu2 %3403 }
  0x9e   : > { %6353 = vst [vmem:[#allocation11_spill] sm:$0xff] %v4306_v26  ;;  %v6184_v28 = vunpack.i.h.bf16 %v4308_v27  ;;  %v6196_v29 = vunpack.i.l.bf16 %v4308_v27 }
  0xa0   : > { %v4317_v30 = vsel %vm6317_vm2, %v6196_v29, %v6184_v28 }
  0xa1   : > { %6354 = vst [vmem:[#allocation12_spill] sm:$0xff] %v4317_v30 }
  0xa2   : > { %3533 = vrot.lane.b32.xlu1 %v4151_v5, %s6170_s9 }
  0xa3   : > { %908 = vrot.lane.b32.xlu0 %v4166_v8, %s6325_s8  ;;  %3538 = vrot.lane.b32.xlu2 %v4170_v9, %s6170_s9  ;;  %s6626_s8 = smov 6  }
  0xa4   : > { %v4325_v31 = vpop.permute.xlu1 %3378 }
  0xa5   : > { %6355 = vst [vmem:[#allocation13_spill] sm:$0xff] %v4325_v31  ;;  %v4327_v32 = vpop.permute.xlu0 %3373  ;;  %v4329_v33 = vpop.permute.xlu2 %3413 }
  0xa6   : > { %v6180_v34 = vunpack.i.h.bf16 %v4327_v32  ;;  %v6192_v35 = vunpack.i.l.bf16 %v4327_v32 }
  0xa8   : > { %v4338_v36 = vsel %vm6308_vm3, %v6192_v35, %v6180_v34 }
  0xa9   : > { %6356 = vst [vmem:[#allocation14_spill] sm:$0xff] %v4338_v36 }
  0xaa   : > { %955 = vrot.lane.b32.xlu1 %v4166_v8, %s6170_s9 }
  0xab   : > { %3543 = vrot.lane.b32.xlu0 %v4145_v3, %s6170_s9  ;;  %3548 = vrot.lane.b32.xlu2 %v4151_v5, %s6172_s10  ;;  %s6174_s9 = smov 7  }
  0xac   : > { %v4346_v37 = vpop.permute.xlu1 %3388 }
  0xad   : > { %v6183_v38 = vunpack.i.h.bf16 %v4346_v37  ;;  %v6193_v39 = vunpack.i.l.bf16 %v4346_v37  ;;  %v4350_v40 = vpop.permute.xlu0 %3383  ;;  %v4352_v41 = vpop.permute.xlu2 %579 }
  0xae   : > { %6357 = vst [vmem:[#allocation15_spill] sm:$0xff] %v4352_v41 }
  0xaf   : > { %v4359_v42 = vsel %vm6315_vm4, %v6193_v39, %v6183_v38 }
  0xb0   : > { %6358 = vst [vmem:[#allocation16_spill] sm:$0xff] %v4359_v42 }
  0xb2   : > { %3558 = vrot.lane.b32.xlu1 %v4145_v3, %s6172_s10 }
  0xb3   : > { %3553 = vrot.lane.b32.xlu0 %v4170_v9, %s6172_s10  ;;  %1002 = vrot.lane.b32.xlu2 %v4166_v8, %s6172_s10  ;;  %s6176_s10 = smov 6  }
  0xb4   : > { %v4367_v43 = vpop.permute.xlu1 %3398 }
  0xb5   : > { %v4369_v44 = vpop.permute.xlu0 %485  ;;  %v4371_v45 = vpop.permute.xlu2 %3438 }
  0xb6   : > { %6359 = vst [vmem:[#allocation17_spill] sm:$0xff] %v4369_v44 }
  0xb7   : > { %6360 = vst [vmem:[#allocation18_spill] sm:$0xff] %v4371_v45 }
  0xba   : > { %3568 = vrot.lane.b32.xlu1 %v4170_v9, %s6174_s9 }
  0xbb   : > { %3563 = vrot.lane.b32.xlu0 %v4151_v5, %s6174_s9  ;;  %3573 = vrot.lane.b32.xlu2 %v4145_v3, %s6174_s9 }
  0xbc   : > { %v4379_v46 = vpop.permute.xlu1 %532 }
  0xbd   : > { %6361 = vst [vmem:[#allocation19_spill] sm:$0xff] %v4379_v46  ;;  %v4381_v47 = vpop.permute.xlu0 %3408  ;;  %v4383_v48 = vpop.permute.xlu2 %3448 }
  0xbe   : > { %6362 = vst [vmem:[#allocation20_spill] sm:$0xff] %v4381_v47  ;;  %v6188_v49 = vunpack.i.h.bf16 %v4383_v48  ;;  %v6199_v50 = vunpack.i.l.bf16 %v4383_v48 }
  0xc0   : > { %v4392_v51 = vsel %vm675_vm5, %v6199_v50, %v6188_v49 }
  0xc1   : > { %6363 = vst [vmem:[#allocation21_spill] sm:$0xff] %v4392_v51 }
  0xc2   : > { %3578 = vrot.lane.b32.xlu1 %v4151_v5, %s6176_s10  ;;  %v4451_v5 = vld [vmem:[%s4134_s11 + $0x38] sm:$0xff] }
  0xc3   : > { %1049 = vrot.lane.b32.xlu0 %v4166_v8, %s6174_s9  ;;  %3583 = vrot.lane.b32.xlu2 %v4170_v9, %s6176_s10  ;;  %s6181_s9 = smov 56  }
  0xc4   : > { %v4400_v52 = vpop.permute.xlu1 %3423 }
  0xc5   : > { %6364 = vst [vmem:[#allocation22_spill] sm:$0xff] %v4400_v52  ;;  %v4402_v53 = vpop.permute.xlu0 %3418  ;;  %v4404_v54 = vpop.permute.xlu2 %3458 }
  0xc6   : > { %v6185_v55 = vunpack.i.h.bf16 %v4402_v53  ;;  %v6197_v56 = vunpack.i.l.bf16 %v4402_v53 }
  0xc8   : > { %v4413_v57 = vsel %vm6321_vm6, %v6197_v56, %v6185_v55 }
  0xc9   : > { %6365 = vst [vmem:[#allocation23_spill] sm:$0xff] %v4413_v57 }
  0xca   : > { %1096 = vrot.lane.b32.xlu1 %v4166_v8, %s6176_s10 }
  0xcb   : > { %3588 = vrot.lane.b32.xlu0 %v4145_v3, %s6176_s10  ;;  %3593 = vrot.lane.b32.xlu2 %v4417_v58, %s6181_s9  ;;  %v4439_v3 = vpack.i.bf16 %v4137_v0, %v4163_v7  ;;  %s6189_s10 = smov 55  }
  0xcc   : > { %v4425_v59 = vpop.permute.xlu1 %3433 }
  0xcd   : > { %v6186_v60 = vunpack.i.h.bf16 %v4425_v59  ;;  %v6198_v61 = vunpack.i.l.bf16 %v4425_v59  ;;  %v4429_v62 = vpop.permute.xlu0 %3428  ;;  %v4431_v63 = vpop.permute.xlu2 %720 }
  0xce   : > { %6366 = vst [vmem:[#allocation24_spill] sm:$0xff] %v4431_v63  ;;  %v3430_v26 = vunpack.i.l.bf16 %v4429_v62 }
  0xcf   : > { %v4446_v4 = vsel %vm628_vm7, %v6198_v61, %v6186_v60 }
  0xd0   : > { %6367 = vst [vmem:[#allocation25_spill] sm:$0xff] %v4446_v4  ;;  %v1498_v4 = vld [vmem:[%s4134_s11 + $0x30] sm:$0xff] }
  0xd2   : > { %3603 = vrot.lane.b32.xlu1 %v4435_v2, %s6181_s9 }
  0xd3   : > { %3598 = vrot.lane.b32.xlu0 %v4439_v3, %s6181_s9  ;;  %1143 = vrot.lane.b32.xlu2 %v4451_v5, %s6181_s9  ;;  %s6203_s9 = smov 54  }
  0xd4   : > { %v4457_v0 = vpop.permute.xlu1 %3443 }
  0xd5   : > { %v4459_v1 = vpop.permute.xlu0 %626  ;;  %v4461_v6 = vpop.permute.xlu2 %3483 }
  0xd6   : > { %6368 = vst [vmem:[#allocation26_spill] sm:$0xff] %v4459_v1 }
  0xda   : > { %3613 = vrot.lane.b32.xlu1 %v4439_v3, %s6189_s10 }
  0xdb   : > { %3608 = vrot.lane.b32.xlu0 %v4417_v58, %s6189_s10  ;;  %3618 = vrot.lane.b32.xlu2 %v4435_v2, %s6189_s10 }
  0xdc   : > { %v4469_v7 = vpop.permute.xlu1 %673 }
  0xdd   : > { %6369 = vst [vmem:[#allocation27_spill] sm:$0xff] %v4469_v7  ;;  %v4471_v8 = vpop.permute.xlu0 %3453  ;;  %v4473_v9 = vpop.permute.xlu2 %3493 }
  0xde   : > { %6370 = vst [vmem:[#allocation28_spill] sm:$0xff] %v4471_v8  ;;  %v6194_v22 = vunpack.i.h.bf16 %v4473_v9  ;;  %v6205_v12 = vunpack.i.l.bf16 %v4473_v9 }
  0xe0   : > { %v4482_v34 = vsel %vm6292_vm8, %v6205_v12, %v6194_v22 }
  0xe1   : > { %6371 = vst [vmem:[#allocation29_spill] sm:$0xff] %v4482_v34 }
  0xe2   : > { %3623 = vrot.lane.b32.xlu1 %v4417_v58, %s6203_s9 }
  0xe3   : > { %1190 = vrot.lane.b32.xlu0 %v4451_v5, %s6189_s10  ;;  %3628 = vrot.lane.b32.xlu2 %v4439_v3, %s6203_s9  ;;  %s6208_s10 = smov 46  }
  0xe4   : > { %v4490_v38 = vpop.permute.xlu1 %3468 }
  0xe5   : > { %v4492_v28 = vpop.permute.xlu0 %3463  ;;  %v4494_v55 = vpop.permute.xlu2 %3503 }
  0xe6   : > { %v6195_v60 = vunpack.i.h.bf16 %v4492_v28  ;;  %v6200_v23 = vunpack.i.l.bf16 %v4492_v28 }
  0xe8   : > { %v4503_v49 = vsel %vm722_vm9, %v6200_v23, %v6195_v60 }
  0xe9   : > { %6372 = vst [vmem:[#allocation30_spill] sm:$0xff] %v4503_v49  ;;  %v6222_v49 = vunpack.i.h.bf16 %v4494_v55 }
  0xea   : > { %1237 = vrot.lane.b32.xlu1 %v4451_v5, %s6203_s9 }
  0xeb   : > { %3633 = vrot.lane.b32.xlu0 %v4435_v2, %s6203_s9  ;;  %3638 = vrot.lane.b32.xlu2 %v4417_v58, %s6208_s10  ;;  %s6213_s9 = smov 45  }
  0xec   : > { %v4511_v13 = vpop.permute.xlu1 %3478 }
  0xed   : > { %v6201_v35 = vunpack.i.h.bf16 %v4511_v13  ;;  %v6202_v39 = vunpack.i.l.bf16 %v4511_v13  ;;  %v4515_v22 = vpop.permute.xlu0 %3473  ;;  %v862_v60 = vpop.permute.xlu2 %861 }
  0xef   : > { %v4522_v29 = vsel %vm769_vm10, %v6202_v39, %v6201_v35 }
  0xf0   : > { %6373 = vst [vmem:[#allocation31_spill] sm:$0xff] %v4522_v29 }
  0xf2   : > { %3648 = vrot.lane.b32.xlu1 %v4435_v2, %s6208_s10 }
  0xf3   : > { %3643 = vrot.lane.b32.xlu0 %v4439_v3, %s6208_s10  ;;  %1284 = vrot.lane.b32.xlu2 %v4451_v5, %s6208_s10  ;;  %s6229_s10 = smov 44  }
  0xf4   : > { %v4530_v56 = vpop.permute.xlu1 %3488 }
  0xf5   : > { %v4532_v61 = vpop.permute.xlu0 %767  ;;  %v4534_v50 = vpop.permute.xlu2 %3528  ;;  %v3490_v34 = vunpack.i.l.bf16 %v4530_v56 }
  0xf6   : > { %6374 = vst [vmem:[#allocation32_spill] sm:$0xff] %v4532_v61  ;;  %v6207_v23 = vunpack.i.h.bf16 %v4534_v50  ;;  %v6206_v35 = vunpack.i.l.bf16 %v4534_v50 }
  0xf8   : > { %v4543_v39 = vsel %vm6242_vm11, %v6206_v35, %v6207_v23 }
  0xf9   : > { %6375 = vst [vmem:[#allocation33_spill] sm:$0xff] %v4543_v39 }
  0xfa   : > { %3658 = vrot.lane.b32.xlu1 %v4439_v3, %s6213_s9 }
  0xfb   : > { %3653 = vrot.lane.b32.xlu0 %v4417_v58, %s6213_s9  ;;  %3663 = vrot.lane.b32.xlu2 %v4435_v2, %s6213_s9 }
  0xfc   : > { %v815_v12 = vpop.permute.xlu1 %814 }
  0xfd   : > { %v4551_v19 = vpop.permute.xlu0 %3498  ;;  %v4553_v25 = vpop.permute.xlu2 %3538 }
  0xfe   : > { %v3501_v35 = vunpack.i.h.bf16 %v4551_v19  ;;  %v6212_v23 = vunpack.i.l.bf16 %v4551_v19  ;;  %v6210_v18 = vunpack.i.h.bf16 %v4553_v25  ;;  %v6211_v44 = vunpack.i.l.bf16 %v4553_v25 }
 0x100   : > { %v4564_v46 = vsel %vm6239_vm12, %v6211_v44, %v6210_v18  ;;  %v4567_v24 = vsel %vm6292_vm8, %v3501_v35, %v815_v12  ;;  %v4572_v41 = vsel %vm6292_vm8, %v6212_v23, %v3501_v35  ;;  %v4583_v44 = vld [vmem:[%s4134_s11 + $0x8] sm:$0xff]  ;;  %v4586_v12 = vld [vmem:[%s4134_s11 + $0x10] sm:$0xff] }
 0x101   : > { %6376 = vst [vmem:[#allocation34_spill] sm:$0xff] %v4564_v46  ;;  %v3682_v42 = vpack.i.bf16 %v4586_v12, %v4583_v44 }
 0x102   : > { %6377 = vst [vmem:[#allocation35_spill] sm:$0xff] %v4567_v24  ;;  %3668 = vrot.lane.b32.xlu1 %v4417_v58, %s6229_s10 }
 0x103   : > { %6378 = vst [vmem:[#allocation36_spill] sm:$0xff] %v4572_v41  ;;  %1331 = vrot.lane.b32.xlu0 %v4451_v5, %s6213_s9  ;;  %3673 = vrot.lane.b32.xlu2 %v4439_v3, %s6229_s10  ;;  %s6219_s9 = smov 36  }
 0x104   : > { %v4580_v18 = vpop.permute.xlu1 %3513  ;;  %6379 = vst [vmem:[#allocation37_spill] sm:$0xff] %v4586_v12 }
 0x105   : > { %v3516_v14 = vunpack.i.h.bf16 %v4580_v18  ;;  %v6215_v35 = vunpack.i.l.bf16 %v4580_v18  ;;  %v4590_v23 = vpop.permute.xlu0 %3508  ;;  %v4592_v41 = vpop.permute.xlu2 %3548 }
 0x106   : > { %v6216_v36 = vunpack.i.h.bf16 %v4592_v41  ;;  %v3550_v7 = vunpack.i.l.bf16 %v4592_v41  ;;  %v6382_v1 = vunpack.i.h.bf16 %v4590_v23  ;;  %v6383_v61 = vunpack.i.l.bf16 %v4590_v23 }
 0x107   : > { %v4601_v63 = vsel %vm6246_vm14, %v3516_v14, %v862_v60  ;;  %v4606_v30 = vsel %vm6246_vm14, %v6215_v35, %v3516_v14  ;;  %v3505_v35 = vunpack.i.l.bf16 %v4494_v55 }
 0x108   : > { %6380 = vst [vmem:[#allocation38_spill] sm:$0xff] %v4601_v63  ;;  %v1005_v39 = vsel %vm6249_vm13, %v3550_v7, %v6216_v36  ;;  %v4616_v57 = vsel %vm6246_vm14, %v6383_v61, %v6382_v1  ;;  %v6388_v63 = vunpack.i.h.bf16 %v4534_v50 }
 0x109   : > { %6381 = vst [vmem:[#allocation39_spill] sm:$0xff] %v4606_v30  ;;  %1714 = vmatpush.msra.mxu0 %v1005_v39 }
 0x10a   : > { %6384 = vst [vmem:[#allocation40_spill] sm:$0xff] %v4616_v57  ;;  %1378 = vrot.lane.b32.xlu1 %v4451_v5, %s6229_s10 }
 0x10b   : > { %3678 = vrot.lane.b32.xlu0 %v4435_v2, %s6229_s10  ;;  %3683 = vrot.lane.b32.xlu2 %v3682_v42, %s6219_s9  ;;  %s6274_s10 = smov 34  }
 0x10c   : > { %v4623_v14 = vpop.permute.xlu1 %3523 }
 0x10d   : > { %v6217_v60 = vunpack.i.h.bf16 %v4623_v14  ;;  %v6218_v7 = vunpack.i.l.bf16 %v4623_v14  ;;  %v4627_v61 = vpop.permute.xlu0 %3518  ;;  %v4629_v39 = vpop.permute.xlu2 %1002 }
 0x10e   : > { %v3520_v36 = vunpack.i.l.bf16 %v4627_v61  ;;  %v6390_v57 = vunpack.i.h.bf16 %v4627_v61 }
 0x10f   : > { %v4636_v1 = vsel %vm6242_vm11, %v6218_v7, %v6217_v60 }
 0x110   : > { %6385 = vst [vmem:[#allocation41_spill] sm:$0xff] %v4636_v1  ;;  %v911_v1 = vsel %vm6242_vm11, %v3520_v36, %v6390_v57  ;;  %v864_v36 = vsel %vm6246_vm14, %v3505_v35, %v6222_v49 }
 0x112   : > { %3693 = vrot.lane.b32.xlu1 %v4435_v2, %s6219_s9  ;;  %v4653_v2 = vld [vmem:[%s4134_s11 + $0x28] sm:$0xff] }
 0x113   : > { %3688 = vrot.lane.b32.xlu0 %v4439_v3, %s6219_s9  ;;  %1425 = vrot.lane.b32.xlu2 %v4451_v5, %s6219_s9  ;;  %6387 = vst [vmem:[#allocation43_spill] sm:$0xff] %v4653_v2  ;;  %s6272_s9 = smov 35  }
 0x114   : > { %v4644_v42 = vpop.permute.xlu1 %3533 }
 0x115   : > { %v6221_v30 = vunpack.i.h.bf16 %v4644_v42  ;;  %v3535_v60 = vunpack.i.l.bf16 %v4644_v42  ;;  %v909_v7 = vpop.permute.xlu0 %908  ;;  %v4650_v24 = vpop.permute.xlu2 %3573 }
 0x116   : > { %6386 = vst [vmem:[#allocation42_spill] sm:$0xff] %v4650_v24  ;;  %v4659_v51 = vsel %vm6242_vm11, %v6388_v63, %v909_v7  ;;  %v4671_v63 = vpack.i.bf16 %v1498_v4, %v4653_v2  ;;  %v3445_v2 = vunpack.i.l.bf16 %v4457_v0 }
 0x117   : > { %6389 = vst [vmem:[#allocation44_spill] sm:$0xff] %v4659_v51  ;;  %v958_v29 = vsel %vm6239_vm12, %v3535_v60, %v6221_v30  ;;  %v6225_v60 = vunpack.i.h.bf16 %v4530_v56  ;;  %v4691_v30 = vld [vmem:[%s4134_s11 + $0x20] sm:$0xff] }
 0x118   : > { %1715 = vmatpush.msra.mxu0 %v958_v29  ;;  %v3475_v29 = vunpack.i.l.bf16 %v4515_v22  ;;  %6392 = vst [vmem:[#allocation46_spill] sm:$0xff] %v4691_v30  ;;  %v3717_v16 = vpack.i.bf16 %v4691_v30, %v4583_v44  ;;  %v3415_v30 = vunpack.i.l.bf16 %v4329_v33 }
 0x11a   : > { %3703 = vrot.lane.b32.xlu1 %v4439_v3, %s6272_s9  ;;  %1716 = vmatpush.msra.mxu0 %v911_v1  ;;  %v3460_v3 = vunpack.i.l.bf16 %v4404_v54  ;;  %v4688_v1 = vld [vmem:[%s4134_s11 + $0x18] sm:$0xff] }
 0x11b   : > { %3698 = vrot.lane.b32.xlu0 %v4417_v58, %s6272_s9  ;;  %3708 = vrot.lane.b32.xlu2 %v4671_v63, %s6272_s9  ;;  %6391 = vst [vmem:[#allocation45_spill] sm:$0xff] %v4688_v1  ;;  %v817_v58 = vsel %vm6292_vm8, %v3490_v34, %v6225_v60  ;;  %v3712_v46 = vpack.i.bf16 %v4688_v1, %v4586_v12  ;;  %v6394_v34 = vunpack.i.h.bf16 %v4404_v54 }
 0x11c   : > { %v956_v4 = vpop.permute.xlu1 %955  ;;  %1717 = vmatpush.msra.mxu0 %v864_v36  ;;  %v6393_v36 = vunpack.i.h.bf16 %v4515_v22 }
 0x11d   : > { %v4693_v7 = vpop.permute.xlu0 %3543  ;;  %v4698_v35 = vpop.permute.xlu2 %3583  ;;  %v723_v60 = vsel %vm722_vm9, %v3460_v3, %v6394_v34 }
 0x11e   : > { %v3546_v49 = vunpack.i.h.bf16 %v4693_v7  ;;  %1718 = vmatpush.msra.mxu0 %v817_v58  ;;  %v770_v51 = vsel %vm769_vm10, %v3475_v29, %v6393_v36  ;;  %v6233_v58 = vunpack.i.h.bf16 %v4429_v62  ;;  %v6231_v29 = vunpack.i.h.bf16 %v4457_v0 }
 0x11f   : > { %v6396_v36 = vunpack.i.l.bf16 %v4693_v7 }
 0x120   : > { %1719 = vmatpush.msra.mxu0 %v770_v51  ;;  %v4714_v57 = vsel %vm6239_vm12, %v3546_v49, %v956_v4  ;;  %v676_v3 = vsel %vm675_vm5, %v3445_v2, %v6231_v29 }
 0x121   : > { %6395 = vst [vmem:[#allocation47_spill] sm:$0xff] %v4714_v57  ;;  %v4722_v12 = vsel %vm6239_vm12, %v6396_v36, %v3546_v49  ;;  %v3400_v49 = vunpack.i.l.bf16 %v4367_v43  ;;  %v3385_v57 = vunpack.i.l.bf16 %v4350_v40 }
 0x122   : > { %6397 = vst [vmem:[#allocation48_spill] sm:$0xff] %v4722_v12  ;;  %1472 = vrot.lane.b32.xlu1 %v4451_v5, %s6272_s9  ;;  %1720 = vmatpush.msra.mxu0 %v723_v60  ;;  %s3269_s9 = smul.u32 6, %s4127_s28  ;;  %s6583_s28 = smov 18  }
 0x123   : > { %3713 = vrot.lane.b32.xlu0 %v3712_v46, %s6274_s10  ;;  %3718 = vrot.lane.b32.xlu2 %v3717_v16, %s6274_s10  ;;  %v629_v46 = vsel %vm628_vm7, %v3430_v26, %v6233_v58  ;;  %v6402_v58 = vunpack.i.h.bf16 %v4644_v42 }
 0x124   : > { %v4733_v4 = vpop.permute.xlu1 %3558  ;;  %1721 = vmatpush.msra.mxu0 %v676_v3  ;;  %v6398_v3 = vunpack.i.h.bf16 %v4329_v33  ;;  %s295_s7 = scalar_lea.vmem %s6164_s1, %s3269_s9  ;;  %s6627_s9 = smov 7  }
 0x125   : > { %v3561_v34 = vunpack.i.h.bf16 %v4733_v4  ;;  %v3560_v36 = vunpack.i.l.bf16 %v4733_v4  ;;  %v3554_v51 = vpop.permute.xlu0 %3553  ;;  %v4741_v60 = vpop.permute.xlu2 %3593  ;;  %v6234_v4 = vunpack.i.h.bf16 %v4367_v43 }
 0x126   : > { %v3556_v29 = vunpack.i.h.bf16 %v3554_v51  ;;  %v3555_v16 = vunpack.i.l.bf16 %v3554_v51  ;;  %1722 = vmatpush.msra.mxu0 %v629_v46  ;;  %v582_v12 = vsel %vm6321_vm6, %v3415_v30, %v6398_v3  ;;  %v3370_v51 = vunpack.i.l.bf16 %v4263_v15 }
 0x127   : > { %v4751_v1 = vsel %vm6249_vm13, %v3561_v34, %v4629_v39  ;;  %v4754_v26 = vsel %vm6249_vm13, %v3560_v36, %v3561_v34  ;;  %v6400_v46 = vunpack.i.h.bf16 %v4592_v41  ;;  %v535_v39 = vsel %vm6317_vm2, %v3400_v49, %v6234_v4 }
 0x128   : > { %6399 = vst [vmem:[#allocation49_spill] sm:$0xff] %v4754_v26  ;;  %1723 = vmatpush.msra.mxu0 %v582_v12  ;;  %v4762_v3 = vsel %vm6249_vm13, %v3555_v16, %v3556_v29  ;;  %v6401_v34 = vunpack.i.l.bf16 %v4553_v25  ;;  %v3356_v41 = vunpack.i.h.bf16 %v4238_v10  ;;  %v3355_v12 = vunpack.i.l.bf16 %v4238_v10 }
 0x129   : > { %v1006_v30 = vsel %vm6249_vm13, %v6400_v46, %v3555_v16  ;;  %v6235_v49 = vunpack.i.l.bf16 %v4650_v24  ;;  %v6403_v16 = vunpack.i.h.bf16 %v4350_v40 }
 0x12a   : > { %1754 = vmatpush.msra.mxu2 %v1006_v30  ;;  %1724 = vmatpush.msra.mxu0 %v535_v39  ;;  %v959_v2 = vsel %vm6239_vm12, %v6402_v58, %v6401_v34  ;;  %v6405_v58 = vunpack.i.l.bf16 %v4623_v14  ;;  %v6407_v39 = vunpack.i.h.bf16 %v4263_v15  ;;  %v3340_v34 = vunpack.i.l.bf16 %v4273_v17 }
 0x12b   : > { %1519 = vrot.lane.b32.xlu1 %v4451_v5, %s6274_s10  ;;  %3723 = vrot.lane.b32.xlu0 %v4671_v63, %s6274_s10  ;;  %v488_v46 = vsel %vm6315_vm4, %v3385_v57, %v6403_v16  ;;  %v6406_v5 = vunpack.i.h.bf16 %v4627_v61  ;;  %v394_v4 = vsel %vm6303_vm0, %v3355_v12, %v3356_v41 }
 0x12c   : > { %1755 = vmatpush.msra.mxu2 %v959_v2  ;;  %v4782_v42 = vpop.permute.xlu1 %3568  ;;  %1725 = vmatpush.msra.mxu0 %v488_v46  ;;  %v441_v63 = vsel %vm6308_vm3, %v3370_v51, %v6407_v39  ;;  %v6408_v51 = vunpack.i.l.bf16 %v4590_v23  ;;  %v6411_v2 = vunpack.i.h.bf16 %v4530_v56  ;;  %v6414_v56 = vunpack.i.h.bf16 %v4515_v22 }
 0x12d   : > { %6404 = vst [vmem:[#allocation50_spill] sm:$0xff] %v4782_v42  ;;  %v912_v30 = vsel %vm6242_vm11, %v6406_v5, %v6405_v58  ;;  %v6238_v57 = vunpack.i.h.bf16 %v4782_v42  ;;  %v6236_v16 = vunpack.i.l.bf16 %v4782_v42  ;;  %v4796_v46 = vpop.permute.xlu0 %3563  ;;  %v4798_v61 = vpop.permute.xlu2 %1143  ;;  %v6409_v5 = vunpack.i.h.bf16 %v4494_v55 }
 0x12e   : > { %1756 = vmatpush.msra.mxu2 %v912_v30  ;;  %v6270_v58 = vunpack.i.h.bf16 %v4796_v46  ;;  %1726 = vmatpush.msra.mxu0 %v441_v63  ;;  %v6410_v63 = vunpack.i.l.bf16 %v4473_v9 }
 0x12f   : > { %v865_v39 = vsel %vm6246_vm14, %v6409_v5, %v6408_v51  ;;  %v4814_v30 = vsel %vm6322_vm15, %v6238_v57, %v6235_v49  ;;  %v6412_v51 = vunpack.i.h.bf16 %v4273_v17  ;;  %v6240_v49 = vunpack.i.h.bf16 %v4650_v24 }
 0x130   : > { %1757 = vmatpush.msra.mxu2 %v865_v39  ;;  %1727 = vmatpush.msra.mxu0 %v394_v4  ;;  %v818_v55 = vsel %vm6292_vm8, %v6411_v2, %v6410_v63  ;;  %v4826_v12 = vsel %vm6322_vm15, %v6270_v58, %v6236_v16  ;;  %v306_v39 = vld [vmem:[%s4134_s11] sm:$0xff]  ;;  %v6413_v4 = vunpack.i.l.bf16 %v4511_v13  ;;  %v6260_v63 = vunpack.i.l.bf16 %v4698_v35 }
 0x131   : > { %v347_v5 = vsel %vm6237_vm1, %v3340_v34, %v6412_v51  ;;  %v6416_v34 = vunpack.i.h.bf16 %v4404_v54  ;;  %vm6323_vm1 = vcmask 48128   ;;  %v6419_v57 = vunpack.i.l.bf16 %v4693_v7 }
 0x132   : > { %1758 = vmatpush.msra.mxu2 %v818_v55  ;;  %1728 = vmatpush.msra.mxu0 %v347_v5  ;;  %v771_v2 = vsel %vm769_vm10, %v6414_v56, %v6413_v4  ;;  %v6415_v55 = vunpack.i.l.bf16 %v4492_v28  ;;  %v1008_v5 = vsel %vm6249_vm13, %v3556_v29, %v3560_v36  ;;  %v6417_v56 = vunpack.i.l.bf16 %v4383_v48 }
 0x133   : > { %v6420_v54 = vunpack.i.h.bf16 %v4553_v25  ;;  %v6422_v25 = vunpack.i.l.bf16 %v4425_v59  ;;  %v6423_v7 = vunpack.i.h.bf16 %v4429_v62  ;;  %v6428_v62 = vunpack.i.l.bf16 %v4580_v18 }
 0x134   : > { %1759 = vmatpush.msra.mxu2 %v771_v2  ;;  %v4839_v16 = vpop.permute.xlu1 %3578  ;;  %1729 = vmatpush.msra.mxu0 %v306_v39  ;;  %v724_v51 = vsel %vm722_vm9, %v6416_v34, %v6415_v55  ;;  %v6418_v2 = vunpack.i.h.bf16 %v4457_v0  ;;  %v6424_v34 = vunpack.i.l.bf16 %v4534_v50  ;;  %vm6345_vm13 = vcmask 441344  }
 0x135   : > { %v6278_v22 = vunpack.i.h.bf16 %v4839_v16  ;;  %v1050_v4 = vpop.permute.xlu0 %1049  ;;  %v961_v55 = vsel %vm6239_vm12, %v6420_v54, %v6419_v57  ;;  %v4863_v36 = vpop.permute.xlu2 %3618  ;;  %v630_v57 = vsel %vm628_vm7, %v6423_v7, %v6422_v25  ;;  %v6429_v54 = vunpack.i.h.bf16 %v4590_v23 }
 0x136   : > { %1760 = vmatpush.msra.mxu2 %v724_v51  ;;  %1834 = vmatpush.msrb.mxu0 %v1008_v5  ;;  %v677_v39 = vsel %vm675_vm5, %v6418_v2, %v6417_v56  ;;  %v4861_v29 = vsel %vm6322_vm15, %v6240_v49, %v1050_v4  ;;  %6421 = vst [vmem:[#allocation51_spill] sm:$0xff] %v4863_v36  ;;  %v6425_v51 = vunpack.i.h.bf16 %v4623_v14  ;;  %v6259_v4 = vunpack.i.l.bf16 %v4461_v6 }
 0x137   : > { %v4870_v0 = vsel %vm6323_vm1, %v6278_v22, %v6260_v63  ;;  %v6426_v56 = vunpack.i.l.bf16 %v4402_v53  ;;  %v6427_v2 = vunpack.i.h.bf16 %v4329_v33  ;;  %v867_v50 = vsel %vm6246_vm14, %v6429_v54, %v6428_v62 }
 0x138   : > { %1761 = vmatpush.msra.mxu2 %v677_v39  ;;  %1835 = vmatpush.msrb.mxu0 %v961_v55  ;;  %v914_v5 = vsel %vm6242_vm11, %v6425_v51, %v6424_v34  ;;  %v6258_v14 = vunpack.i.l.bf16 %v4490_v38  ;;  %v6430_v25 = vunpack.i.l.bf16 %v4308_v27  ;;  %v6431_v7 = vunpack.i.h.bf16 %v4367_v43 }
 0x139   : > { %v583_v39 = vsel %vm6321_vm6, %v6427_v2, %v6426_v56  ;;  %v6432_v33 = vunpack.i.l.bf16 %v4551_v19  ;;  %v6433_v34 = vunpack.i.h.bf16 %v4473_v9  ;;  %v6256_v23 = vunpack.i.l.bf16 %v4471_v8 }
 0x13a   : > { %1762 = vmatpush.msra.mxu2 %v630_v57  ;;  %1836 = vmatpush.msrb.mxu0 %v914_v5  ;;  %v536_v57 = vsel %vm6317_vm2, %v6431_v7, %v6430_v25  ;;  %v6435_v5 = vunpack.i.l.bf16 %v4346_v37  ;;  %v6436_v56 = vunpack.i.h.bf16 %v4350_v40  ;;  %v6261_v2 = vunpack.i.h.bf16 %v4698_v35 }
 0x13b   : > { %v820_v18 = vsel %vm6292_vm8, %v6433_v34, %v6432_v33  ;;  %v6438_v54 = vunpack.i.l.bf16 %v4327_v32  ;;  %v6439_v40 = vunpack.i.h.bf16 %v4263_v15  ;;  %v6255_v25 = vunpack.i.l.bf16 %v4371_v45 }
 0x13c   : > { %1763 = vmatpush.msra.mxu2 %v583_v39  ;;  %1837 = vmatpush.msrb.mxu0 %v867_v50  ;;  %v1097_v55 = vpop.permute.xlu1 %1096  ;;  %v489_v43 = vsel %vm6315_vm4, %v6436_v56, %v6435_v5  ;;  %v6437_v39 = vunpack.i.h.bf16 %v4511_v13  ;;  %v6440_v7 = vunpack.i.h.bf16 %v4492_v28  ;;  %v6254_v33 = vunpack.i.l.bf16 %v4400_v52 }
 0x13d   : > { %v4905_v51 = vpop.permute.xlu0 %3588  ;;  %v442_v50 = vsel %vm6308_vm3, %v6439_v40, %v6438_v54  ;;  %v4944_v34 = vpop.permute.xlu2 %3628  ;;  %v6441_v28 = vunpack.i.l.bf16 %v4246_v11  ;;  %v6442_v5 = vunpack.i.h.bf16 %v4383_v48  ;;  %vm6446_vm12 = vcmask 1039360  }
 0x13e   : > { %6434 = vst [vmem:[#allocation52_spill] sm:$0xff] %v4905_v51  ;;  %1764 = vmatpush.msra.mxu2 %v536_v57  ;;  %1838 = vmatpush.msrb.mxu0 %v820_v18  ;;  %v6243_v19 = vunpack.i.h.bf16 %v4905_v51  ;;  %v6241_v9 = vunpack.i.l.bf16 %v4905_v51  ;;  %v773_v62 = vsel %vm769_vm10, %v6437_v39, %v6259_v4  ;;  %v726_v57 = vsel %vm722_vm9, %v6440_v7, %v6258_v14 }
 0x13f   : > { %v395_v18 = vsel %vm6303_vm0, %v3356_v41, %v6441_v28  ;;  %v679_v56 = vsel %vm675_vm5, %v6442_v5, %v6256_v23  ;;  %v6444_v39 = vunpack.i.l.bf16 %v4285_v20  ;;  %v6447_v41 = vunpack.i.h.bf16 %v4425_v59 }
 0x140   : > { %1765 = vmatpush.msra.mxu2 %v489_v43  ;;  %1839 = vmatpush.msrb.mxu0 %v773_v62  ;;  %v4936_v13 = vsel %vm6323_vm1, %v6261_v2, %v6241_v9  ;;  %v4941_v15 = vsel %vm6323_vm1, %v6243_v19, %v1097_v55  ;;  %v6253_v55 = vunpack.i.l.bf16 %v4381_v47  ;;  %v6445_v62 = vunpack.i.h.bf16 %v4273_v17 }
 0x141   : > { %v632_v48 = vsel %vm628_vm7, %v6447_v41, %v6255_v25  ;;  %v6252_v54 = vunpack.i.l.bf16 %v4287_v21  ;;  %v6448_v17 = vunpack.i.h.bf16 %v4402_v53  ;;  %v6279_v59 = vunpack.i.h.bf16 %v4741_v60 }
 0x142   : > { %1766 = vmatpush.msra.mxu2 %v442_v50  ;;  %1840 = vmatpush.msrb.mxu0 %v726_v57  ;;  %v348_v10 = vsel %vm6446_vm12, %v6445_v62, %v6444_v39  ;;  %vm6344_vm12 = vcmask 457728   ;;  %v6251_v53 = vunpack.i.l.bf16 %v4325_v31  ;;  %v6450_v62 = vld [vmem:[#allocation11_spill] sm:$0xff]  ;;  %vm6324_vm11 = vcmask 449536  }
 0x143   : > { %v585_v57 = vsel %vm6321_vm6, %v6448_v17, %v6254_v33  ;;  %vm6456_vm14 = vcmask 1039360   ;;  %vm1521_vm8 = vcmask 277504   ;;  %vm6343_vm6 = vcmask 719872  }
 0x144   : > { %1767 = vmatpush.msra.mxu2 %v395_v18  ;;  %1841 = vmatpush.msrb.mxu0 %v679_v56  ;;  %v4957_v43 = vpop.permute.xlu1 %3603  ;;  %v6449_v56 = vunpack.i.h.bf16 %v4308_v27  ;;  %v6451_v27 = vunpack.i.h.bf16 %v4346_v37 }
 0x145   : > { %6443 = vst [vmem:[#allocation53_spill] sm:$0xff] %v4957_v43  ;;  %v6245_v40 = vunpack.i.h.bf16 %v4957_v43  ;;  %v6244_v50 = vunpack.i.l.bf16 %v4957_v43  ;;  %v4972_v7 = vpop.permute.xlu0 %3598  ;;  %v5016_v17 = vpop.permute.xlu2 %3638 }
 0x146   : > { %1768 = vmatpush.msra.mxu2 %v348_v10  ;;  %1842 = vmatpush.msrb.mxu0 %v632_v48  ;;  %v6265_v28 = vunpack.i.h.bf16 %v4972_v7  ;;  %v6262_v18 = vunpack.i.l.bf16 %v4972_v7  ;;  %v538_v39 = vsel %vm6317_vm2, %v6449_v56, %v6253_v55  ;;  %v6247_v10 = vunpack.i.l.bf16 %v6450_v62 }
 0x147   : > { %v4987_v5 = vsel %vm6344_vm12, %v6245_v40, %v4798_v61  ;;  %v491_v41 = vsel %vm6315_vm4, %v6451_v27, %v6252_v54  ;;  %v6248_v48 = vunpack.i.l.bf16 %v4863_v36  ;;  %v6269_v55 = vunpack.i.h.bf16 %v4944_v34 }
 0x148   : > { %1843 = vmatpush.msrb.mxu0 %v585_v57  ;;  %1769 = vmatpush.msra.mxu2 %v4583_v44  ;;  %v5000_v44 = vsel %vm6344_vm12, %v6279_v59, %v6262_v18  ;;  %v5007_v61 = vsel %vm6344_vm12, %v6265_v28, %v6244_v50  ;;  %v6452_v57 = vld [vmem:[#allocation5_spill] sm:$0xff]  ;;  %v6454_v50 = vunpack.i.h.bf16 %v4246_v11  ;;  %v3641_v47 = vunpack.i.h.bf16 %v5016_v17 }
 0x149   : > { %v6250_v56 = vunpack.i.l.bf16 %v6452_v57  ;;  %vm1380_vm4 = vcmask 359424   ;;  %vm1333_vm2 = vcmask 367616  }
 0x14a   : > { %1844 = vmatpush.msrb.mxu0 %v538_v39  ;;  %v6453_v39 = vunpack.i.h.bf16 %v4327_v32  ;;  %v397_v40 = vsel %vm6303_vm0, %v6454_v50, %v6247_v10  ;;  %v6457_v50 = vld [vmem:[#allocation45_spill] sm:$0xff]  ;;  %v6257_v10 = vunpack.i.h.bf16 %v4863_v36  ;;  %vm1474_vm0 = vcmask 285696  }
 0x14c   : > { %1845 = vmatpush.msrb.mxu0 %v491_v41  ;;  %v5019_v49 = vpop.permute.xlu1 %3613  ;;  %v444_v9 = vsel %vm6308_vm3, %v6453_v39, %v6251_v53  ;;  %vm1427_vm3 = vcmask 293888  }
 0x14d   : > { %v6267_v37 = vunpack.i.h.bf16 %v5019_v49  ;;  %v6266_v27 = vunpack.i.l.bf16 %v5019_v49  ;;  %v5028_v41 = vpop.permute.xlu0 %3608 }
 0x14e   : > { %1846 = vmatpush.msrb.mxu0 %v444_v9  ;;  %v6280_v19 = vunpack.i.h.bf16 %v5028_v41  ;;  %v6455_v9 = vunpack.i.h.bf16 %v4285_v20 }
 0x14f   : > { %v5041_v32 = vsel %vm6324_vm11, %v6267_v37, %v6248_v48 }
 0x150   : > { %1847 = vmatpush.msrb.mxu0 %v397_v40  ;;  %v350_v39 = vsel %vm6456_vm14, %v6455_v9, %v6250_v56  ;;  %v5053_v11 = vsel %vm6324_vm11, %v6280_v19, %v6266_v27  ;;  %v6268_v40 = vunpack.i.l.bf16 %v4944_v34  ;;  %v1285_v56 = vpop.permute.xlu2 %1284  ;;  %vm1286_vm14 = vcmask 375808  }
 0x152   : > { %1848 = vmatpush.msrb.mxu0 %v350_v39 }
 0x154   : > { %1849 = vmatpush.msrb.mxu0 %v6457_v50  ;;  %v5058_v48 = vpop.permute.xlu1 %3623 }
 0x155   : > { %v6281_v20 = vunpack.i.h.bf16 %v5058_v48  ;;  %v1191_v9 = vpop.permute.xlu0 %1190 }
 0x156   : > { %v5064_v53 = vsel %vm6324_vm11, %v6257_v10, %v1191_v9 }
 0x157   : > { %v5071_v39 = vsel %vm6345_vm13, %v6281_v20, %v6268_v40 }
 0x158   : > { %v5078_v23 = vpop.permute.xlu2 %3663 }
 0x15c   : > { %v1238_v50 = vpop.permute.xlu1 %1237 }
 0x15d   : > { %v5073_v54 = vpop.permute.xlu0 %3633 }
 0x15e   : > { %6458 = vst [vmem:[#allocation45_spill] sm:$0xff] %v5073_v54  ;;  %v6264_v33 = vunpack.i.h.bf16 %v5073_v54  ;;  %v6263_v25 = vunpack.i.l.bf16 %v5073_v54 }
 0x160   : > { %v5085_v9 = vsel %vm6345_vm13, %v6269_v55, %v6263_v25  ;;  %v5090_v10 = vsel %vm6345_vm13, %v6264_v33, %v1238_v50  ;;  %v5111_v33 = vpop.permute.xlu2 %3673 }
 0x164   : > { %v5092_v14 = vpop.permute.xlu1 %3648 }
 0x165   : > { %6459 = vst [vmem:[#allocation54_spill] sm:$0xff] %v5092_v14  ;;  %v6271_v4 = vunpack.i.h.bf16 %v5092_v14  ;;  %v6276_v63 = vunpack.i.l.bf16 %v5092_v14  ;;  %v5096_v2 = vpop.permute.xlu0 %3643 }
 0x166   : > { %v6277_v18 = vunpack.i.h.bf16 %v5096_v2 }
 0x167   : > { %v5102_v25 = vsel %vm1286_vm14, %v6271_v4, %v1285_v56 }
 0x168   : > { %v5109_v50 = vsel %vm1286_vm14, %v6277_v18, %v6276_v63  ;;  %v3684_v37 = vpop.permute.xlu2 %3683  ;;  %v5128_v63 = vld [vmem:[%s6165_s2] sm:$0xff] }
 0x169   : > { %6460 = vst [vmem:[#allocation55_spill] sm:$0xff] %v5128_v63  ;;  %1730 = vmatmul.f32.vlgmr.msra.gmra.mxu0 %v5128_v63  ;;  %1770 = vmatmul.f32.vlgmr.msra.gmra.mxu2 %v5128_v63  ;;  %v3686_v31 = vunpack.i.h.bf16 %v3684_v37  ;;  %v3685_v21 = vunpack.i.l.bf16 %v3684_v37 }
 0x16c   : > { %v5113_v28 = vpop.permute.xlu1 %3658 }
 0x16d   : > { %v5115_v27 = vpop.permute.xlu0 %3653 }
 0x170   : > { %v5123_v4 = vpop.permute.xlu2 %1425 }
 0x171   : > { %1850 = vmatmul.f32.vlgmr.msrb.gmra.mxu0 %v5128_v63 }
 0x174   : > { %v3669_v40 = vpop.permute.xlu1 %3668 }
 0x175   : > { %v5117_v55 = vpop.permute.xlu0 %1331  ;;  %v3670_v45 = vunpack.i.l.bf16 %v3669_v40  ;;  %v3671_v26 = vunpack.i.h.bf16 %v3669_v40 }
 0x178   : > { %v5136_v59 = vpop.permute.xlu2 %3708 }
 0x17c   : > { %v5119_v58 = vpop.permute.xlu1 %1378 }
 0x17d   : > { %v5121_v56 = vpop.permute.xlu0 %3678 }
 0x180   : > { %v5141_v24 = vpop.permute.xlu2 %3718 }
 0x181   : > { %v3720_v51 = vunpack.i.l.bf16 %v5141_v24 }
 0x184   : > { %v5132_v18 = vpop.permute.xlu1 %3693 }
 0x185   : > { %v5134_v22 = vpop.permute.xlu0 %3688 }
 0x186   : > { %v6462_v40 = vunpack.i.l.bf16 %v5134_v22 }
 0x18c   : > { %v5139_v19 = vpop.permute.xlu1 %3703 }
 0x18d   : > { %v3699_v20 = vpop.permute.xlu0 %3698  ;;  %v6461_v37 = vunpack.i.l.bf16 %v5139_v19 }
 0x18e   : > { %v3701_v14 = vunpack.i.h.bf16 %v3699_v20  ;;  %v3700_v57 = vunpack.i.l.bf16 %v3699_v20  ;;  %v6318_v20 = vunpack.i.l.bf16 %v5111_v33 }
 0x190   : > { %v1475_v42 = vsel %vm1474_vm0, %v3700_v57, %v3701_v14  ;;  %v1476_v8 = vsel %vm1474_vm0, %v3701_v14, %v6461_v37  ;;  %v1429_v57 = vsel %vm1427_vm3, %v3686_v31, %v6462_v40  ;;  %v3710_v40 = vunpack.i.l.bf16 %v5136_v59 }
 0x191   : > { %v6463_v14 = vunpack.i.l.bf16 %v5113_v28 }
 0x194   : > { %v5145_v36 = vpop.permute.xlu1 %1472 }
 0x195   : > { %v5147_v54 = vpop.permute.xlu0 %3713 }
 0x196   : > { %v6316_v62 = vunpack.i.h.bf16 %v5147_v54  ;;  %v3715_v63 = vunpack.i.l.bf16 %v5147_v54 }
 0x198   : > { %v1522_v52 = vsel %vm1521_vm8, %v3720_v51, %v3715_v63  ;;  %v1523_v43 = vsel %vm1521_vm8, %v3715_v63, %v6316_v62  ;;  %v1428_v51 = vsel %vm1427_vm3, %v3685_v21, %v3686_v31  ;;  %v3640_v62 = vunpack.i.l.bf16 %v5016_v17 }
 0x199   : > { %1739 = vmatpush.msra.mxu1 %v1522_v52  ;;  %1779 = vmatpush.msra.mxu3 %v1523_v43  ;;  %v3656_v52 = vunpack.i.h.bf16 %v5115_v27  ;;  %v3655_v43 = vunpack.i.l.bf16 %v5115_v27  ;;  %v1382_v31 = vsel %vm1380_vm4, %v3671_v26, %v6318_v20  ;;  %v3625_v17 = vunpack.i.l.bf16 %v5058_v48 }
 0x19b   : > { %1740 = vmatpush.msra.mxu1 %v1475_v42  ;;  %1780 = vmatpush.msra.mxu3 %v1476_v8  ;;  %v1381_v8 = vsel %vm1380_vm4, %v3670_v45, %v3671_v26  ;;  %v1335_v42 = vsel %vm1333_vm2, %v3656_v52, %v6463_v14  ;;  %v6464_v26 = vunpack.i.h.bf16 %v5141_v24  ;;  %v6465_v14 = vunpack.i.l.bf16 %v5096_v2 }
 0x19d   : > { %v5171_v37 = vpop.permute.xlu0 %3723  ;;  %1741 = vmatpush.msra.mxu1 %v1428_v51  ;;  %1781 = vmatpush.msra.mxu3 %v1429_v57  ;;  %v1520_v21 = vpop.permute.xlu1 %1519  ;;  %v1334_v57 = vsel %vm1333_vm2, %v3655_v43, %v3656_v52  ;;  %v3696_v51 = vunpack.i.h.bf16 %v5132_v18  ;;  %v3610_v43 = vunpack.i.l.bf16 %v5028_v41  ;;  %v1287_v52 = vsel %vm1286_vm14, %v3640_v62, %v3641_v47 }
 0x19e   : > { %v6320_v27 = vunpack.i.h.bf16 %v5171_v37  ;;  %v6319_v63 = vunpack.i.l.bf16 %v5171_v37 }
 0x19f   : > { %1742 = vmatpush.msra.mxu1 %v1381_v8  ;;  %1782 = vmatpush.msra.mxu3 %v1382_v31  ;;  %v3695_v8 = vunpack.i.l.bf16 %v5132_v18  ;;  %v3691_v31 = vunpack.i.h.bf16 %v5134_v22  ;;  %v6547_v18 = vld [vmem:[#allocation43_spill] sm:$0xff] }
 0x1a0   : > { %v1527_v45 = vsel %vm1521_vm8, %v6320_v27, %v1520_v21  ;;  %v1525_v20 = vsel %vm1521_vm8, %v6464_v26, %v6319_v63  ;;  %v3711_v21 = vunpack.i.h.bf16 %v5136_v59  ;;  %v1288_v26 = vsel %vm1286_vm14, %v3641_v47, %v6465_v14  ;;  %v6544_v59 = vld [vmem:[#allocation7_spill] sm:$0xff] }
 0x1a1   : > { %1743 = vmatpush.msra.mxu1 %v1334_v57  ;;  %1783 = vmatpush.msra.mxu3 %v1335_v42  ;;  %v3681_v63 = vunpack.i.h.bf16 %v5121_v56  ;;  %v3680_v27 = vunpack.i.l.bf16 %v5121_v56  ;;  %v6466_v42 = vunpack.i.h.bf16 %v5139_v19  ;;  %v3665_v47 = vunpack.i.l.bf16 %v5078_v23 }
 0x1a2   : > { %1859 = vmatpush.msrb.mxu2 %v1525_v20  ;;  %1939 = vmatpush.msra.mxu0 %v1527_v45  ;;  %v1480_v62 = vsel %vm1474_vm0, %v3711_v21, %v5145_v36  ;;  %v3595_v20 = vunpack.i.l.bf16 %v4741_v60  ;;  %v6467_v45 = vunpack.i.h.bf16 %v5058_v48  ;;  %v3661_v14 = vunpack.i.h.bf16 %v5113_v28 }
 0x1a3   : > { %1744 = vmatpush.msra.mxu1 %v1287_v52  ;;  %1784 = vmatpush.msra.mxu3 %v1288_v26  ;;  %v1478_v57 = vsel %vm1474_vm0, %v6466_v42, %v3710_v40  ;;  %v3676_v26 = vunpack.i.h.bf16 %v5111_v33  ;;  %v1431_v36 = vsel %vm1427_vm3, %v3691_v31, %v3695_v8  ;;  %v1433_v48 = vsel %vm1427_vm3, %v3696_v51, %v5123_v4 }
 0x1a4   : > { %1860 = vmatpush.msrb.mxu2 %v1478_v57  ;;  %1940 = vmatpush.msra.mxu0 %v1480_v62  ;;  %v1240_v52 = vsel %vm6345_vm13, %v3625_v17, %v6467_v45  ;;  %v3580_v17 = vunpack.i.l.bf16 %v4839_v16  ;;  %v6468_v42 = vunpack.i.h.bf16 %v5028_v41  ;;  %v1386_v4 = vsel %vm1380_vm4, %v3681_v63, %v5119_v58 }
 0x1a5   : > { %1745 = vmatpush.msra.mxu1 %v1240_v52  ;;  %1785 = vmatpush.msra.mxu3 %v5071_v39  ;;  %v3666_v39 = vunpack.i.h.bf16 %v5078_v23  ;;  %v1384_v62 = vsel %vm1380_vm4, %v3676_v26, %v3680_v27  ;;  %v3565_v45 = vunpack.i.l.bf16 %v4796_v46  ;;  %v6469_v41 = vunpack.i.h.bf16 %v4741_v60 }
 0x1a6   : > { %1861 = vmatpush.msrb.mxu2 %v1431_v36  ;;  %1941 = vmatpush.msra.mxu0 %v1433_v48  ;;  %v1193_v57 = vsel %vm6324_vm11, %v3610_v43, %v6468_v42  ;;  %v6470_v52 = vunpack.i.h.bf16 %v4839_v16  ;;  %v6472_v16 = vunpack.i.h.bf16 %v5141_v24  ;;  %v6477_v24 = vld [vmem:[#allocation41_spill] sm:$0xff]  ;;  %v6491_v36 = vunpack.i.h.bf16 %v5019_v49 }
 0x1a7   : > { %1746 = vmatpush.msra.mxu1 %v1193_v57  ;;  %1786 = vmatpush.msra.mxu3 %v5053_v11  ;;  %v1146_v43 = vsel %vm6344_vm12, %v3595_v20, %v6469_v41  ;;  %v1337_v11 = vsel %vm1333_vm2, %v3661_v14, %v3665_v47  ;;  %v1339_v58 = vsel %vm1333_vm2, %v3666_v39, %v5117_v55  ;;  %v5269_v55 = vld [vmem:[%s6165_s2 + $0x8] sm:$0xff]  ;;  %v6492_v48 = vunpack.i.l.bf16 %v5019_v49 }
 0x1a8   : > { %1862 = vmatpush.msrb.mxu2 %v1384_v62  ;;  %1942 = vmatpush.msra.mxu0 %v1386_v4  ;;  %v1099_v60 = vsel %vm6323_vm1, %v3580_v17, %v6470_v52  ;;  %v6493_v42 = vld [vmem:[#allocation21_spill] sm:$0xff]  ;;  %v6495_v57 = vunpack.i.h.bf16 %v4972_v7  ;;  %v6496_v62 = vunpack.i.l.bf16 %v4972_v7  ;;  %v3471_v49 = vunpack.i.h.bf16 %v4490_v38 }
 0x1a9   : > { %1747 = vmatpush.msra.mxu1 %v1146_v43  ;;  %1787 = vmatpush.msra.mxu3 %v5000_v44  ;;  %v6471_v44 = vunpack.i.h.bf16 %v4796_v46  ;;  %v6473_v46 = vunpack.i.h.bf16 %v5147_v54  ;;  %v1195_v17 = vsel %vm6324_vm11, %v6492_v48, %v6491_v36  ;;  %v6497_v41 = vld [vmem:[#allocation25_spill] sm:$0xff]  ;;  %v6498_v43 = vld [vmem:[#allocation35_spill] sm:$0xff] }
 0x1aa   : > { %1863 = vmatpush.msrb.mxu2 %v1337_v11  ;;  %1943 = vmatpush.msra.mxu0 %v1339_v58  ;;  %v1148_v4 = vsel %vm6344_vm12, %v6496_v62, %v6495_v57  ;;  %v6499_v11 = vunpack.i.h.bf16 %v4698_v35  ;;  %v6500_v58 = vunpack.i.l.bf16 %v4698_v35  ;;  %v6508_v35 = vld [vmem:[#allocation24_spill] sm:$0xff]  ;;  %v6524_v36 = vld [vmem:[#allocation13_spill] sm:$0xff]  ;;  %v6529_v62 = vld [vmem:[#allocation11_spill] sm:$0xff] }
 0x1ab   : > { %1748 = vmatpush.msra.mxu1 %v1099_v60  ;;  %1788 = vmatpush.msra.mxu3 %v4870_v0  ;;  %v1052_v20 = vsel %vm6322_vm15, %v3565_v45, %v6471_v44  ;;  %v1524_v0 = vsel %vm1521_vm8, %v6473_v46, %v6472_v16  ;;  %v3486_v45 = vunpack.i.h.bf16 %v4461_v6  ;;  %v6501_v60 = vld [vmem:[#allocation28_spill] sm:$0xff]  ;;  %v6502_v44 = vld [vmem:[#allocation23_spill] sm:$0xff]  ;;  %v6504_v46 = vld [vmem:[#allocation50_spill] sm:$0xff]  ;;  %v3381_v48 = vunpack.i.h.bf16 %v6524_v36 }
 0x1ac   : > { %1864 = vmatpush.msrb.mxu2 %v5109_v50  ;;  %1944 = vmatpush.msra.mxu0 %v5102_v25  ;;  %v6475_v25 = vunpack.i.h.bf16 %v5139_v19  ;;  %v6486_v50 = vld [vmem:[#allocation47_spill] sm:$0xff]  ;;  %v1101_v52 = vsel %vm6323_vm1, %v6500_v58, %v6499_v11  ;;  %v3456_v7 = vunpack.i.h.bf16 %v6501_v60  ;;  %vm6527_vm1 = vcmask 949248   ;;  %v6528_v57 = vld [vmem:[#allocation36_spill] sm:$0xff] }
 0x1ad   : > { %1749 = vmatpush.msra.mxu1 %v1052_v20  ;;  %1789 = vmatpush.msra.mxu3 %v4826_v12  ;;  %v6474_v12 = vld [vmem:[#allocation34_spill] sm:$0xff]  ;;  %v6503_v20 = vld [vmem:[#allocation32_spill] sm:$0xff]  ;;  %v6533_v58 = vld [vmem:[#allocation55_spill] sm:$0xff] }
 0x1ae   : > { %1865 = vmatpush.msrb.mxu2 %v5085_v9  ;;  %1945 = vmatpush.msra.mxu0 %v5090_v10  ;;  %v6476_v10 = vunpack.i.l.bf16 %v5139_v19  ;;  %v6479_v19 = vunpack.i.l.bf16 %v5111_v33  ;;  %v6483_v33 = vunpack.i.h.bf16 %v5096_v2  ;;  %v775_v16 = vsel %vm769_vm10, %v3486_v45, %v6503_v20 }
 0x1af   : > { %3258 = vmatmul.msk.f32.vlgmr.msra.gmra.mxu3 %vm6343_vm6, %v5269_v55  ;;  %1794 = vmatpush.msrb.mxu1 %v4762_v3  ;;  %v6478_v3 = vunpack.i.l.bf16 %v5134_v22  ;;  %v6481_v22 = vunpack.i.l.bf16 %v5113_v28  ;;  %v6485_v28 = vld [vmem:[#allocation31_spill] sm:$0xff]  ;;  %v6535_v20 = vunpack.i.h.bf16 %v5171_v37 }
 0x1b0   : > { %1819 = vmatpush.msrb.mxu3 %v1524_v0  ;;  %1866 = vmatpush.msrb.mxu2 %v5041_v32  ;;  %v1477_v9 = vsel %vm1474_vm0, %v6476_v10, %v6475_v25  ;;  %v6484_v32 = vunpack.i.l.bf16 %v5096_v2  ;;  %v6490_v2 = vld [vmem:[#allocation44_spill] sm:$0xff]  ;;  %v6505_v0 = vunpack.i.h.bf16 %v6504_v46 }
 0x1b1   : > { %1946 = vmatpush.msra.mxu0 %v5064_v53  ;;  %1795 = vmatpush.msrb.mxu1 %v6474_v12  ;;  %v1430_v54 = vsel %vm1427_vm3, %v6478_v3, %v3691_v31  ;;  %v6480_v53 = vld [vmem:[#allocation40_spill] sm:$0xff]  ;;  %v6487_v31 = vunpack.i.h.bf16 %v4944_v34  ;;  %v6506_v12 = vunpack.i.l.bf16 %v6504_v46  ;;  %v6510_v3 = vld [vmem:[#allocation18_spill] sm:$0xff] }
 0x1b2   : > { %1820 = vmatpush.msrb.mxu3 %v1477_v9  ;;  %1867 = vmatpush.msrb.mxu2 %v5007_v61  ;;  %v6482_v61 = vld [vmem:[#allocation29_spill] sm:$0xff]  ;;  %v6507_v10 = vld [vmem:[#allocation12_spill] sm:$0xff]  ;;  %v728_v9 = vsel %vm722_vm9, %v3471_v49, %v6508_v35  ;;  %v6540_v35 = vunpack.i.l.bf16 %v4490_v38  ;;  %v1432_v38 = vsel %vm1427_vm3, %v3695_v8, %v3696_v51 }
 0x1b3   : > { %1947 = vmatpush.msra.mxu0 %v4987_v5  ;;  %1796 = vmatpush.msrb.mxu1 %v6477_v24  ;;  %v1383_v5 = vsel %vm1380_vm4, %v6479_v19, %v3676_v26  ;;  %v1054_v25 = vsel %vm6322_vm15, %v6506_v12, %v6505_v0  ;;  %v6509_v24 = vld [vmem:[#allocation49_spill] sm:$0xff]  ;;  %v6511_v19 = vld [vmem:[#allocation22_spill] sm:$0xff]  ;;  %vm6521_vm15 = vcmask 883712  }
 0x1b4   : > { %1821 = vmatpush.msrb.mxu3 %v1430_v54  ;;  %1868 = vmatpush.msrb.mxu2 %v4936_v13  ;;  %v1336_v13 = vsel %vm1333_vm2, %v6481_v22, %v3661_v14  ;;  %v6488_v14 = vunpack.i.l.bf16 %v4944_v34  ;;  %v6494_v34 = vld [vmem:[#allocation38_spill] sm:$0xff]  ;;  %v3441_v54 = vunpack.i.h.bf16 %v6510_v3  ;;  %v6513_v22 = vld [vmem:[#allocation27_spill] sm:$0xff]  ;;  %v6537_v0 = vld [vmem:[#allocation5_spill] sm:$0xff]  ;;  %v6548_v51 = vunpack.i.l.bf16 %v6511_v19 }
 0x1b5   : > { %1948 = vmatpush.msra.mxu0 %v4941_v15  ;;  %3257 = vmatmul.msk.f32.vlgmr.msra.gmra.mxu1 %vm6343_vm6, %v5269_v55  ;;  %v1704_v15 = vld [vmem:[%s6166_s3] sm:$0xff]  ;;  %v3351_v12 = vunpack.i.h.bf16 %v6537_v0 }
 0x1b6   : > { %1797 = vmatpush.msrb.mxu1 %v6480_v53  ;;  %1822 = vmatpush.msrb.mxu3 %v1383_v5  ;;  %v1242_v26 = vsel %vm6345_vm13, %v6488_v14, %v6487_v31  ;;  %v3426_v5 = vunpack.i.h.bf16 %v6511_v19  ;;  %v6512_v53 = vld [vmem:[#allocation16_spill] sm:$0xff]  ;;  %v6520_v31 = vld [vmem:[#allocation15_spill] sm:$0xff] }
 0x1b7   : > { %1869 = vmatpush.msrb.mxu2 %v4814_v30  ;;  %1949 = vmatpush.msra.mxu0 %v4861_v29  ;;  %v1289_v30 = vsel %vm1286_vm14, %v6484_v32, %v6483_v33  ;;  %v4055_v29 = vmov 0   ;;  %v6516_v32 = vld [vmem:[#allocation14_spill] sm:$0xff] }
 0x1b8   : > { %1798 = vmatpush.msrb.mxu1 %v6482_v61  ;;  %1823 = vmatpush.msrb.mxu3 %v1336_v13  ;;  %v681_v13 = vsel %vm675_vm5, %v3456_v7, %v6513_v22  ;;  %v6514_v61 = vld [vmem:[#allocation48_spill] sm:$0xff]  ;;  %v587_v14 = vsel %vm6521_vm15, %v3426_v5, %v6520_v31  ;;  %vm6532_vm15 = vcmask 957440   ;;  %v6567_v31 = vld [vmem:[#allocation53_spill] sm:$0xff] }
 0x1b9   : > { %1914 = vmatpush.msra.mxu2 %v4751_v1  ;;  %3727 = vset.pattern.permute.xlu2 %v4055_v29  ;;  %v6489_v1 = vld [vmem:[#allocation30_spill] sm:$0xff] }
 0x1ba   : > { %1799 = vmatpush.msrb.mxu1 %v6485_v28  ;;  %1824 = vmatpush.msrb.mxu3 %v1289_v30  ;;  %v6517_v30 = vld [vmem:[#allocation26_spill] sm:$0xff]  ;;  %v6518_v28 = vld [vmem:[#allocation33_spill] sm:$0xff] }
 0x1bb   : > { %1915 = vmatpush.msra.mxu2 %v6486_v50  ;;  %1707 = vperm.xlu2 %3727, %v1704_v15   ;;  %v6515_v15 = vld [vmem:[#allocation20_spill] sm:$0xff] }
 0x1bc   : > { %1800 = vmatpush.msrb.mxu1 %v6489_v1  ;;  %1825 = vmatpush.msrb.mxu3 %v1242_v26  ;;  %v3411_v33 = vunpack.i.h.bf16 %v6515_v15  ;;  %v6519_v50 = vld [vmem:[#allocation4_spill] sm:$0xff]  ;;  %v6522_v26 = vld [vmem:[#allocation39_spill] sm:$0xff]  ;;  %v6550_v56 = vunpack.i.l.bf16 %v6515_v15 }
 0x1bd   : > { %1916 = vmatpush.msra.mxu2 %v6490_v2  ;;  %3262 = vmatmul.msk.f32.vlgmr.msra.gmra.mxu0 %vm6343_vm6, %v5269_v55  ;;  %v6523_v1 = vld [vmem:[#allocation8_spill] sm:$0xff] }
 0x1be   : > { %1801 = vmatpush.msrb.mxu1 %v6493_v42  ;;  %1826 = vmatpush.msrb.mxu3 %v1195_v17  ;;  %v3396_v2 = vunpack.i.h.bf16 %v6523_v1  ;;  %v6525_v17 = vld [vmem:[#allocation9_spill] sm:$0xff]  ;;  %v6526_v42 = vld [vmem:[#allocation19_spill] sm:$0xff]  ;;  %v6555_v23 = vunpack.i.l.bf16 %v6523_v1 }
 0x1bf   : > { %1917 = vmatpush.msra.mxu2 %v6494_v34  ;;  %3988 = vset.pattern.permute.xlu0 %v4055_v29  ;;  %v634_v29 = vsel %vm628_vm7, %v3441_v54, %v6517_v30  ;;  %v540_v34 = vsel %vm6527_vm1, %v3411_v33, %v6526_v42  ;;  %vm6539_vm1 = vcmask 965632  }
 0x1c0   : > { %1802 = vmatpush.msrb.mxu1 %v6497_v41  ;;  %1827 = vmatpush.msrb.mxu3 %v1148_v4  ;;  %v3366_v4 = vunpack.i.h.bf16 %v6529_v62  ;;  %v6530_v41 = vld [vmem:[#allocation37_spill] sm:$0xff] }
 0x1c1   : > { %1918 = vmatpush.msra.mxu2 %v6498_v43  ;;  %v6531_v43 = vld [vmem:[#allocation17_spill] sm:$0xff] }
 0x1c2   : > { %1803 = vmatpush.msrb.mxu1 %v6502_v44  ;;  %1828 = vmatpush.msrb.mxu3 %v1101_v52  ;;  %v493_v11 = vsel %vm6532_vm15, %v3396_v2, %v6531_v43  ;;  %v6534_v52 = vunpack.i.l.bf16 %v4461_v6  ;;  %v727_v6 = vsel %vm722_vm9, %v6540_v35, %v3471_v49  ;;  %vm6542_vm15 = vcmask 1031168   ;;  %v6580_v43 = vld [vmem:[#allocation46_spill] sm:$0xff] }
 0x1c3   : > { %1919 = vmatpush.msra.mxu2 %v775_v16  ;;  %v6536_v16 = vunpack.i.l.bf16 %v5171_v37  ;;  %v1479_v37 = vsel %vm1474_vm0, %v3710_v40, %v3711_v21  ;;  %v6546_v21 = vunpack.i.l.bf16 %v6510_v3 }
 0x1c4   : > { %1804 = vmatpush.msrb.mxu1 %v6507_v10  ;;  %1829 = vmatpush.msrb.mxu3 %v1054_v25  ;;  %v774_v44 = vsel %vm769_vm10, %v6534_v52, %v3486_v45  ;;  %v6538_v25 = vld [vmem:[#allocation6_spill] sm:$0xff] }
 0x1c5   : > { %1920 = vmatpush.msra.mxu2 %v728_v9  ;;  %3259 = vmatmul.msk.f32.vlgmr.msrb.gmra.mxu3 %vm6343_vm6, %v5269_v55  ;;  %v1526_v46 = vsel %vm1521_vm8, %v6536_v16, %v6535_v20  ;;  %v446_v10 = vsel %vm6539_vm1, %v3381_v48, %v6538_v25  ;;  %v6541_v45 = vld [vmem:[#allocation10_spill] sm:$0xff]  ;;  %vm6545_vm1 = vcmask 1039360   ;;  %v633_v49 = vsel %vm628_vm7, %v6546_v21, %v3441_v54 }
 0x1c6   : > { %1874 = vmatpush.msra.mxu3 %v6509_v24  ;;  %1805 = vmatpush.msrb.mxu1 %v6512_v53  ;;  %v399_v9 = vsel %vm6542_vm15, %v3366_v4, %v6541_v45  ;;  %v6543_v24 = vunpack.i.l.bf16 %v6501_v60  ;;  %v352_v40 = vsel %vm6545_vm1, %v3351_v12, %v6544_v59  ;;  %v1385_v60 = vsel %vm1380_vm4, %v3680_v27, %v3681_v63  ;;  %v6552_v27 = vld [vmem:[#allocation54_spill] sm:$0xff] }
 0x1c7   : > { %1921 = vmatpush.msra.mxu2 %v681_v13  ;;  %vm6549_vm15 = vcmask 883712   ;;  %vm6551_vm1 = vcmask 949248   ;;  %v6553_v3 = vunpack.i.h.bf16 %v6552_v27  ;;  %v6554_v54 = vunpack.i.l.bf16 %v6552_v27 }
 0x1c8   : > { %1875 = vmatpush.msra.mxu3 %v6514_v61  ;;  %1806 = vmatpush.msrb.mxu1 %v6516_v32  ;;  %v680_v53 = vsel %vm675_vm5, %v6543_v24, %v3456_v7  ;;  %v586_v8 = vsel %vm6549_vm15, %v6548_v51, %v3426_v5  ;;  %v1338_v7 = vsel %vm1333_vm2, %v3665_v47, %v3666_v39  ;;  %vm6556_vm15 = vcmask 957440   ;;  %v6557_v39 = vld [vmem:[#allocation45_spill] sm:$0xff] }
 0x1c9   : > { %3260 = vmatmul.msk.f32.vlgmr.msrb.gmra.mxu2 %vm6343_vm6, %v5269_v55  ;;  %v539_v63 = vsel %vm6551_vm1, %v6550_v56, %v3411_v33  ;;  %v1291_v19 = vsel %vm1286_vm14, %v6554_v54, %v6553_v3  ;;  %v492_v47 = vsel %vm6556_vm15, %v6555_v23, %v3396_v2  ;;  %v6558_v5 = vunpack.i.h.bf16 %v6557_v39  ;;  %v6562_v33 = vld [vmem:[#allocation51_spill] sm:$0xff] }
 0x1ca   : > { %1922 = vmatpush.msra.mxu2 %v634_v29  ;;  %1876 = vmatpush.msra.mxu3 %v6518_v28  ;;  %v6559_v22 = vunpack.i.l.bf16 %v6557_v39  ;;  %v6560_v61 = vunpack.i.l.bf16 %v6524_v36  ;;  %vm6561_vm1 = vcmask 965632   ;;  %v6563_v32 = vunpack.i.h.bf16 %v6562_v33 }
 0x1cb   : > { %1807 = vmatpush.msrb.mxu1 %v6519_v50  ;;  %v6564_v30 = vunpack.i.l.bf16 %v6562_v33  ;;  %v6565_v28 = vunpack.i.l.bf16 %v6529_v62  ;;  %vm6566_vm15 = vcmask 1031168   ;;  %v6570_v2 = vunpack.i.l.bf16 %v6537_v0 }
 0x1cc   : > { %1923 = vmatpush.msra.mxu2 %v587_v14  ;;  %1877 = vmatpush.msra.mxu3 %v6522_v26  ;;  %v1244_v13 = vsel %vm6345_vm13, %v6559_v22, %v6558_v5  ;;  %v445_v15 = vsel %vm6561_vm1, %v6560_v61, %v3381_v48  ;;  %v6568_v14 = vunpack.i.h.bf16 %v6567_v31  ;;  %v6569_v26 = vunpack.i.l.bf16 %v6567_v31  ;;  %v6572_v48 = vld [vmem:[#allocation52_spill] sm:$0xff] }
 0x1cd   : > { %1808 = vmatpush.msrb.mxu1 %v6525_v17  ;;  %v1197_v29 = vsel %vm6324_vm11, %v6564_v30, %v6563_v32  ;;  %v398_v50 = vsel %vm6566_vm15, %v6565_v28, %v3366_v4  ;;  %vm6571_vm1 = vcmask 1039360   ;;  %v6573_v17 = vunpack.i.h.bf16 %v6572_v48 }
 0x1ce   : > { %1924 = vmatpush.msra.mxu2 %v540_v34  ;;  %1878 = vmatpush.msra.mxu3 %v6528_v57  ;;  %v1150_v1 = vsel %vm6344_vm12, %v6569_v26, %v6568_v14  ;;  %v351_v36 = vsel %vm6571_vm1, %v6570_v2, %v3351_v12  ;;  %v6574_v42 = vunpack.i.l.bf16 %v6572_v48  ;;  %vm6575_vm11 = vcmask 48128   ;;  %v6576_v57 = vld [vmem:[#allocation42_spill] sm:$0xff] }
 0x1cf   : > { %1809 = vmatpush.msrb.mxu1 %v6530_v41  ;;  %v6577_v62 = vunpack.i.h.bf16 %v6576_v57  ;;  %v6578_v4 = vunpack.i.l.bf16 %v6576_v57  ;;  %vm6579_vm15 = vcmask 56320   ;;  %vm6643_vm12 = vcmask 130048  }
 0x1d0   : > { %1925 = vmatpush.msra.mxu2 %v493_v11  ;;  %1810 = vmatmul.f32.vlgmr.msrb.gmra.mxu1 %v6533_v58  ;;  %v1103_v34 = vsel %vm6575_vm11, %v6574_v42, %v6573_v17  ;;  %vm6591_vm11 = vmmov %vm6571_vm1 }
 0x1d1   : > { %1879 = vmatpush.msra.mxu3 %v774_v44  ;;  %1899 = vmatpush.msra.mxu1 %v1526_v46  ;;  %v1056_v41 = vsel %vm6579_vm15, %v6578_v4, %v6577_v62  ;;  %v5502_v46 = vld [vmem:[%s295_s7] sm:$0x3f]  ;;  %vm6593_vm15 = vmmov %vm6571_vm1  ;;  %s6624_s7 = smov 56  }
 0x1d2   : > { %1926 = vmatpush.msra.mxu2 %v446_v10  ;;  %v1963_v10 = vperm.slane %v5502_v46, 1 }
 0x1d3   : > { %1880 = vmatpush.msra.mxu3 %v727_v6  ;;  %1900 = vmatpush.msra.mxu1 %v1479_v37 }
 0x1d4   : > { %1927 = vmatpush.msra.mxu2 %v399_v9 }
 0x1d5   : > { %1881 = vmatpush.msra.mxu3 %v680_v53  ;;  %1901 = vmatpush.msra.mxu1 %v1432_v38 }
 0x1d6   : > { %1928 = vmatpush.msra.mxu2 %v352_v40 }
 0x1d7   : > { %1882 = vmatpush.msra.mxu3 %v633_v49  ;;  %1902 = vmatpush.msra.mxu1 %v1385_v60  ;;  %v1965_v60 = vperm.slane %v5502_v46, 3 }
 0x1d8   : > { %1929 = vmatpush.msra.mxu2 %v6547_v18 }
 0x1d9   : > { %1883 = vmatpush.msra.mxu3 %v586_v8  ;;  %1903 = vmatpush.msra.mxu1 %v1338_v7  ;;  %v1964_v8 = vperm.slane %v5502_v46, 2 }
 0x1da   : > { %1930 = vmatmul.f32.vlgmr.msra.gmra.mxu2 %v6533_v58 }
 0x1db   : > { %1884 = vmatpush.msra.mxu3 %v539_v63  ;;  %1904 = vmatpush.msra.mxu1 %v1291_v19 }
 0x1dd   : > { %1885 = vmatpush.msra.mxu3 %v492_v47  ;;  %1905 = vmatpush.msra.mxu1 %v1244_v13  ;;  %v1966_v47 = vperm.slane %v5502_v46, 4 }
 0x1df   : > { %1886 = vmatpush.msra.mxu3 %v445_v15  ;;  %1906 = vmatpush.msra.mxu1 %v1197_v29 }
 0x1e1   : > { %1887 = vmatpush.msra.mxu3 %v398_v50  ;;  %1907 = vmatpush.msra.mxu1 %v1150_v1 }
 0x1e3   : > { %1888 = vmatpush.msra.mxu3 %v351_v36  ;;  %1908 = vmatpush.msra.mxu1 %v1103_v34 }
 0x1e5   : > { %1889 = vmatpush.msra.mxu3 %v6580_v43  ;;  %1909 = vmatpush.msra.mxu1 %v1056_v41 }
 0x1e6   : > { %1890 = vmatmul.f32.vlgmr.msra.gmra.mxu3 %v6533_v58  ;;  %3261 = vmatmul.msk.f32.vlgmr.msra.gmra.mxu1 %vm6343_vm6, %v5269_v55  ;;  %v1731_v11 = vpop.f32.mrf.mxu0  ;;  %v1962_v55 = vperm.slane %v5502_v46, 0 }
 0x1ec   : > { %v1771_v44 = vpop.f32.mrf.mxu2 }
 0x1ee   : > { %v1851_v24 = vpop.f32.mrf.mxu0 }
 0x215   : > { %v5495_v52 = vpop.permute.xlu2 %1707 }
 0x216   : > { %v1732_v20 = vadd.f32 %v1731_v11, %v5495_v52  ;;  %v1772_v16 = vadd.f32 %v1771_v44, %v5495_v52  ;;  %v1852_v53 = vadd.f32 %v1851_v24, %v5495_v52 }
 0x232   : > { %v1751_v0 = vpop.f32.mrf.mxu1  ;;  %v1791_v58 = vpop.f32.mrf.mxu3 }
 0x233   : > { %v1752_v12 = vadd.f32 %v1751_v0, %v1732_v20  ;;  %v1792_v25 = vadd.f32 %v1791_v58, %v1772_v16 }
 0x235   : > { %v1954_v35 = vmax.f32 %v1752_v12, 0.0  ;;  %v1955_v6 = vmax.f32 %v1792_v25, 0.0 }
 0x237   : > { %v5506_v37 = vmul.f32 %v1962_v55, %v1954_v35  ;;  %v5508_v45 = vmul.f32 %v1963_v10, %v1955_v6  ;;  %v1967_v6 = vperm.slane %v5502_v46, 5 }
 0x239   : > { %v5512_v9 = vpack.i.bf16 %v5508_v45, %v5506_v37 }
 0x23a   : > { %v1951_v44 = vpop.f32.mrf.mxu0 }
 0x23b   : > { %3729 = vrot.lane.b32.xlu0 %v5512_v9, %s4029_s12 }
 0x243   : > { %3734 = vrot.lane.b32.xlu0 %v5512_v9, %s4030_s13 }
 0x248   : > { %v1831_v40 = vpop.f32.mrf.mxu3 }
 0x24b   : > { %3739 = vrot.lane.b32.xlu0 %v5512_v9, %s4031_s14 }
 0x24c   : > { %v1871_v38 = vpop.f32.mrf.mxu2 }
 0x24d   : > { %v1811_v59 = vpop.f32.mrf.mxu1  ;;  %v1872_v21 = vadd.f32 %v1871_v38, %v1852_v53 }
 0x24e   : > { %v1812_v49 = vadd.f32 %v1811_v59, %v5495_v52 }
 0x24f   : > { %v1957_v18 = vmax.f32 %v1872_v21, 0.0 }
 0x250   : > { %v1832_v51 = vadd.f32 %v1831_v40, %v1812_v49 }
 0x251   : > { %v5524_v56 = vmul.f32 %v1965_v60, %v1957_v18 }
 0x252   : > { %v1956_v7 = vmax.f32 %v1832_v51, 0.0 }
 0x253   : > { %6581 = vst [vmem:[#allocation34_spill] sm:$0xff] %v5524_v56  ;;  %3744 = vrot.lane.b32.xlu0 %v5512_v9, %s4032_s15 }
 0x254   : > { %v5526_v63 = vmul.f32 %v1964_v8, %v1956_v7 }
 0x256   : > { %6582 = vst [vmem:[#allocation41_spill] sm:$0xff] %v5526_v63  ;;  %v3748_v27 = vpack.i.bf16 %v5524_v56, %v5526_v63  ;;  %v5591_v13 = vpack.i.bf16 %v5526_v63, %v5508_v45 }
 0x258   : > { %3749 = vrot.lane.b32.xlu1 %v3748_v27, %s4029_s12 }
 0x25b   : > { %3769 = vrot.lane.b32.xlu0 %v5512_v9, %s4033_s16 }
 0x25d   : > { %v1931_v48 = vpop.f32.mrf.mxu2 }
 0x25e   : > { %v1932_v43 = vadd.f32 %v1931_v48, %v5495_v52 }
 0x260   : > { %3754 = vrot.lane.b32.xlu1 %v3748_v27, %s4030_s13  ;;  %v1952_v20 = vadd.f32 %v1951_v44, %v1932_v43 }
 0x262   : > { %v1959_v35 = vmax.f32 %v1952_v20, 0.0 }
 0x263   : > { %3779 = vrot.lane.b32.xlu0 %v5512_v9, %s4034_s17  ;;  %v1911_v54 = vpop.f32.mrf.mxu1 }
 0x264   : > { %v5679_v53 = vmul.f32 %v1967_v6, %v1959_v35 }
 0x268   : > { %3759 = vrot.lane.b32.xlu1 %v3748_v27, %s4031_s14 }
 0x269   : > { %v1891_v3 = vpop.f32.mrf.mxu3 }
 0x26a   : > { %v1892_v19 = vadd.f32 %v1891_v3, %v5495_v52 }
 0x26b   : > { %3789 = vrot.lane.b32.xlu0 %v5512_v9, %s4035_s18 }
 0x26c   : > { %v1912_v23 = vadd.f32 %v1911_v54, %v1892_v19 }
 0x26e   : > { %v1958_v39 = vmax.f32 %v1912_v23, 0.0 }
 0x270   : > { %v5543_v5 = vmul.f32 %v1966_v47, %v1958_v39  ;;  %3764 = vrot.lane.b32.xlu1 %v3748_v27, %s4032_s15 }
 0x272   : > { %2017 = vrot.lane.b32.xlu2 %v5543_v5, %s4029_s12  ;;  %s6584_s12 = smov 17   ;;  %v5602_v15 = vpack.i.bf16 %v5543_v5, %v5524_v56 }
 0x273   : > { %3799 = vrot.lane.b32.xlu0 %v5512_v9, %s4036_s19 }
 0x278   : > { %3774 = vrot.lane.b32.xlu1 %v3748_v27, %s4033_s16 }
 0x27a   : > { %2049 = vrot.lane.b32.xlu2 %v5543_v5, %s4030_s13  ;;  %s6585_s13 = smov 16  }
 0x27b   : > { %3809 = vrot.lane.b32.xlu0 %v5512_v9, %s4037_s20 }
 0x280   : > { %3784 = vrot.lane.b32.xlu1 %v3748_v27, %s4034_s17 }
 0x282   : > { %2081 = vrot.lane.b32.xlu2 %v5543_v5, %s4031_s14  ;;  %s6586_s14 = smov 8  }
 0x283   : > { %3819 = vrot.lane.b32.xlu0 %v5512_v9, %s4038_s29 }
 0x288   : > { %3794 = vrot.lane.b32.xlu1 %v3748_v27, %s4035_s18 }
 0x28a   : > { %2113 = vrot.lane.b32.xlu2 %v5543_v5, %s4032_s15  ;;  %s6587_s15 = smov 34  }
 0x28b   : > { %3829 = vrot.lane.b32.xlu0 %v5512_v9, %s4039_s30 }
 0x290   : > { %3804 = vrot.lane.b32.xlu1 %v3748_v27, %s4036_s19 }
 0x292   : > { %2145 = vrot.lane.b32.xlu2 %v5543_v5, %s4033_s16  ;;  %s6588_s16 = smov 35  }
 0x293   : > { %3839 = vrot.lane.b32.xlu0 %v5512_v9, %s6583_s28 }
 0x298   : > { %3814 = vrot.lane.b32.xlu1 %v3748_v27, %s4037_s20 }
 0x29a   : > { %2177 = vrot.lane.b32.xlu2 %v5543_v5, %s4034_s17  ;;  %s6589_s17 = smov 44  }
 0x29b   : > { %3849 = vrot.lane.b32.xlu0 %v5512_v9, %s6584_s12 }
 0x2a0   : > { %3824 = vrot.lane.b32.xlu1 %v3748_v27, %s4038_s29 }
 0x2a2   : > { %2209 = vrot.lane.b32.xlu2 %v5543_v5, %s4035_s18  ;;  %s6590_s18 = smov 45  }
 0x2a3   : > { %3859 = vrot.lane.b32.xlu0 %v5512_v9, %s6585_s13 }
 0x2a8   : > { %3834 = vrot.lane.b32.xlu1 %v3748_v27, %s4039_s30 }
 0x2aa   : > { %2241 = vrot.lane.b32.xlu2 %v5543_v5, %s4036_s19  ;;  %s6595_s19 = smov 54  }
 0x2ab   : > { %3874 = vrot.lane.b32.xlu0 %v3748_v27, %s6586_s14 }
 0x2ad   : > { %v5584_v22 = vpop.permute.xlu0 %3729 }
 0x2ae   : > { %v6329_v29 = vunpack.i.h.bf16 %v5584_v22 }
 0x2b0   : > { %3844 = vrot.lane.b32.xlu1 %v3748_v27, %s6583_s28 }
 0x2b2   : > { %2273 = vrot.lane.b32.xlu2 %v5543_v5, %s4037_s20  ;;  %s6601_s20 = smov 36  }
 0x2b3   : > { %3879 = vrot.lane.b32.xlu0 %v5591_v13, %s6587_s15 }
 0x2b5   : > { %v5595_v61 = vpop.permute.xlu0 %3734 }
 0x2b6   : > { %v6330_v17 = vunpack.i.h.bf16 %v5595_v61 }
 0x2b8   : > { %3854 = vrot.lane.b32.xlu1 %v3748_v27, %s6584_s12 }
 0x2ba   : > { %2305 = vrot.lane.b32.xlu2 %v5543_v5, %s4038_s29  ;;  %s6602_s29 = smov 55  }
 0x2bb   : > { %3894 = vrot.lane.b32.xlu0 %v5602_v15, %s6588_s16 }
 0x2bd   : > { %v5606_v33 = vpop.permute.xlu0 %3739 }
 0x2be   : > { %v6331_v0 = vunpack.i.h.bf16 %v5606_v33 }
 0x2c0   : > { %3864 = vrot.lane.b32.xlu1 %v3748_v27, %s6585_s13 }
 0x2c2   : > { %2337 = vrot.lane.b32.xlu2 %v5543_v5, %s4039_s30  ;;  %s6613_s30 = smov 46  }
 0x2c3   : > { %3909 = vrot.lane.b32.xlu0 %v5591_v13, %s6589_s17 }
 0x2c5   : > { %v5613_v32 = vpop.permute.xlu0 %3744 }
 0x2c6   : > { %v6332_v59 = vunpack.i.h.bf16 %v5613_v32 }
 0x2c8   : > { %2465 = vrot.lane.b32.xlu1 %v5543_v5, %s6586_s14 }
 0x2ca   : > { %2369 = vrot.lane.b32.xlu2 %v5543_v5, %s6583_s28  ;;  %v3750_v30 = vpop.permute.xlu1 %3749 }
 0x2cb   : > { %v3752_v28 = vunpack.i.h.bf16 %v3750_v30  ;;  %v3751_v50 = vunpack.i.l.bf16 %v3750_v30  ;;  %3924 = vrot.lane.b32.xlu0 %v5602_v15, %s6590_s18 }
 0x2cc   : > { %v2018_v31 = vpop.permute.xlu2 %2017 }
 0x2cd   : > { %v5625_v14 = vsel %vm6591_vm11, %v6329_v29, %v3751_v50  ;;  %v5628_v26 = vsel %vm6571_vm1, %v3751_v50, %v3752_v28  ;;  %v5631_v1 = vsel %vm6593_vm15, %v3752_v28, %v2018_v31  ;;  %v5633_v2 = vpop.permute.xlu0 %3769  ;;  %vm6596_vm11 = vcmask 1031168  }
 0x2ce   : > { %6592 = vst [vmem:[#allocation40_spill] sm:$0xff] %v5628_v26  ;;  %vm6597_vm1 = vmmov %vm6596_vm11  ;;  %v6333_v7 = vunpack.i.h.bf16 %v5633_v2 }
 0x2cf   : > { %6594 = vst [vmem:[#allocation29_spill] sm:$0xff] %v5631_v1  ;;  %vm6599_vm15 = vmmov %vm6597_vm1 }
 0x2d0   : > { %3884 = vrot.lane.b32.xlu1 %v5602_v15, %s6587_s15 }
 0x2d2   : > { %2401 = vrot.lane.b32.xlu2 %v5543_v5, %s6584_s12  ;;  %v3755_v36 = vpop.permute.xlu1 %3754 }
 0x2d3   : > { %v3757_v42 = vunpack.i.h.bf16 %v3755_v36  ;;  %v3756_v34 = vunpack.i.l.bf16 %v3755_v36  ;;  %3939 = vrot.lane.b32.xlu0 %v5591_v13, %s6595_s19 }
 0x2d4   : > { %v2050_v57 = vpop.permute.xlu2 %2049 }
 0x2d5   : > { %v5645_v62 = vsel %vm6596_vm11, %v6330_v17, %v3756_v34  ;;  %v5648_v4 = vsel %vm6597_vm1, %v3756_v34, %v3757_v42  ;;  %v5651_v41 = vsel %vm6599_vm15, %v3757_v42, %v2050_v57  ;;  %v5654_v11 = vpop.permute.xlu0 %3779  ;;  %vm6603_vm11 = vcmask 965632  }
 0x2d6   : > { %6598 = vst [vmem:[#allocation31_spill] sm:$0xff] %v5648_v4  ;;  %vm6604_vm1 = vmmov %vm6603_vm11  ;;  %v6334_v28 = vunpack.i.h.bf16 %v5654_v11 }
 0x2d7   : > { %6600 = vst [vmem:[#allocation47_spill] sm:$0xff] %v5651_v41  ;;  %vm6606_vm15 = vmmov %vm6604_vm1 }
 0x2d8   : > { %3899 = vrot.lane.b32.xlu1 %v5591_v13, %s6601_s20 }
 0x2da   : > { %3869 = vrot.lane.b32.xlu2 %v5512_v9, %s6586_s14  ;;  %v3760_v16 = vpop.permute.xlu1 %3759 }
 0x2db   : > { %v3762_v58 = vunpack.i.h.bf16 %v3760_v16  ;;  %v3761_v12 = vunpack.i.l.bf16 %v3760_v16  ;;  %3954 = vrot.lane.b32.xlu0 %v5602_v15, %s6602_s29 }
 0x2dc   : > { %v2082_v55 = vpop.permute.xlu2 %2081 }
 0x2dd   : > { %v5666_v52 = vsel %vm6603_vm11, %v6331_v0, %v3761_v12  ;;  %v5669_v25 = vsel %vm6604_vm1, %v3761_v12, %v3762_v58  ;;  %v5672_v10 = vsel %vm6606_vm15, %v3762_v58, %v2082_v55  ;;  %v5675_v24 = vpop.permute.xlu0 %3789  ;;  %vm6608_vm11 = vcmask 957440  }
 0x2de   : > { %6605 = vst [vmem:[#allocation30_spill] sm:$0xff] %v5669_v25  ;;  %vm6609_vm1 = vmmov %vm6608_vm11  ;;  %v6335_v44 = vunpack.i.h.bf16 %v5675_v24 }
 0x2df   : > { %6607 = vst [vmem:[#allocation44_spill] sm:$0xff] %v5672_v10  ;;  %vm6611_vm15 = vmmov %vm6609_vm1 }
 0x2e0   : > { %3914 = vrot.lane.b32.xlu1 %v5602_v15, %s6589_s17 }
 0x2e2   : > { %2433 = vrot.lane.b32.xlu2 %v5543_v5, %s6585_s13  ;;  %v3765_v38 = vpop.permute.xlu1 %3764 }
 0x2e3   : > { %v3767_v40 = vunpack.i.h.bf16 %v3765_v38  ;;  %v3766_v21 = vunpack.i.l.bf16 %v3765_v38  ;;  %2817 = vrot.lane.b32.xlu0 %v5679_v53, %s6587_s15 }
 0x2e4   : > { %v2114_v49 = vpop.permute.xlu2 %2113 }
 0x2e5   : > { %v5689_v46 = vsel %vm6608_vm11, %v6332_v59, %v3766_v21  ;;  %v5692_v60 = vsel %vm6609_vm1, %v3766_v21, %v3767_v40  ;;  %v5695_v18 = vsel %vm6611_vm15, %v3767_v40, %v2114_v49  ;;  %v5697_v51 = vpop.permute.xlu0 %3799  ;;  %vm6614_vm11 = vcmask 949248  }
 0x2e6   : > { %6610 = vst [vmem:[#allocation21_spill] sm:$0xff] %v5692_v60  ;;  %vm6615_vm1 = vmmov %vm6614_vm11  ;;  %v3973_v40 = vpack.i.bf16 %v5679_v53, %v5543_v5  ;;  %v6336_v21 = vunpack.i.h.bf16 %v5697_v51 }
 0x2e7   : > { %6612 = vst [vmem:[#allocation38_spill] sm:$0xff] %v5695_v18  ;;  %vm6617_vm15 = vmmov %vm6615_vm1 }
 0x2e8   : > { %3929 = vrot.lane.b32.xlu1 %v5591_v13, %s6613_s30 }
 0x2ea   : > { %3889 = vrot.lane.b32.xlu2 %v5591_v13, %s6588_s16  ;;  %v3775_v8 = vpop.permute.xlu1 %3774 }
 0x2eb   : > { %v3777_v27 = vunpack.i.h.bf16 %v3775_v8  ;;  %v3776_v3 = vunpack.i.l.bf16 %v3775_v8  ;;  %2785 = vrot.lane.b32.xlu0 %v5679_v53, %s6588_s16 }
 0x2ec   : > { %v2146_v54 = vpop.permute.xlu2 %2145 }
 0x2ed   : > { %v5709_v19 = vsel %vm6614_vm11, %v6333_v7, %v3776_v3  ;;  %v5712_v23 = vsel %vm6615_vm1, %v3776_v3, %v3777_v27  ;;  %v5715_v47 = vsel %vm6617_vm15, %v3777_v27, %v2146_v54  ;;  %v5717_v39 = vpop.permute.xlu0 %3809  ;;  %vm6619_vm11 = vcmask 883712  }
 0x2ee   : > { %6616 = vst [vmem:[#allocation25_spill] sm:$0xff] %v5712_v23  ;;  %vm6620_vm1 = vmmov %vm6619_vm11 }
 0x2ef   : > { %6618 = vst [vmem:[#allocation35_spill] sm:$0xff] %v5715_v47  ;;  %vm6622_vm15 = vmmov %vm6620_vm1 }
 0x2f0   : > { %3944 = vrot.lane.b32.xlu1 %v5602_v15, %s6595_s19 }
 0x2f2   : > { %3904 = vrot.lane.b32.xlu2 %v5602_v15, %s6601_s20  ;;  %v3785_v30 = vpop.permute.xlu1 %3784 }
 0x2f3   : > { %v3787_v50 = vunpack.i.h.bf16 %v3785_v30  ;;  %v3786_v31 = vunpack.i.l.bf16 %v3785_v30  ;;  %2753 = vrot.lane.b32.xlu0 %v5679_v53, %s6601_s20 }
 0x2f4   : > { %v2178_v36 = vpop.permute.xlu2 %2177 }
 0x2f5   : > { %v5729_v48 = vsel %vm6619_vm11, %v6334_v28, %v3786_v31  ;;  %v5732_v42 = vsel %vm6620_vm1, %v3786_v31, %v3787_v50  ;;  %v5735_v34 = vsel %vm6622_vm15, %v3787_v50, %v2178_v36  ;;  %v5737_v57 = vpop.permute.xlu0 %3819  ;;  %vm6628_vm11 = vcmask 211968  }
 0x2f6   : > { %6621 = vst [vmem:[#allocation28_spill] sm:$0xff] %v5732_v42  ;;  %vm6629_vm1 = vmmov %vm6628_vm11  ;;  %vm6630_vm15 = vcmask 64512  }
 0x2f7   : > { %6623 = vst [vmem:[#allocation23_spill] sm:$0xff] %v5735_v34 }
 0x2f8   : > { %3959 = vrot.lane.b32.xlu1 %v5591_v13, %s6624_s7 }
 0x2fa   : > { %3919 = vrot.lane.b32.xlu2 %v5591_v13, %s6590_s18  ;;  %v3795_v43 = vpop.permute.xlu1 %3794 }
 0x2fb   : > { %v3797_v20 = vunpack.i.h.bf16 %v3795_v43  ;;  %v3796_v16 = vunpack.i.l.bf16 %v3795_v43  ;;  %2657 = vrot.lane.b32.xlu0 %v5679_v53, %s6613_s30 }
 0x2fc   : > { %v2210_v58 = vpop.permute.xlu2 %2209 }
 0x2fd   : > { %v5749_v12 = vsel %vm628_vm7, %v6335_v44, %v3796_v16  ;;  %v5752_v55 = vsel %vm628_vm7, %v3796_v16, %v3797_v20  ;;  %v5755_v35 = vsel %vm628_vm7, %v3797_v20, %v2210_v58  ;;  %v5757_v6 = vpop.permute.xlu0 %3829 }
 0x2fe   : > { %6625 = vst [vmem:[#allocation32_spill] sm:$0xff] %v5755_v35 }
 0x300   : > { %3964 = vrot.lane.b32.xlu1 %v5512_v9, %s6626_s8 }
 0x302   : > { %3934 = vrot.lane.b32.xlu2 %v5602_v15, %s6613_s30  ;;  %v3805_v38 = vpop.permute.xlu1 %3804 }
 0x303   : > { %v3807_v49 = vunpack.i.h.bf16 %v3805_v38  ;;  %v3806_v8 = vunpack.i.l.bf16 %v3805_v38  ;;  %3974 = vrot.lane.b32.xlu0 %v3973_v40, %s6624_s7 }
 0x304   : > { %v2242_v27 = vpop.permute.xlu2 %2241 }
 0x305   : > { %v5770_v3 = vsel %vm675_vm5, %v6336_v21, %v3806_v8  ;;  %v5773_v54 = vsel %vm675_vm5, %v3806_v8, %v3807_v49  ;;  %v5776_v30 = vsel %vm675_vm5, %v3807_v49, %v2242_v27  ;;  %v5778_v50 = vpop.permute.xlu0 %3839 }
 0x308   : > { %3969 = vrot.lane.b32.xlu1 %v5512_v9, %s6627_s9 }
 0x30a   : > { %3949 = vrot.lane.b32.xlu2 %v5591_v13, %s6602_s29  ;;  %v5784_v5 = vpop.permute.xlu1 %3814 }
 0x30b   : > { %v3817_v31 = vunpack.i.h.bf16 %v5784_v5  ;;  %v6337_v36 = vunpack.i.l.bf16 %v5784_v5 }
 0x30c   : > { %v2274_v43 = vpop.permute.xlu2 %2273 }
 0x30d   : > { %v5791_v20 = vsel %vm722_vm9, %v6337_v36, %v3817_v31  ;;  %v5794_v16 = vsel %vm722_vm9, %v3817_v31, %v2274_v43  ;;  %v5796_v58 = vpop.permute.xlu0 %3849 }
 0x310   : > { %2721 = vrot.lane.b32.xlu1 %v5679_v53, %s6589_s17 }
 0x312   : > { %2557 = vrot.lane.b32.xlu2 %v5524_v56, %s6624_s7  ;;  %v5802_v9 = vpop.permute.xlu1 %3824 }
 0x313   : > { %v3827_v13 = vunpack.i.h.bf16 %v5802_v9  ;;  %v6338_v38 = vunpack.i.l.bf16 %v5802_v9 }
 0x314   : > { %v2306_v40 = vpop.permute.xlu2 %2305 }
 0x315   : > { %v5809_v49 = vsel %vm769_vm10, %v6338_v38, %v3827_v13  ;;  %v5812_v8 = vsel %vm769_vm10, %v3827_v13, %v2306_v40  ;;  %v3860_v27 = vpop.permute.xlu0 %3859 }
 0x316   : > { %v3862_v25 = vunpack.i.h.bf16 %v3860_v27 }
 0x318   : > { %2625 = vrot.lane.b32.xlu1 %v5679_v53, %s6595_s19 }
 0x31a   : > { %2525 = vrot.lane.b32.xlu2 %v5526_v63, %s6626_s8  ;;  %v5818_v31 = vpop.permute.xlu1 %3834 }
 0x31b   : > { %v3837_v43 = vunpack.i.h.bf16 %v5818_v31  ;;  %v6339_v29 = vunpack.i.l.bf16 %v5818_v31 }
 0x31c   : > { %v2338_v17 = vpop.permute.xlu2 %2337 }
 0x31d   : > { %v5825_v0 = vsel %vm6628_vm11, %v6339_v29, %v3837_v43  ;;  %v5828_v13 = vsel %vm6629_vm1, %v3837_v43, %v2338_v17  ;;  %v3875_v40 = vpop.permute.xlu0 %3874  ;;  %vm6631_vm11 = vcmask 146432  }
 0x31e   : > { %v3877_v59 = vunpack.i.h.bf16 %v3875_v40  ;;  %v3876_v7 = vunpack.i.l.bf16 %v3875_v40  ;;  %vm6632_vm1 = vmmov %vm6631_vm11 }
 0x320   : > { %3979 = vrot.lane.b32.xlu1 %v5602_v15, %s6626_s8  ;;  %v5833_v28 = vsel %vm6630_vm15, %v3876_v7, %v3877_v59  ;;  %vm6633_vm15 = vcmask 138240  }
 0x322   : > { %2493 = vrot.lane.b32.xlu2 %v5526_v63, %s6627_s9  ;;  %v3845_v44 = vpop.permute.xlu1 %3844 }
 0x323   : > { %v3847_v21 = vunpack.i.h.bf16 %v3845_v44  ;;  %v3846_v36 = vunpack.i.l.bf16 %v3845_v44 }
 0x324   : > { %v2370_v38 = vpop.permute.xlu2 %2369 }
 0x325   : > { %v5838_v29 = vsel %vm6631_vm11, %v3846_v36, %v3847_v21  ;;  %v5841_v17 = vsel %vm6632_vm1, %v3847_v21, %v2370_v38  ;;  %v5843_v43 = vpop.permute.xlu0 %3879  ;;  %vm6634_vm11 = vmmov %vm6633_vm15  ;;  %vm6635_vm1 = vcmask 130048  }
 0x326   : > { %v6342_v40 = vunpack.i.h.bf16 %v5843_v43  ;;  %v3881_v56 = vunpack.i.l.bf16 %v5843_v43  ;;  %vm6638_vm6 = vmmov %vm6635_vm1 }
 0x328   : > { %v2819_v63 = vsel %vm1521_vm8, %v3881_v56, %v6342_v40 }
 0x329   : > { %2975 = vmatpush.msrb.mxu3 %v2819_v63  ;;  %v3861_v63 = vunpack.i.l.bf16 %v3860_v27  ;;  %v3841_v27 = vunpack.i.l.bf16 %v5778_v50 }
 0x32a   : > { %2689 = vrot.lane.b32.xlu2 %v5679_v53, %s6590_s18  ;;  %v3855_v44 = vpop.permute.xlu1 %3854 }
 0x32b   : > { %v3857_v1 = vunpack.i.h.bf16 %v3855_v44  ;;  %v3856_v26 = vunpack.i.l.bf16 %v3855_v44 }
 0x32c   : > { %v2402_v41 = vpop.permute.xlu2 %2401 }
 0x32d   : > { %v5853_v21 = vsel %vm6633_vm15, %v3856_v26, %v3857_v1  ;;  %v5856_v38 = vsel %vm6634_vm11, %v3857_v1, %v2402_v41  ;;  %v5858_v4 = vpop.permute.xlu0 %3894  ;;  %v3852_v1 = vunpack.i.h.bf16 %v5796_v58  ;;  %v3851_v41 = vunpack.i.l.bf16 %v5796_v58 }
 0x32e   : > { %vm6636_vm15 = vcmask 64512   ;;  %v3832_v58 = vunpack.i.h.bf16 %v5757_v6 }
 0x32f   : > { %vm6637_vm11 = vmmov %vm6636_vm15 }
 0x332   : > { %2593 = vrot.lane.b32.xlu2 %v5679_v53, %s6602_s29  ;;  %v3865_v56 = vpop.permute.xlu1 %3864 }
 0x333   : > { %v3867_v40 = vunpack.i.h.bf16 %v3865_v56  ;;  %v3866_v10 = vunpack.i.l.bf16 %v3865_v56  ;;  %v3842_v56 = vunpack.i.h.bf16 %v5778_v50 }
 0x334   : > { %v3870_v18 = vpop.permute.xlu2 %3869 }
 0x335   : > { %v3872_v60 = vunpack.i.h.bf16 %v3870_v18  ;;  %v3871_v44 = vunpack.i.l.bf16 %v3870_v18  ;;  %v5863_v47 = vsel %vm6635_vm1, %v3866_v10, %v3867_v40  ;;  %v5865_v23 = vpop.permute.xlu0 %3909  ;;  %v2435_v18 = vsel %vm6638_vm6, %v3861_v63, %v3862_v25 }
 0x336   : > { %v2436_v42 = vsel %vm6635_vm1, %v3862_v25, %v3866_v10  ;;  %v3821_v63 = vunpack.i.l.bf16 %v5737_v57  ;;  %vm6642_vm1 = vcmask 146432  }
 0x337   : > { %v2467_v34 = vsel %vm6636_vm15, %v3871_v44, %v3872_v60  ;;  %v2468_v53 = vsel %vm6637_vm11, %v3872_v60, %v3876_v7  ;;  %v3831_v44 = vunpack.i.l.bf16 %v5757_v6  ;;  %vm6639_vm15 = vmmov %vm6637_vm11  ;;  %vm6640_vm11 = vcmask 138240  }
 0x338   : > { %2950 = vmatpush.msrb.mxu1 %v2467_v34  ;;  %2990 = vmatpush.msrb.mxu0 %v2468_v53  ;;  %v2403_v7 = vsel %vm6640_vm11, %v3851_v41, %v3852_v1  ;;  %vm6641_vm6 = vmmov %vm6640_vm11  ;;  %v2371_v25 = vsel %vm6642_vm1, %v3841_v27, %v3842_v56  ;;  %v3811_v6 = vunpack.i.l.bf16 %v5717_v39 }
 0x339   : > { %v2404_v50 = vsel %vm6641_vm6, %v3852_v1, %v3856_v26  ;;  %vm6644_vm13 = vmmov %vm6642_vm1  ;;  %v6646_v1 = vunpack.i.l.bf16 %v5818_v31  ;;  %v3781_v31 = vunpack.i.l.bf16 %v5654_v11  ;;  %vm6665_vm6 = vcmask 441344  }
 0x33a   : > { %3984 = vrot.lane.b32.xlu2 %v5602_v15, %s6627_s9  ;;  %2951 = vmatpush.msrb.mxu1 %v2435_v18  ;;  %v2466_v35 = vpop.permute.xlu1 %2465  ;;  %v3822_v15 = vunpack.i.h.bf16 %v5737_v57  ;;  %v3801_v57 = vunpack.i.l.bf16 %v5697_v51  ;;  %vm6666_vm1 = vmmov %vm6665_vm6 }
 0x33b   : > { %2991 = vmatpush.msrb.mxu0 %v2436_v42  ;;  %v5880_v60 = vsel %vm6639_vm15, %v3877_v59, %v2466_v35  ;;  %v2372_v59 = vsel %vm6644_vm13, %v3842_v56, %v3846_v36  ;;  %v3812_v35 = vunpack.i.h.bf16 %v5717_v39  ;;  %vm6645_vm15 = vcmask 211968  }
 0x33c   : > { %v2434_v34 = vpop.permute.xlu2 %2433  ;;  %2952 = vmatpush.msrb.mxu1 %v2403_v7  ;;  %v2339_v26 = vsel %vm6645_vm15, %v3831_v44, %v3832_v58  ;;  %vm6647_vm11 = vmmov %vm6645_vm15  ;;  %v2307_v41 = vsel %vm769_vm10, %v3821_v63, %v3822_v15  ;;  %v6648_v36 = vunpack.i.l.bf16 %v5802_v9  ;;  %v3791_v39 = vunpack.i.l.bf16 %v5675_v24 }
 0x33d   : > { %2992 = vmatpush.msrb.mxu0 %v2404_v50  ;;  %v5888_v10 = vsel %vm6643_vm12, %v3867_v40, %v2434_v34  ;;  %v5891_v42 = vpop.permute.xlu0 %3924  ;;  %v2340_v40 = vsel %vm6647_vm11, %v3832_v58, %v6646_v1  ;;  %v2275_v18 = vsel %vm722_vm9, %v3811_v6, %v3812_v35  ;;  %v6649_v44 = vunpack.i.l.bf16 %v5784_v5 }
 0x33e   : > { %2953 = vmatpush.msrb.mxu1 %v2371_v25  ;;  %v2308_v53 = vsel %vm769_vm10, %v3822_v15, %v6648_v36  ;;  %v6650_v9 = vunpack.i.h.bf16 %v5697_v51  ;;  %v3896_v50 = vunpack.i.l.bf16 %v5858_v4  ;;  %v6651_v25 = vunpack.i.h.bf16 %v5843_v43 }
 0x33f   : > { %2993 = vmatpush.msrb.mxu0 %v2372_v59  ;;  %v2276_v7 = vsel %vm722_vm9, %v3812_v35, %v6649_v44  ;;  %v3771_v35 = vunpack.i.l.bf16 %v5633_v2  ;;  %v6652_v51 = vunpack.i.h.bf16 %v5675_v24  ;;  %v6653_v1 = vunpack.i.h.bf16 %v5654_v11 }
 0x340   : > { %2954 = vmatpush.msrb.mxu1 %v2339_v26  ;;  %v2243_v34 = vsel %vm675_vm5, %v3801_v57, %v6650_v9  ;;  %v3746_v57 = vunpack.i.l.bf16 %v5613_v32  ;;  %vm6654_vm5 = vcmask 883712   ;;  %v3736_v11 = vunpack.i.l.bf16 %v5595_v61 }
 0x341   : > { %2994 = vmatpush.msrb.mxu0 %v2340_v40  ;;  %v2211_v6 = vsel %vm628_vm7, %v3791_v39, %v6652_v51  ;;  %v3741_v40 = vunpack.i.l.bf16 %v5606_v33  ;;  %vm6656_vm7 = vcmask 949248   ;;  %vm6658_vm9 = vcmask 957440  }
 0x342   : > { %2955 = vmatpush.msrb.mxu1 %v2307_v41  ;;  %v5904_v56 = vpop.permute.xlu1 %3884  ;;  %v6659_v9 = vunpack.i.h.bf16 %v5606_v33  ;;  %vm6660_vm10 = vcmask 965632   ;;  %vm6662_vm13 = vcmask 1031168   ;;  %vm6664_vm12 = vcmask 1039360  }
 0x343   : > { %2995 = vmatpush.msrb.mxu0 %v2308_v53  ;;  %v3886_v27 = vunpack.i.l.bf16 %v5904_v56  ;;  %v6655_v53 = vunpack.i.h.bf16 %v5633_v2  ;;  %vm6668_vm15 = vcmask 449536  }
 0x344   : > { %v3890_v58 = vpop.permute.xlu2 %3889  ;;  %2956 = vmatpush.msrb.mxu1 %v2275_v18  ;;  %v3912_v18 = vunpack.i.h.bf16 %v5865_v23  ;;  %vm6669_vm11 = vmmov %vm6668_vm15 }
 0x345   : > { %v3892_v15 = vunpack.i.h.bf16 %v3890_v58  ;;  %v3891_v63 = vunpack.i.l.bf16 %v3890_v58  ;;  %2996 = vmatpush.msrb.mxu0 %v2276_v7  ;;  %v2820_v59 = vsel %vm1521_vm8, %v6651_v25, %v3886_v27  ;;  %v5922_v5 = vpop.permute.xlu0 %3939  ;;  %v2147_v39 = vsel %vm6656_vm7, %v3771_v35, %v6655_v53 }
 0x346   : > { %2957 = vmatpush.msrb.mxu1 %v2243_v34  ;;  %3015 = vmatpush.msrb.mxu2 %v2820_v59  ;;  %v2083_v34 = vsel %vm6660_vm10, %v3741_v40, %v6659_v9  ;;  %v3887_v25 = vunpack.i.h.bf16 %v5904_v56  ;;  %v6663_v59 = vunpack.i.h.bf16 %v5584_v22  ;;  %v3927_v56 = vunpack.i.h.bf16 %v5891_v42 }
 0x347   : > { %2997 = vmatpush.msrb.mxu0 %v5770_v3  ;;  %v2787_v26 = vsel %vm1474_vm0, %v3891_v63, %v3892_v15  ;;  %v2788_v43 = vsel %vm1474_vm0, %v3892_v15, %v3896_v50  ;;  %v2179_v3 = vsel %vm6654_vm5, %v3781_v31, %v6653_v1  ;;  %v6661_v15 = vunpack.i.h.bf16 %v5595_v61  ;;  %vm6670_vm5 = vmmov %vm6669_vm11 }
 0x348   : > { %2958 = vmatpush.msrb.mxu1 %v2211_v6  ;;  %2976 = vmatpush.msrb.mxu3 %v2787_v26  ;;  %v3926_v61 = vunpack.i.l.bf16 %v5891_v42  ;;  %v3942_v40 = vunpack.i.h.bf16 %v5922_v5  ;;  %vm6671_vm7 = vcmask 457728  }
 0x349   : > { %2998 = vmatpush.msrb.mxu0 %v5749_v12  ;;  %3016 = vmatpush.msrb.mxu2 %v2788_v43  ;;  %v3911_v12 = vunpack.i.l.bf16 %v5865_v23  ;;  %v3731_v23 = vunpack.i.l.bf16 %v5584_v22  ;;  %v2051_v63 = vsel %vm6662_vm13, %v3736_v11, %v6661_v15  ;;  %v2821_v22 = vsel %vm1521_vm8, %v3886_v27, %v3887_v25  ;;  %vm6675_vm13 = vmmov %vm6671_vm7 }
 0x34a   : > { %2959 = vmatpush.msrb.mxu1 %v2179_v3  ;;  %v3900_v24 = vpop.permute.xlu1 %3899 }
 0x34b   : > { %2999 = vmatpush.msrb.mxu0 %v5729_v48  ;;  %v3902_v41 = vunpack.i.h.bf16 %v3900_v24  ;;  %v3901_v36 = vunpack.i.l.bf16 %v3900_v24  ;;  %v6657_v48 = vunpack.i.h.bf16 %v5613_v32  ;;  %v2723_v32 = vsel %vm1380_vm4, %v3911_v12, %v3912_v18 }
 0x34c   : > { %v5945_v58 = vpop.permute.xlu2 %3904  ;;  %2960 = vmatpush.msrb.mxu1 %v2147_v39  ;;  %v2019_v35 = vsel %vm6664_vm12, %v3731_v23, %v6663_v59  ;;  %vm6676_vm12 = vcmask 56320  }
 0x34d   : > { %v3906_v31 = vunpack.i.l.bf16 %v5945_v58  ;;  %3000 = vmatpush.msrb.mxu0 %v5709_v19  ;;  %v2115_v44 = vsel %vm6658_vm9, %v3746_v57, %v6657_v48  ;;  %v2755_v2 = vsel %vm1427_vm3, %v3901_v36, %v3902_v41  ;;  %v5954_v7 = vpop.permute.xlu0 %3954  ;;  %vm6672_vm9 = vmmov %vm6671_vm7 }
 0x34e   : > { %2961 = vmatpush.msrb.mxu1 %v2115_v44  ;;  %2977 = vmatpush.msrb.mxu3 %v2755_v2 }
 0x34f   : > { %3001 = vmatpush.msrb.mxu0 %v5689_v46  ;;  %v2756_v19 = vsel %vm1427_vm3, %v3902_v41, %v3906_v31  ;;  %v3941_v41 = vunpack.i.l.bf16 %v5922_v5  ;;  %v2693_v5 = vsel %vm1333_vm2, %v3926_v61, %v3927_v56 }
 0x350   : > { %2962 = vmatpush.msrb.mxu1 %v2083_v34  ;;  %3017 = vmatpush.msrb.mxu2 %v2756_v19  ;;  %v3957_v34 = vunpack.i.h.bf16 %v5954_v7  ;;  %v3956_v19 = vunpack.i.l.bf16 %v5954_v7  ;;  %v6686_v7 = vld [vmem:[#allocation25_spill] sm:$0xff] }
 0x351   : > { %3002 = vmatpush.msrb.mxu0 %v5666_v52  ;;  %2978 = vmatpush.msrb.mxu3 %v2723_v32  ;;  %v3897_v52 = vunpack.i.h.bf16 %v5858_v4 }
 0x352   : > { %2963 = vmatpush.msrb.mxu1 %v2051_v63  ;;  %v5968_v46 = vpop.permute.xlu1 %3914 }
 0x353   : > { %3003 = vmatpush.msrb.mxu0 %v5645_v62  ;;  %v3916_v33 = vunpack.i.l.bf16 %v5968_v46  ;;  %v3907_v62 = vunpack.i.h.bf16 %v5945_v58  ;;  %v3917_v24 = vunpack.i.h.bf16 %v5968_v46  ;;  %v6685_v46 = vld [vmem:[#allocation23_spill] sm:$0xff] }
 0x354   : > { %v3920_v51 = vpop.permute.xlu2 %3919  ;;  %2964 = vmatpush.msrb.mxu1 %v2019_v35 }
 0x355   : > { %v3922_v6 = vunpack.i.h.bf16 %v3920_v51  ;;  %v3921_v26 = vunpack.i.l.bf16 %v3920_v51  ;;  %3004 = vmatpush.msrb.mxu0 %v5625_v14  ;;  %v2724_v43 = vsel %vm1380_vm4, %v3912_v18, %v3916_v33  ;;  %v2818_v57 = vpop.permute.xlu0 %2817  ;;  %v2757_v27 = vsel %vm1427_vm3, %v3906_v31, %v3907_v62 }
 0x356   : > { %2965 = vmatpush.msrb.mxu1 %v5506_v37  ;;  %3018 = vmatpush.msrb.mxu2 %v2724_v43  ;;  %v2822_v1 = vsel %vm1521_vm8, %v3887_v25, %v2818_v57  ;;  %v2789_v37 = vsel %vm1474_vm0, %v3896_v50, %v3897_v52  ;;  %v2725_v4 = vsel %vm1380_vm4, %v3916_v33, %v3917_v24 }
 0x357   : > { %3005 = vmatpush.msrb.mxu0 %v5508_v45  ;;  %v2691_v3 = vsel %vm1333_vm2, %v3921_v26, %v3922_v6  ;;  %v2692_v14 = vsel %vm1333_vm2, %v3922_v6, %v3926_v61  ;;  %v2627_v31 = vsel %vm6665_vm6, %v3941_v41, %v3942_v40  ;;  %v2597_v61 = vsel %vm6670_vm5, %v3956_v19, %v3957_v34  ;;  %vm6677_vm6 = vmmov %vm6676_vm12 }
 0x358   : > { %3055 = vmatpush.msra.mxu1 %v2821_v22  ;;  %2979 = vmatpush.msrb.mxu3 %v2691_v3 }
 0x359   : > { %3019 = vmatpush.msrb.mxu2 %v2692_v14  ;;  %3095 = vmatpush.msra.mxu0 %v2822_v1 }
 0x35a   : > { %3056 = vmatpush.msra.mxu1 %v2789_v37  ;;  %v3930_v45 = vpop.permute.xlu1 %3929 }
 0x35b   : > { %v3932_v36 = vunpack.i.h.bf16 %v3930_v45  ;;  %v3931_v53 = vunpack.i.l.bf16 %v3930_v45 }
 0x35c   : > { %3057 = vmatpush.msra.mxu1 %v2757_v27  ;;  %v5996_v39 = vpop.permute.xlu2 %3934 }
 0x35d   : > { %v3937_v50 = vunpack.i.h.bf16 %v5996_v39  ;;  %v3936_v18 = vunpack.i.l.bf16 %v5996_v39  ;;  %v2659_v12 = vsel %vm1286_vm14, %v3931_v53, %v3932_v36  ;;  %v2786_v58 = vpop.permute.xlu0 %2785 }
 0x35e   : > { %3058 = vmatpush.msra.mxu1 %v2725_v4  ;;  %2980 = vmatpush.msrb.mxu3 %v2659_v12  ;;  %v2790_v44 = vsel %vm1474_vm0, %v3897_v52, %v2786_v58  ;;  %vm6667_vm0 = vmmov %vm6666_vm1  ;;  %v6045_v4 = vld [vmem:[%s6167_s4] sm:$0xff] }
 0x35f   : > { %v2660_v11 = vsel %vm1286_vm14, %v3932_v36, %v3936_v18  ;;  %v2661_v48 = vsel %vm1286_vm14, %v3936_v18, %v3937_v50  ;;  %3096 = vmatpush.msra.mxu0 %v2790_v44  ;;  %2966 = vmatmul.f32.vlgmr.msrb.gmra.mxu1 %v6045_v4  ;;  %v1980_v44 = vld [vmem:[%s4134_s11 + $0x8] sm:$0xff] }
 0x360   : > { %3059 = vmatpush.msra.mxu1 %v2693_v5  ;;  %3020 = vmatpush.msrb.mxu2 %v2660_v11 }
 0x361   : > { %2981 = vmatpush.msrb.mxu3 %v2627_v31  ;;  %3006 = vmatmul.f32.vlgmr.msrb.gmra.mxu0 %v6045_v4 }
 0x362   : > { %3060 = vmatpush.msra.mxu1 %v2661_v48  ;;  %v6013_v2 = vpop.permute.xlu1 %3944  ;;  %v6057_v48 = vld [vmem:[%s6167_s4 + $0x8] sm:$0xff]  ;;  %3115 = vrot.lane.b32.xlu1 %v1980_v44, %s6587_s15 }
 0x363   : > { %v3947_v23 = vunpack.i.h.bf16 %v6013_v2  ;;  %v3946_v9 = vunpack.i.l.bf16 %v6013_v2  ;;  %v6688_v2 = vld [vmem:[#allocation21_spill] sm:$0xff] }
 0x364   : > { %v3950_v32 = vpop.permute.xlu2 %3949 }
 0x365   : > { %v3952_v15 = vunpack.i.h.bf16 %v3950_v32  ;;  %v3951_v63 = vunpack.i.l.bf16 %v3950_v32  ;;  %v2628_v25 = vsel %vm6666_vm1, %v3942_v40, %v3946_v9  ;;  %v2629_v33 = vsel %vm6667_vm0, %v3946_v9, %v3947_v23  ;;  %v2754_v59 = vpop.permute.xlu0 %2753  ;;  %v2941_v9 = vld [vmem:[%s6168_s5] sm:$0xff] }
 0x366   : > { %3021 = vmatpush.msrb.mxu2 %v2628_v25  ;;  %3061 = vmatpush.msra.mxu1 %v2629_v33  ;;  %v2758_v51 = vsel %vm1427_vm3, %v3907_v62, %v2754_v59  ;;  %vm6673_vm3 = vcmask 48128   ;;  %vm6678_vm1 = vcmask 719872   ;;  %v6693_v25 = vld [vmem:[#allocation44_spill] sm:$0xff] }
 0x367   : > { %v2595_v35 = vsel %vm6668_vm15, %v3951_v63, %v3952_v15  ;;  %v2596_v52 = vsel %vm6669_vm11, %v3952_v15, %v3956_v19  ;;  %3097 = vmatpush.msra.mxu0 %v2758_v51  ;;  %vm6674_vm10 = vmmov %vm6673_vm3  ;;  %v1981_v19 = vld [vmem:[%s4134_s11 + $0x10] sm:$0xff]  ;;  %2944 = vperm.xlu0 %3988, %v2941_v9   ;;  %v6700_v51 = vld [vmem:[#allocation40_spill] sm:$0xff] }
 0x368   : > { %2982 = vmatpush.msrb.mxu3 %v2595_v35  ;;  %3022 = vmatpush.msrb.mxu2 %v2596_v52  ;;  %vm6679_vm0 = vmmov %vm6678_vm1  ;;  %v6692_v63 = vld [vmem:[#allocation30_spill] sm:$0xff]  ;;  %v6696_v35 = vld [vmem:[#allocation31_spill] sm:$0xff] }
 0x369   : > { %3062 = vmatpush.msra.mxu1 %v2597_v61  ;;  %3117 = vrot.lane.b32.xlu2 %v1981_v19, %s6587_s15  ;;  %vm6690_vm15 = vmmov %vm6673_vm3  ;;  %v6697_v52 = vld [vmem:[#allocation47_spill] sm:$0xff]  ;;  %v6701_v61 = vld [vmem:[#allocation29_spill] sm:$0xff] }
 0x36a   : > { %v3960_v6 = vpop.permute.xlu1 %3959  ;;  %vm6691_vm11 = vmmov %vm6673_vm3 }
 0x36b   : > { %v3962_v26 = vunpack.i.h.bf16 %v3960_v6  ;;  %v3961_v43 = vunpack.i.l.bf16 %v3960_v6  ;;  %v6702_v6 = vld [vmem:[#allocation41_spill] sm:$0xff] }
 0x36c   : > { %v2558_v22 = vpop.permute.xlu2 %2557 }
 0x36d   : > { %v2563_v57 = vsel %vm6671_vm7, %v3961_v43, %v3962_v26  ;;  %v2564_v1 = vsel %vm6672_vm9, %v3962_v26, %v2558_v22  ;;  %v2658_v3 = vpop.permute.xlu0 %2657  ;;  %vm6698_vm9 = vmmov %vm6679_vm0  ;;  %v6703_v26 = vld [vmem:[#allocation34_spill] sm:$0xff] }
 0x36e   : > { %2983 = vmatpush.msrb.mxu3 %v2563_v57  ;;  %3023 = vmatpush.msrb.mxu2 %v2564_v1 }
 0x372   : > { %v3965_v62 = vpop.permute.xlu1 %3964 }
 0x373   : > { %v3967_v14 = vunpack.i.h.bf16 %v3965_v62  ;;  %v3966_v37 = vunpack.i.l.bf16 %v3965_v62 }
 0x374   : > { %v6031_v45 = vpop.permute.xlu2 %2525 }
 0x375   : > { %v2531_v27 = vsel %vm6673_vm3, %v3966_v37, %v3967_v14  ;;  %v2532_v40 = vsel %vm6674_vm10, %v3967_v14, %v6031_v45  ;;  %v6036_v41 = vpop.permute.xlu0 %3974  ;;  %vm6699_vm3 = vmmov %vm6679_vm0 }
 0x376   : > { %2984 = vmatpush.msrb.mxu3 %v2531_v27  ;;  %3024 = vmatpush.msrb.mxu2 %v2532_v40  ;;  %v3976_v36 = vunpack.i.l.bf16 %v6036_v41 }
 0x378   : > { %v2565_v53 = vsel %vm6675_vm13, %v2558_v22, %v3976_v36 }
 0x379   : > { %3063 = vmatpush.msra.mxu1 %v2565_v53 }
 0x37a   : > { %v3970_v18 = vpop.permute.xlu1 %3969 }
 0x37b   : > { %v3972_v12 = vunpack.i.h.bf16 %v3970_v18  ;;  %v3971_v5 = vunpack.i.l.bf16 %v3970_v18 }
 0x37c   : > { %v6049_v58 = vpop.permute.xlu2 %2493 }
 0x37d   : > { %v2499_v11 = vsel %vm6676_vm12, %v3971_v5, %v3972_v12  ;;  %v2500_v31 = vsel %vm6677_vm6, %v3972_v12, %v6049_v58 }
 0x37e   : > { %2985 = vmatpush.msrb.mxu3 %v2499_v11  ;;  %3025 = vmatpush.msrb.mxu2 %v2500_v31 }
 0x37f   : > { %3263 = vmatmul.msk.f32.vlgmr.msrb.gmra.mxu3 %vm6678_vm1, %v6057_v48  ;;  %3264 = vmatmul.msk.f32.vlgmr.msrb.gmra.mxu2 %vm6679_vm0, %v6057_v48 }
 0x380   : > { %3030 = vmatpush.msra.mxu3 %v5833_v28  ;;  %3070 = vmatpush.msra.mxu2 %v5880_v60 }
 0x382   : > { %3031 = vmatpush.msra.mxu3 %v5863_v47  ;;  %3071 = vmatpush.msra.mxu2 %v5888_v10  ;;  %v2722_v32 = vpop.permute.xlu1 %2721  ;;  %v1984_v10 = vld [vmem:[%s4134_s11 + $0x28] sm:$0xff] }
 0x383   : > { %v2726_v28 = vsel %vm1380_vm4, %v3917_v24, %v2722_v32  ;;  %3123 = vrot.lane.b32.xlu0 %v1984_v10, %s6587_s15  ;;  %vm6681_vm4 = vmmov %vm6670_vm5 }
 0x384   : > { %3032 = vmatpush.msra.mxu3 %v5853_v21  ;;  %3072 = vmatpush.msra.mxu2 %v5856_v38  ;;  %v2690_v60 = vpop.permute.xlu2 %2689  ;;  %v2662_v21 = vsel %vm1286_vm14, %v3937_v50, %v2658_v3  ;;  %v1982_v38 = vld [vmem:[%s4134_s11 + $0x18] sm:$0xff]  ;;  %vm6683_vm14 = vmmov %vm6671_vm7 }
 0x385   : > { %3098 = vmatpush.msra.mxu0 %v2726_v28  ;;  %v2694_v47 = vsel %vm1333_vm2, %v3927_v56, %v2690_v60  ;;  %3119 = vrot.lane.b32.xlu1 %v1982_v38, %s6587_s15  ;;  %vm6680_vm2 = vcmask 441344   ;;  %v6687_v56 = vld [vmem:[#allocation35_spill] sm:$0xff]  ;;  %vm6694_vm5 = vmmov %vm6677_vm6 }
 0x386   : > { %3033 = vmatpush.msra.mxu3 %v5838_v29  ;;  %3073 = vmatpush.msra.mxu2 %v5841_v17  ;;  %v1983_v29 = vld [vmem:[%s4134_s11 + $0x20] sm:$0xff]  ;;  %vm6695_vm7 = vmmov %vm6694_vm5  ;;  %s3254_s11 = sshll.u32 %s4011_s21, 2 }
 0x387   : > { %3099 = vmatpush.msra.mxu0 %v2694_v47  ;;  %3121 = vrot.lane.b32.xlu2 %v1983_v29, %s6587_s15  ;;  %p299_p7 = scmp.lt.s32.totalorder %s3254_s11, 7  ;;  %s3255_s15 = sshll.u32 %s6715_s22, 3 }
 0x388   : > { %3034 = vmatpush.msra.mxu3 %v5825_v0  ;;  %3074 = vmatpush.msra.mxu2 %v5828_v13  ;;  %v3977_v0 = vunpack.i.h.bf16 %v6036_v41 }
 0x389   : > { %3100 = vmatpush.msra.mxu0 %v2662_v21  ;;  %s6717_s11 = smov (!%p299_p7, %s3254_s11), 7 }
 0x38a   : > { %3035 = vmatpush.msra.mxu3 %v5809_v49  ;;  %3075 = vmatpush.msra.mxu2 %v5812_v8  ;;  %v2626_v17 = vpop.permute.xlu1 %2625  ;;  %v6684_v8 = vld [vmem:[#allocation28_spill] sm:$0xff]  ;;  %s302_s17 = sadd.s32 %s3255_s15, %s6717_s11 }
 0x38b   : > { %v2630_v13 = vsel %vm6680_vm2, %v3947_v23, %v2626_v17  ;;  %v6689_v23 = vld [vmem:[#allocation38_spill] sm:$0xff]  ;;  %s3256_s18 = sshll.u32 %s302_s17, 3 }
 0x38c   : > { %3036 = vmatpush.msra.mxu3 %v5791_v20  ;;  %3076 = vmatpush.msra.mxu2 %v5794_v16  ;;  %v2594_v42 = vpop.permute.xlu2 %2593  ;;  %v6682_v20 = vld [vmem:[#allocation32_spill] sm:$0xff]  ;;  %v2566_v16 = vsel %vm6683_vm14, %v3976_v36, %v3977_v0  ;;  %s304_s22 = scalar_lea.vmem %s6169_s6, %s3256_s18 }
 0x38d   : > { %3101 = vmatpush.msra.mxu0 %v2630_v13  ;;  %v2598_v49 = vsel %vm6681_vm4, %v3957_v34, %v2594_v42 }
 0x38e   : > { %3037 = vmatpush.msra.mxu3 %v5773_v54  ;;  %3077 = vmatpush.msra.mxu2 %v5776_v30 }
 0x38f   : > { %3102 = vmatpush.msra.mxu0 %v2598_v49 }
 0x390   : > { %3038 = vmatpush.msra.mxu3 %v5752_v55  ;;  %3078 = vmatpush.msra.mxu2 %v6682_v20 }
 0x391   : > { %3103 = vmatpush.msra.mxu0 %v2566_v16 }
 0x392   : > { %3039 = vmatpush.msra.mxu3 %v6684_v8  ;;  %3079 = vmatpush.msra.mxu2 %v6685_v46  ;;  %v3980_v54 = vpop.permute.xlu1 %3979 }
 0x393   : > { %v3982_v30 = vunpack.i.h.bf16 %v3980_v54  ;;  %v3981_v24 = vunpack.i.l.bf16 %v3980_v54 }
 0x394   : > { %3040 = vmatpush.msra.mxu3 %v6686_v7  ;;  %3080 = vmatpush.msra.mxu2 %v6687_v56  ;;  %v3985_v39 = vpop.permute.xlu2 %3984 }
 0x395   : > { %v3987_v55 = vunpack.i.h.bf16 %v3985_v39  ;;  %v3986_v50 = vunpack.i.l.bf16 %v3985_v39  ;;  %v2533_v34 = vsel %vm6690_vm15, %v6031_v45, %v3981_v24  ;;  %v2534_v15 = vsel %vm6691_vm11, %v3981_v24, %v3982_v30 }
 0x396   : > { %3041 = vmatpush.msra.mxu3 %v6688_v2  ;;  %3081 = vmatpush.msra.mxu2 %v6689_v23 }
 0x397   : > { %3064 = vmatpush.msra.mxu1 %v2533_v34  ;;  %3104 = vmatpush.msra.mxu0 %v2534_v15  ;;  %v2501_v33 = vsel %vm6694_vm5, %v6049_v58, %v3986_v50  ;;  %v2502_v59 = vsel %vm6695_vm7, %v3986_v50, %v3987_v55 }
 0x398   : > { %3042 = vmatpush.msra.mxu3 %v6692_v63  ;;  %3082 = vmatpush.msra.mxu2 %v6693_v25 }
 0x399   : > { %3065 = vmatpush.msra.mxu1 %v2501_v33  ;;  %3105 = vmatpush.msra.mxu0 %v2502_v59 }
 0x39a   : > { %3043 = vmatpush.msra.mxu3 %v6696_v35  ;;  %3083 = vmatpush.msra.mxu2 %v6697_v52 }
 0x39b   : > { %3265 = vmatmul.msk.f32.vlgmr.msra.gmra.mxu1 %vm6698_vm9, %v6057_v48  ;;  %3266 = vmatmul.msk.f32.vlgmr.msra.gmra.mxu0 %vm6699_vm3, %v6057_v48 }
 0x39c   : > { %3044 = vmatpush.msra.mxu3 %v6700_v51  ;;  %3084 = vmatpush.msra.mxu2 %v6701_v61 }
 0x39e   : > { %3045 = vmatpush.msra.mxu3 %v6702_v6  ;;  %3085 = vmatpush.msra.mxu2 %v6703_v26 }
 0x39f   : > { %3046 = vmatmul.f32.vlgmr.msra.gmra.mxu3 %v6045_v4  ;;  %3086 = vmatmul.f32.vlgmr.msra.gmra.mxu2 %v6045_v4 }
 0x3c3   : > { %v3118_v37 = vpop.permute.xlu2 %3117 }
 0x3d4   : > { %v3116_v43 = vpop.permute.xlu1 %3115 }
 0x3d5   : > { %v3125_v40 = vsel %vm1521_vm8, %v3116_v43, %v3118_v37 }
 0x3d9   : > { %v2945_v22 = vpop.permute.xlu0 %2944 }
 0x3dc   : > { %v2967_v57 = vpop.f32.mrf.mxu1 }
 0x3dd   : > { %v2968_v3 = vadd.f32 %v2967_v57, %v2945_v22 }
 0x3de   : > { %v3007_v1 = vpop.f32.mrf.mxu0 }
 0x3df   : > { %v3008_v62 = vadd.f32 %v3007_v1, %v2945_v22 }
 0x3e1   : > { %v3122_v12 = vpop.permute.xlu2 %3121 }
 0x3f5   : > { %v3124_v5 = vpop.permute.xlu0 %3123 }
 0x3f6   : > { %v3128_v32 = vsel %vm1521_vm8, %v3122_v12, %v3124_v5 }
 0x3f7   : > { %v3120_v14 = vpop.permute.xlu1 %3119 }
 0x3f8   : > { %v3126_v41 = vsel %vm1521_vm8, %v3118_v37, %v3120_v14  ;;  %v3127_v19 = vsel %vm1521_vm8, %v3120_v14, %v3122_v12 }
 0x402   : > { %v2987_v45 = vpop.f32.mrf.mxu3  ;;  %v3027_v27 = vpop.f32.mrf.mxu2 }
 0x403   : > { %v2988_v36 = vadd.f32 %v2987_v45, %v2968_v3  ;;  %v3028_v53 = vadd.f32 %v3027_v27, %v3008_v62 }
 0x405   : > { %v3133_v4 = vadd.f32 %v3125_v40, %v2988_v36  ;;  %v3134_v18 = vadd.f32 %v3126_v41, %v3028_v53 }
 0x407   : > { %3137 = vst [vmem:[%s304_s22] sm:$0xff] %v3133_v4 }
 0x408   : > { %3138 = vst [vmem:[%s304_s22 + $0x8] sm:$0xff] %v3134_v18 }
 0x418   : > { %v3067_v58 = vpop.f32.mrf.mxu1  ;;  %v3107_v11 = vpop.f32.mrf.mxu0 }
 0x422   : > { %v3047_v31 = vpop.f32.mrf.mxu3  ;;  %v3087_v48 = vpop.f32.mrf.mxu2 }
 0x423   : > { %v3048_v44 = vadd.f32 %v3047_v31, %v2945_v22  ;;  %v3088_v9 = vadd.f32 %v3087_v48, %v2945_v22 }
 0x425   : > { %v3068_v28 = vadd.f32 %v3067_v58, %v3048_v44  ;;  %v3108_v60 = vadd.f32 %v3107_v11, %v3088_v9 }
 0x427   : > { %v3135_v47 = vadd.f32 %v3127_v19, %v3068_v28  ;;  %v3136_v21 = vadd.f32 %v3128_v32, %v3108_v60 }
 0x429   : > { %3139 = vst [vmem:[%s304_s22 + $0x10] sm:$0xff] %v3135_v47 }
 0x42a   : > { %3140 = vst [vmem:[%s304_s22 + $0x18] sm:$0xff] %v3136_v21 }
 0x42b PF: > { %s16_s25 = sadd.s32 1, %s4027_s25   ;;  %s6704_s21 = smov %s4019_s23 }
 0x42c   : > { %p13_p8 = scmp.ge.s32.totalorder %s16_s25, 6   ;;  %s6705_s22 = smov %s4023_s24 }
 0x42d   : > { %s6706_s23 = smov %s6709_s26  ;;  %s6707_s24 = smov %s6713_s27 }
 0x42e   :  { %15 = sbr.rel (!%p13_p8) target bundleno = 3 (0x3), region = 77 }

</bundles_post_ra>
